<compile_context>
chip_gen: v7x
topology: tpu7x:2x2x1
jax: 0.10.0
libtpu: 0.0.40
codegen_flags: <defaults>
</compile_context>

<pallas_src>
import functools

import jax
import jax.numpy as jnp
from jax.experimental import pallas as pl
from jax.experimental.pallas import tpu as pltpu

LANE = 128  # pad every output/hidden feature dim to a full lane width


# ----------------------------- Pallas kernels ------------------------------

def _conv_relu_pool_kernel(x_ref, w_ref, b_ref, o_ref):
    """Fused conv-as-matmul + bias + ReLU + 2x2 max-pool.

    x_ref: (4, M, K)  -- four im2col matrices, one per 2x2 pool-window tap,
                         rows = B*Ho2*Wo2 pooled output pixels.
    w_ref: (K, LANE)  -- flattened conv weights, lane-padded with zeros.
    b_ref: (1, LANE)  -- bias, lane-padded with zeros.
    o_ref: (M, LANE)
    """
    w = w_ref[...]
    # max over the 4 pool taps directly on the f32 accumulator; bias is tap-
    # independent and ReLU is monotone, so max/bias/relu commute as written.
    acc = jnp.dot(x_ref[0], w, preferred_element_type=jnp.float32)
    for t in range(1, 4):
        acc = jnp.maximum(
            acc, jnp.dot(x_ref[t], w, preferred_element_type=jnp.float32))
    acc = jnp.maximum(acc + b_ref[...], 0.0)
    o_ref[...] = acc.astype(o_ref.dtype)


def _mlp_kernel(x_ref, w1_ref, b1_ref, w2_ref, b2_ref, w3_ref, b3_ref, o_ref):
    """fc1+ReLU -> fc2+ReLU -> fc3, all weights VMEM-resident, lanes padded."""
    h = jnp.dot(x_ref[...], w1_ref[...], preferred_element_type=jnp.float32)
    h = jnp.maximum(h + b1_ref[...], 0.0)
    h = jnp.dot(h, w2_ref[...], preferred_element_type=jnp.float32)
    h = jnp.maximum(h + b2_ref[...], 0.0)
    o = jnp.dot(h, w3_ref[...], preferred_element_type=jnp.float32)
    o_ref[...] = (o + b3_ref[...]).astype(o_ref.dtype)


# --------------------------- pallas_call wrappers ---------------------------

def conv_relu_pool_call(x4, w_p, b_p):
    """x4: (4, M, K), w_p: (K, LANE), b_p: (1, LANE) -> (M, LANE)."""
    _, M, K = x4.shape
    return pl.pallas_call(
        _conv_relu_pool_kernel,
        out_shape=jax.ShapeDtypeStruct((M, LANE), x4.dtype),
        grid=(1,),
        in_specs=[
            pl.BlockSpec((4, M, K), lambda i: (0, 0, 0)),
            pl.BlockSpec((K, LANE), lambda i: (0, 0)),
            pl.BlockSpec((1, LANE), lambda i: (0, 0)),
        ],
        out_specs=pl.BlockSpec((M, LANE), lambda i: (0, 0)),
        compiler_params=pltpu.CompilerParams(
            dimension_semantics=("arbitrary",)),
    )(x4, w_p, b_p)


def mlp_call(x, p):
    """x: (B, K1) -> (B, 10); fc1/fc2/fc3 fused in one kernel."""
    B, K1 = x.shape
    out = pl.pallas_call(
        _mlp_kernel,
        out_shape=jax.ShapeDtypeStruct((B, LANE), x.dtype),
        grid=(1,),
        in_specs=[
            pl.BlockSpec((B, K1), lambda i: (0, 0)),
            pl.BlockSpec((K1, LANE), lambda i: (0, 0)),
            pl.BlockSpec((1, LANE), lambda i: (0, 0)),
            pl.BlockSpec((LANE, LANE), lambda i: (0, 0)),
            pl.BlockSpec((1, LANE), lambda i: (0, 0)),
            pl.BlockSpec((LANE, LANE), lambda i: (0, 0)),
            pl.BlockSpec((1, LANE), lambda i: (0, 0)),
        ],
        out_specs=pl.BlockSpec((B, LANE), lambda i: (0, 0)),
        compiler_params=pltpu.CompilerParams(
            dimension_semantics=("arbitrary",)),
    )(x, p["fc1_w"], p["fc1_b"], p["fc2_w"], p["fc2_b"], p["fc3_w"], p["fc3_b"])
    return out[:, :10]


# ----------------------------- JAX glue (layout) ----------------------------
# TODO(synk): im2col / NHWC->NCHW shuffles stay as tiny XLA ops; moving them
# inside the kernel needs in-kernel gathers/reshapes that do not lower cleanly
# at these shapes and are not the bottleneck.

def _im2col_pooled(x_nchw, k, pad):
    """(B, C, H, W) -> (4, B*Ho2*Wo2, C*k*k).

    Leading axis of size 4 holds the four 2x2 pool-window taps (di, dj), so
    the pool becomes an elementwise max over that axis inside the kernel.
    Column order is channel-major, (kh*k + kw) minor -- matches torch's
    OIHW weight flattening.
    """
    B, C, H, W = x_nchw.shape
    xp = jnp.pad(x_nchw, ((0, 0), (0, 0), (pad, pad), (pad, pad)))
    Ho = H + 2 * pad - k + 1
    Wo = W + 2 * pad - k + 1
    Ho2, Wo2 = Ho // 2, Wo // 2
    taps = []
    for di in range(2):
        for dj in range(2):
            cols = []
            for kh in range(k):
                for kw in range(k):
                    cols.append(xp[:, :,
                                   di + kh: di + kh + 2 * Ho2: 2,
                                   dj + kw: dj + kw + 2 * Wo2: 2])
            p = jnp.stack(cols, axis=0)              # (k*k, B, C, Ho2, Wo2)
            p = jnp.transpose(p, (1, 3, 4, 2, 0))    # (B, Ho2, Wo2, C, k*k)
            taps.append(p.reshape(B * Ho2 * Wo2, C * k * k))
    return jnp.stack(taps, axis=0), Ho2, Wo2


def conv_relu_pool(x_nchw, w_p, b_p, *, k, pad, cout):
    """Conv2d(stride=1) + ReLU + MaxPool2d(2,2); NCHW in, NCHW out."""
    B = x_nchw.shape[0]
    x4, Ho2, Wo2 = _im2col_pooled(x_nchw, k, pad)
    y = conv_relu_pool_call(x4, w_p, b_p)            # (B*Ho2*Wo2, LANE)
    y = y[:, :cout].reshape(B, Ho2, Wo2, cout)
    return jnp.transpose(y, (0, 3, 1, 2))            # NCHW


# ----------------------------- Parameters & model ---------------------------

def init_params(key):
    def uniform(k, shape, fan_in):
        bound = 1.0 / (fan_in ** 0.5)
        return jax.random.uniform(k, shape, jnp.float32, -bound, bound)

    ks = jax.random.split(key, 10)
    return dict(
        conv1_w=uniform(ks[0], (6, 1, 5, 5), 1 * 5 * 5),
        conv1_b=uniform(ks[1], (6,), 1 * 5 * 5),
        conv2_w=uniform(ks[2], (16, 6, 5, 5), 6 * 5 * 5),
        conv2_b=uniform(ks[3], (16,), 6 * 5 * 5),
        fc1_w=uniform(ks[4], (120, 400), 400),
        fc1_b=uniform(ks[5], (120,), 400),
        fc2_w=uniform(ks[6], (84, 120), 120),
        fc2_b=uniform(ks[7], (84,), 120),
        fc3_w=uniform(ks[8], (10, 84), 84),
        fc3_b=uniform(ks[9], (10,), 84),
    )


def prepare_params(params):
    """One-time weight packing: transpose + zero-pad lanes to 128 (NOT per-step)."""
    def pad_lanes(a):
        return jnp.pad(a, [(0, 0)] * (a.ndim - 1) + [(0, LANE - a.shape[-1])])

    def conv_w(w):
        cout, cin, k, _ = w.shape
        return pad_lanes(w.reshape(cout, cin * k * k).T)          # (K, LANE)

    def fc_w(w, k_pad):
        wm = w.T                                                   # (K, N)
        return jnp.pad(wm, ((0, k_pad - wm.shape[0]),
                            (0, LANE - wm.shape[1])))

    def bias(b):
        return pad_lanes(b.reshape(1, -1))                         # (1, LANE)

    return dict(
        conv1_w=conv_w(params["conv1_w"]), conv1_b=bias(params["conv1_b"]),
        conv2_w=conv_w(params["conv2_w"]), conv2_b=bias(params["conv2_b"]),
        fc1_w=fc_w(params["fc1_w"], 400),  fc1_b=bias(params["fc1_b"]),
        fc2_w=fc_w(params["fc2_w"], LANE), fc2_b=bias(params["fc2_b"]),
        fc3_w=fc_w(params["fc3_w"], LANE), fc3_b=bias(params["fc3_b"]),
    )


@jax.jit
def lenet_forward(prepped, x):
    # conv1: Conv2d(1, 6, 5, stride=1, pad=2) + ReLU + MaxPool(2, 2)
    x = conv_relu_pool(x, prepped["conv1_w"], prepped["conv1_b"],
                       k=5, pad=2, cout=6)
    # conv2: Conv2d(6, 16, 5) + ReLU + MaxPool(2, 2)
    x = conv_relu_pool(x, prepped["conv2_w"], prepped["conv2_b"],
                       k=5, pad=0, cout=16)
    # flatten in NCHW order, exactly like torch's x.view(B, -1)
    B = x.shape[0]
    x = x.reshape(B, 16 * 5 * 5)
    # fc1 + ReLU + fc2 + ReLU + fc3, single fused kernel
    return mlp_call(x, prepped)


def lenet_reference(params, x):
    """Pure-JAX reference for correctness checking."""
    def conv(x, w, b, pad):
        y = jax.lax.conv_general_dilated(
            x, w, (1, 1), [(pad, pad), (pad, pad)],
            dimension_numbers=("NCHW", "OIHW", "NCHW"))
        return y + b[None, :, None, None]

    x = jax.nn.relu(conv(x, params["conv1_w"], params["conv1_b"], 2))
    x = jax.lax.reduce_window(x, -jnp.inf, jax.lax.max,
                              (1, 1, 2, 2), (1, 1, 2, 2), "VALID")
    x = jax.nn.relu(conv(x, params["conv2_w"], params["conv2_b"], 0))
    x = jax.lax.reduce_window(x, -jnp.inf, jax.lax.max,
                              (1, 1, 2, 2), (1, 1, 2, 2), "VALID")
    x = x.reshape(x.shape[0], -1)
    x = jax.nn.relu(x @ params["fc1_w"].T + params["fc1_b"])
    x = jax.nn.relu(x @ params["fc2_w"].T + params["fc2_b"])
    return x @ params["fc3_w"].T + params["fc3_b"]


if __name__ == "__main__":
    key = jax.random.PRNGKey(0)
    pkey, xkey = jax.random.split(key)
    params = init_params(pkey)
    prepped = prepare_params(params)   # one-time weight packing (outside jit)

    # LeNet's 16*5*5 flatten implies a 1x28x28 input; small batch of 2.
    x = jax.random.normal(xkey, (2, 1, 28, 28), jnp.float32)

    out = lenet_forward(prepped, x)
    jax.block_until_ready(out)

    assert out.shape == (2, 10), out.shape
    ref = lenet_reference(params, x)
    assert jnp.allclose(out, ref, atol=5e-3, rtol=5e-3), (out, ref)

    print("KERNEL_OK")
</pallas_src>

<mosaic_0001>
module attributes {stable_mosaic.version = 11 : i64} {
  func.func @_conv_relu_pool_kernel(%arg0: i32, %arg1: memref<4x392x25xf32, #tpu.memory_space<vmem>>, %arg2: memref<25x128xf32, #tpu.memory_space<vmem>>, %arg3: memref<1x128xf32, #tpu.memory_space<vmem>>, %arg4: memref<392x128xf32, #tpu.memory_space<vmem>>) attributes {dimension_semantics = [#tpu.dimension_semantics<arbitrary>], iteration_bounds = array<i64: 1>, scalar_prefetch = 0 : i64, scratch_operands = 0 : i64, tpu.core_type = #tpu.core_type<tc>, window_params = [{pipeline_mode = #tpu.pipeline_mode<synchronous>, transform_indices = @transform_0, window_bounds = array<i64: 4, 392, 25>}, {pipeline_mode = #tpu.pipeline_mode<synchronous>, transform_indices = @transform_1, window_bounds = array<i64: 25, 128>}, {pipeline_mode = #tpu.pipeline_mode<synchronous>, transform_indices = @transform_2, window_bounds = array<i64: 1, 128>}, {pipeline_mode = #tpu.pipeline_mode<synchronous>, transform_indices = @transform_3, window_bounds = array<i64: 392, 128>}]} {
    %c0 = arith.constant 0 : index
    %c0_0 = arith.constant 0 : index
    %0 = vector.load %arg2[%c0, %c0_0] : memref<25x128xf32, #tpu.memory_space<vmem>>, vector<25x128xf32>
    %c0_1 = arith.constant 0 : index
    %c0_2 = arith.constant 0 : index
    %c0_3 = arith.constant 0 : index
    %1 = vector.load %arg1[%c0_1, %c0_2, %c0_3] : memref<4x392x25xf32, #tpu.memory_space<vmem>>, vector<1x392x25xf32>
    %2 = vector.shape_cast %1 : vector<1x392x25xf32> to vector<392x25xf32>
    %cst = arith.constant dense<0.000000e+00> : vector<392x128xf32>
    %3 = tpu.matmul %2, %0, %cst {dimension_numbers = #tpu.dot_dimension_numbers<[1], [0], [0], [1], [0, 0, 1, 1], [], []>} : vector<392x25xf32>, vector<25x128xf32>, vector<392x128xf32> -> vector<392x128xf32>
    %c1 = arith.constant 1 : index
    %c0_4 = arith.constant 0 : index
    %c0_5 = arith.constant 0 : index
    %4 = vector.load %arg1[%c1, %c0_4, %c0_5] : memref<4x392x25xf32, #tpu.memory_space<vmem>>, vector<1x392x25xf32>
    %5 = vector.shape_cast %4 : vector<1x392x25xf32> to vector<392x25xf32>
    %cst_6 = arith.constant dense<0.000000e+00> : vector<392x128xf32>
    %6 = tpu.matmul %5, %0, %cst_6 {dimension_numbers = #tpu.dot_dimension_numbers<[1], [0], [0], [1], [0, 0, 1, 1], [], []>} : vector<392x25xf32>, vector<25x128xf32>, vector<392x128xf32> -> vector<392x128xf32>
    %7 = arith.maximumf %3, %6 : vector<392x128xf32>
    %c2 = arith.constant 2 : index
    %c0_7 = arith.constant 0 : index
    %c0_8 = arith.constant 0 : index
    %8 = vector.load %arg1[%c2, %c0_7, %c0_8] : memref<4x392x25xf32, #tpu.memory_space<vmem>>, vector<1x392x25xf32>
    %9 = vector.shape_cast %8 : vector<1x392x25xf32> to vector<392x25xf32>
    %cst_9 = arith.constant dense<0.000000e+00> : vector<392x128xf32>
    %10 = tpu.matmul %9, %0, %cst_9 {dimension_numbers = #tpu.dot_dimension_numbers<[1], [0], [0], [1], [0, 0, 1, 1], [], []>} : vector<392x25xf32>, vector<25x128xf32>, vector<392x128xf32> -> vector<392x128xf32>
    %11 = arith.maximumf %7, %10 : vector<392x128xf32>
    %c3 = arith.constant 3 : index
    %c0_10 = arith.constant 0 : index
    %c0_11 = arith.constant 0 : index
    %12 = vector.load %arg1[%c3, %c0_10, %c0_11] : memref<4x392x25xf32, #tpu.memory_space<vmem>>, vector<1x392x25xf32>
    %13 = vector.shape_cast %12 : vector<1x392x25xf32> to vector<392x25xf32>
    %cst_12 = arith.constant dense<0.000000e+00> : vector<392x128xf32>
    %14 = tpu.matmul %13, %0, %cst_12 {dimension_numbers = #tpu.dot_dimension_numbers<[1], [0], [0], [1], [0, 0, 1, 1], [], []>} : vector<392x25xf32>, vector<25x128xf32>, vector<392x128xf32> -> vector<392x128xf32>
    %15 = arith.maximumf %11, %14 : vector<392x128xf32>
    %c0_13 = arith.constant 0 : index
    %c0_14 = arith.constant 0 : index
    %16 = vector.load %arg3[%c0_13, %c0_14] : memref<1x128xf32, #tpu.memory_space<vmem>>, vector<1x128xf32>
    %17 = vector.broadcast %16 : vector<1x128xf32> to vector<392x128xf32>
    %18 = arith.addf %15, %17 : vector<392x128xf32>
    %cst_15 = arith.constant 0.000000e+00 : f32
    %19 = vector.broadcast %cst_15 : f32 to vector<392x128xf32>
    %20 = arith.maximumf %18, %19 : vector<392x128xf32>
    %c0_16 = arith.constant 0 : index
    %c0_17 = arith.constant 0 : index
    %21 = vector.load %arg4[%c0_16, %c0_17] : memref<392x128xf32, #tpu.memory_space<vmem>>, vector<392x128xf32>
    tpu.vector_store %arg4[%c0_16, %c0_17], %20 {strides = array<i32>} : memref<392x128xf32, #tpu.memory_space<vmem>>, vector<392x128xf32>,
    return
  }
  func.func @transform_0(%arg0: i32) -> (i32, i32, i32) {
    %c0_i32 = arith.constant 0 : i32
    %c0_i32_0 = arith.constant 0 : i32
    %c0_i32_1 = arith.constant 0 : i32
    %c0_i32_2 = arith.constant 0 : i32
    return %c0_i32, %c0_i32_0, %c0_i32_1 : i32, i32, i32
  }
  func.func @transform_1(%arg0: i32) -> (i32, i32) {
    %c0_i32 = arith.constant 0 : i32
    %c0_i32_0 = arith.constant 0 : i32
    %c0_i32_1 = arith.constant 0 : i32
    return %c0_i32, %c0_i32_0 : i32, i32
  }
  func.func @transform_2(%arg0: i32) -> (i32, i32) {
    %c0_i32 = arith.constant 0 : i32
    %c0_i32_0 = arith.constant 0 : i32
    %c0_i32_1 = arith.constant 0 : i32
    return %c0_i32, %c0_i32_0 : i32, i32
  }
  func.func @transform_3(%arg0: i32) -> (i32, i32) {
    %c0_i32 = arith.constant 0 : i32
    %c0_i32_0 = arith.constant 0 : i32
    %c0_i32_1 = arith.constant 0 : i32
    return %c0_i32, %c0_i32_0 : i32, i32
  }
}

module attributes {stable_mosaic.version = 11 : i64} {
  func.func @_conv_relu_pool_kernel(%arg0: i32, %arg1: memref<4x50x150xf32, #tpu.memory_space<vmem>>, %arg2: memref<150x128xf32, #tpu.memory_space<vmem>>, %arg3: memref<1x128xf32, #tpu.memory_space<vmem>>, %arg4: memref<50x128xf32, #tpu.memory_space<vmem>>) attributes {dimension_semantics = [#tpu.dimension_semantics<arbitrary>], iteration_bounds = array<i64: 1>, scalar_prefetch = 0 : i64, scratch_operands = 0 : i64, tpu.core_type = #tpu.core_type<tc>, window_params = [{pipeline_mode = #tpu.pipeline_mode<synchronous>, transform_indices = @transform_0, window_bounds = array<i64: 4, 50, 150>}, {pipeline_mode = #tpu.pipeline_mode<synchronous>, transform_indices = @transform_1, window_bounds = array<i64: 150, 128>}, {pipeline_mode = #tpu.pipeline_mode<synchronous>, transform_indices = @transform_2, window_bounds = array<i64: 1, 128>}, {pipeline_mode = #tpu.pipeline_mode<synchronous>, transform_indices = @transform_3, window_bounds = array<i64: 50, 128>}]} {
    %c0 = arith.constant 0 : index
    %c0_0 = arith.constant 0 : index
    %0 = vector.load %arg2[%c0, %c0_0] : memref<150x128xf32, #tpu.memory_space<vmem>>, vector<150x128xf32>
    %c0_1 = arith.constant 0 : index
    %c0_2 = arith.constant 0 : index
    %c0_3 = arith.constant 0 : index
    %1 = vector.load %arg1[%c0_1, %c0_2, %c0_3] : memref<4x50x150xf32, #tpu.memory_space<vmem>>, vector<1x50x150xf32>
    %2 = vector.shape_cast %1 : vector<1x50x150xf32> to vector<50x150xf32>
    %cst = arith.constant dense<0.000000e+00> : vector<50x128xf32>
    %3 = tpu.matmul %2, %0, %cst {dimension_numbers = #tpu.dot_dimension_numbers<[1], [0], [0], [1], [0, 0, 1, 1], [], []>} : vector<50x150xf32>, vector<150x128xf32>, vector<50x128xf32> -> vector<50x128xf32>
    %c1 = arith.constant 1 : index
    %c0_4 = arith.constant 0 : index
    %c0_5 = arith.constant 0 : index
    %4 = vector.load %arg1[%c1, %c0_4, %c0_5] : memref<4x50x150xf32, #tpu.memory_space<vmem>>, vector<1x50x150xf32>
    %5 = vector.shape_cast %4 : vector<1x50x150xf32> to vector<50x150xf32>
    %cst_6 = arith.constant dense<0.000000e+00> : vector<50x128xf32>
    %6 = tpu.matmul %5, %0, %cst_6 {dimension_numbers = #tpu.dot_dimension_numbers<[1], [0], [0], [1], [0, 0, 1, 1], [], []>} : vector<50x150xf32>, vector<150x128xf32>, vector<50x128xf32> -> vector<50x128xf32>
    %7 = arith.maximumf %3, %6 : vector<50x128xf32>
    %c2 = arith.constant 2 : index
    %c0_7 = arith.constant 0 : index
    %c0_8 = arith.constant 0 : index
    %8 = vector.load %arg1[%c2, %c0_7, %c0_8] : memref<4x50x150xf32, #tpu.memory_space<vmem>>, vector<1x50x150xf32>
    %9 = vector.shape_cast %8 : vector<1x50x150xf32> to vector<50x150xf32>
    %cst_9 = arith.constant dense<0.000000e+00> : vector<50x128xf32>
    %10 = tpu.matmul %9, %0, %cst_9 {dimension_numbers = #tpu.dot_dimension_numbers<[1], [0], [0], [1], [0, 0, 1, 1], [], []>} : vector<50x150xf32>, vector<150x128xf32>, vector<50x128xf32> -> vector<50x128xf32>
    %11 = arith.maximumf %7, %10 : vector<50x128xf32>
    %c3 = arith.constant 3 : index
    %c0_10 = arith.constant 0 : index
    %c0_11 = arith.constant 0 : index
    %12 = vector.load %arg1[%c3, %c0_10, %c0_11] : memref<4x50x150xf32, #tpu.memory_space<vmem>>, vector<1x50x150xf32>
    %13 = vector.shape_cast %12 : vector<1x50x150xf32> to vector<50x150xf32>
    %cst_12 = arith.constant dense<0.000000e+00> : vector<50x128xf32>
    %14 = tpu.matmul %13, %0, %cst_12 {dimension_numbers = #tpu.dot_dimension_numbers<[1], [0], [0], [1], [0, 0, 1, 1], [], []>} : vector<50x150xf32>, vector<150x128xf32>, vector<50x128xf32> -> vector<50x128xf32>
    %15 = arith.maximumf %11, %14 : vector<50x128xf32>
    %c0_13 = arith.constant 0 : index
    %c0_14 = arith.constant 0 : index
    %16 = vector.load %arg3[%c0_13, %c0_14] : memref<1x128xf32, #tpu.memory_space<vmem>>, vector<1x128xf32>
    %17 = vector.broadcast %16 : vector<1x128xf32> to vector<50x128xf32>
    %18 = arith.addf %15, %17 : vector<50x128xf32>
    %cst_15 = arith.constant 0.000000e+00 : f32
    %19 = vector.broadcast %cst_15 : f32 to vector<50x128xf32>
    %20 = arith.maximumf %18, %19 : vector<50x128xf32>
    %c0_16 = arith.constant 0 : index
    %c0_17 = arith.constant 0 : index
    %21 = vector.load %arg4[%c0_16, %c0_17] : memref<50x128xf32, #tpu.memory_space<vmem>>, vector<50x128xf32>
    tpu.vector_store %arg4[%c0_16, %c0_17], %20 {strides = array<i32>} : memref<50x128xf32, #tpu.memory_space<vmem>>, vector<50x128xf32>,
    return
  }
  func.func @transform_0(%arg0: i32) -> (i32, i32, i32) {
    %c0_i32 = arith.constant 0 : i32
    %c0_i32_0 = arith.constant 0 : i32
    %c0_i32_1 = arith.constant 0 : i32
    %c0_i32_2 = arith.constant 0 : i32
    return %c0_i32, %c0_i32_0, %c0_i32_1 : i32, i32, i32
  }
  func.func @transform_1(%arg0: i32) -> (i32, i32) {
    %c0_i32 = arith.constant 0 : i32
    %c0_i32_0 = arith.constant 0 : i32
    %c0_i32_1 = arith.constant 0 : i32
    return %c0_i32, %c0_i32_0 : i32, i32
  }
  func.func @transform_2(%arg0: i32) -> (i32, i32) {
    %c0_i32 = arith.constant 0 : i32
    %c0_i32_0 = arith.constant 0 : i32
    %c0_i32_1 = arith.constant 0 : i32
    return %c0_i32, %c0_i32_0 : i32, i32
  }
  func.func @transform_3(%arg0: i32) -> (i32, i32) {
    %c0_i32 = arith.constant 0 : i32
    %c0_i32_0 = arith.constant 0 : i32
    %c0_i32_1 = arith.constant 0 : i32
    return %c0_i32, %c0_i32_0 : i32, i32
  }
}

module attributes {stable_mosaic.version = 11 : i64} {
  func.func @_mlp_kernel(%arg0: i32, %arg1: memref<2x400xf32, #tpu.memory_space<vmem>>, %arg2: memref<400x128xf32, #tpu.memory_space<vmem>>, %arg3: memref<1x128xf32, #tpu.memory_space<vmem>>, %arg4: memref<128x128xf32, #tpu.memory_space<vmem>>, %arg5: memref<1x128xf32, #tpu.memory_space<vmem>>, %arg6: memref<128x128xf32, #tpu.memory_space<vmem>>, %arg7: memref<1x128xf32, #tpu.memory_space<vmem>>, %arg8: memref<2x128xf32, #tpu.memory_space<vmem>>) attributes {dimension_semantics = [#tpu.dimension_semantics<arbitrary>], iteration_bounds = array<i64: 1>, scalar_prefetch = 0 : i64, scratch_operands = 0 : i64, tpu.core_type = #tpu.core_type<tc>, window_params = [{pipeline_mode = #tpu.pipeline_mode<synchronous>, transform_indices = @transform_0, window_bounds = array<i64: 2, 400>}, {pipeline_mode = #tpu.pipeline_mode<synchronous>, transform_indices = @transform_1, window_bounds = array<i64: 400, 128>}, {pipeline_mode = #tpu.pipeline_mode<synchronous>, transform_indices = @transform_2, window_bounds = array<i64: 1, 128>}, {pipeline_mode = #tpu.pipeline_mode<synchronous>, transform_indices = @transform_3, window_bounds = array<i64: 128, 128>}, {pipeline_mode = #tpu.pipeline_mode<synchronous>, transform_indices = @transform_4, window_bounds = array<i64: 1, 128>}, {pipeline_mode = #tpu.pipeline_mode<synchronous>, transform_indices = @transform_5, window_bounds = array<i64: 128, 128>}, {pipeline_mode = #tpu.pipeline_mode<synchronous>, transform_indices = @transform_6, window_bounds = array<i64: 1, 128>}, {pipeline_mode = #tpu.pipeline_mode<synchronous>, transform_indices = @transform_7, window_bounds = array<i64: 2, 128>}]} {
    %c0 = arith.constant 0 : index
    %c0_0 = arith.constant 0 : index
    %0 = vector.load %arg1[%c0, %c0_0] : memref<2x400xf32, #tpu.memory_space<vmem>>, vector<2x400xf32>
    %c0_1 = arith.constant 0 : index
    %c0_2 = arith.constant 0 : index
    %1 = vector.load %arg2[%c0_1, %c0_2] : memref<400x128xf32, #tpu.memory_space<vmem>>, vector<400x128xf32>
    %cst = arith.constant dense<0.000000e+00> : vector<2x128xf32>
    %2 = tpu.matmul %0, %1, %cst {dimension_numbers = #tpu.dot_dimension_numbers<[1], [0], [0], [1], [0, 0, 1, 1], [], []>} : vector<2x400xf32>, vector<400x128xf32>, vector<2x128xf32> -> vector<2x128xf32>
    %c0_3 = arith.constant 0 : index
    %c0_4 = arith.constant 0 : index
    %3 = vector.load %arg3[%c0_3, %c0_4] : memref<1x128xf32, #tpu.memory_space<vmem>>, vector<1x128xf32>
    %4 = vector.broadcast %3 : vector<1x128xf32> to vector<2x128xf32>
    %5 = arith.addf %2, %4 : vector<2x128xf32>
    %cst_5 = arith.constant 0.000000e+00 : f32
    %6 = vector.broadcast %cst_5 : f32 to vector<2x128xf32>
    %7 = arith.maximumf %5, %6 : vector<2x128xf32>
    %c0_6 = arith.constant 0 : index
    %c0_7 = arith.constant 0 : index
    %8 = vector.load %arg4[%c0_6, %c0_7] : memref<128x128xf32, #tpu.memory_space<vmem>>, vector<128x128xf32>
    %cst_8 = arith.constant dense<0.000000e+00> : vector<2x128xf32>
    %9 = tpu.matmul %7, %8, %cst_8 {dimension_numbers = #tpu.dot_dimension_numbers<[1], [0], [0], [1], [0, 0, 1, 1], [], []>} : vector<2x128xf32>, vector<128x128xf32>, vector<2x128xf32> -> vector<2x128xf32>
    %c0_9 = arith.constant 0 : index
    %c0_10 = arith.constant 0 : index
    %10 = vector.load %arg5[%c0_9, %c0_10] : memref<1x128xf32, #tpu.memory_space<vmem>>, vector<1x128xf32>
    %11 = vector.broadcast %10 : vector<1x128xf32> to vector<2x128xf32>
    %12 = arith.addf %9, %11 : vector<2x128xf32>
    %cst_11 = arith.constant 0.000000e+00 : f32
    %13 = vector.broadcast %cst_11 : f32 to vector<2x128xf32>
    %14 = arith.maximumf %12, %13 : vector<2x128xf32>
    %c0_12 = arith.constant 0 : index
    %c0_13 = arith.constant 0 : index
    %15 = vector.load %arg6[%c0_12, %c0_13] : memref<128x128xf32, #tpu.memory_space<vmem>>, vector<128x128xf32>
    %cst_14 = arith.constant dense<0.000000e+00> : vector<2x128xf32>
    %16 = tpu.matmul %14, %15, %cst_14 {dimension_numbers = #tpu.dot_dimension_numbers<[1], [0], [0], [1], [0, 0, 1, 1], [], []>} : vector<2x128xf32>, vector<128x128xf32>, vector<2x128xf32> -> vector<2x128xf32>
    %c0_15 = arith.constant 0 : index
    %c0_16 = arith.constant 0 : index
    %17 = vector.load %arg7[%c0_15, %c0_16] : memref<1x128xf32, #tpu.memory_space<vmem>>, vector<1x128xf32>
    %18 = vector.broadcast %17 : vector<1x128xf32> to vector<2x128xf32>
    %19 = arith.addf %16, %18 : vector<2x128xf32>
    %c0_17 = arith.constant 0 : index
    %c0_18 = arith.constant 0 : index
    %20 = vector.load %arg8[%c0_17, %c0_18] : memref<2x128xf32, #tpu.memory_space<vmem>>, vector<2x128xf32>
    tpu.vector_store %arg8[%c0_17, %c0_18], %19 {strides = array<i32>} : memref<2x128xf32, #tpu.memory_space<vmem>>, vector<2x128xf32>,
    return
  }
  func.func @transform_0(%arg0: i32) -> (i32, i32) {
    %c0_i32 = arith.constant 0 : i32
    %c0_i32_0 = arith.constant 0 : i32
    %c0_i32_1 = arith.constant 0 : i32
    return %c0_i32, %c0_i32_0 : i32, i32
  }
  func.func @transform_1(%arg0: i32) -> (i32, i32) {
    %c0_i32 = arith.constant 0 : i32
    %c0_i32_0 = arith.constant 0 : i32
    %c0_i32_1 = arith.constant 0 : i32
    return %c0_i32, %c0_i32_0 : i32, i32
  }
  func.func @transform_2(%arg0: i32) -> (i32, i32) {
    %c0_i32 = arith.constant 0 : i32
    %c0_i32_0 = arith.constant 0 : i32
    %c0_i32_1 = arith.constant 0 : i32
    return %c0_i32, %c0_i32_0 : i32, i32
  }
  func.func @transform_3(%arg0: i32) -> (i32, i32) {
    %c0_i32 = arith.constant 0 : i32
    %c0_i32_0 = arith.constant 0 : i32
    %c0_i32_1 = arith.constant 0 : i32
    return %c0_i32, %c0_i32_0 : i32, i32
  }
  func.func @transform_4(%arg0: i32) -> (i32, i32) {
    %c0_i32 = arith.constant 0 : i32
    %c0_i32_0 = arith.constant 0 : i32
    %c0_i32_1 = arith.constant 0 : i32
    return %c0_i32, %c0_i32_0 : i32, i32
  }
  func.func @transform_5(%arg0: i32) -> (i32, i32) {
    %c0_i32 = arith.constant 0 : i32
    %c0_i32_0 = arith.constant 0 : i32
    %c0_i32_1 = arith.constant 0 : i32
    return %c0_i32, %c0_i32_0 : i32, i32
  }
  func.func @transform_6(%arg0: i32) -> (i32, i32) {
    %c0_i32 = arith.constant 0 : i32
    %c0_i32_0 = arith.constant 0 : i32
    %c0_i32_1 = arith.constant 0 : i32
    return %c0_i32, %c0_i32_0 : i32, i32
  }
  func.func @transform_7(%arg0: i32) -> (i32, i32) {
    %c0_i32 = arith.constant 0 : i32
    %c0_i32_0 = arith.constant 0 : i32
    %c0_i32_1 = arith.constant 0 : i32
    return %c0_i32, %c0_i32_0 : i32, i32
  }
}

</mosaic_0001>

<bundles_post_ra>
// kernel: lenet_forward.3
= control target key start
LH: loop header
LB: loop body
LE: loop exit
PB: predicated region body
PF: predicated region fallthrough
CT: control target
= control target key end

     0   :  { %v3567_v0 = vmov 0.0|0.0   ;;  %vm215_vm0 = vcmask 1040384   ;;  %vm3568_vm1 = vmmov 0   ;;  %v3569_v6 = vmov 0.0   ;;  %s5433_s1 = inlined_call_operand.vmem [shape: f32[25,128], index: 1, kind: input, shape index: {}]   ;;  %s5434_s0 = inlined_call_operand.vmem [shape: f32[4,392,25], index: 0, kind: input, shape index: {}]   ;;  %s5435_s2 = inlined_call_operand.vmem [shape: f32[1,128], index: 2, kind: input, shape index: {}]   ;;  %s5436_s3 = inlined_call_operand.vmem [shape: f32[392,128], index: 3, kind: output, shape index: {}]  }
   0x1   :  { %3535 = vmatprep.subr.bf16.mxu0 %v3567_v0  ;;  %v14_v1 = vld [vmem:[%s5433_s1] sm:$0xff]  ;;  %v15_v2 = vld [vmem:[%s5433_s1 + $0x8] sm:$0xff]  ;;  %3542 = vmatprep.subr.bf16.mxu1 %v3567_v0  ;;  %v16_v3 = vld [vmem:[%s5433_s1 + $0x10] sm:$0xff]  ;;  %vm3570_vm2 = vmmov 1   ;;  %vm67_vm4 = vcmask 203776  }
   0x2   :  { %v3536_v4 = vpack.c.bf16 %v15_v2, %v14_v1  ;;  %v17_v5 = vld [vmem:[%s5433_s1 + $0x18] sm:$0x1]  ;;  %2923 = vmatprep.mubr.msk.f32.mxu0 %vm3568_vm1, %v3569_v6  ;;  %3078 = vmatprep.mubr.msk.f32.mxu1 %vm3568_vm1, %v3569_v6  ;;  %vm3607_vm3 = vmpackc.low %vm215_vm0, %vm3570_vm2  ;;  %v18_v9 = vld [vmem:[%s5434_s0] sm:$0xff] }
   0x3   :  { %v3539_v7 = vpack.c.bf16 %v17_v5, %v16_v3  ;;  %v2405_v10 = vld [vmem:[%s5434_s0 + $0x188] sm:$0xff]  ;;  %v2406_v12 = vld [vmem:[%s5434_s0 + $0x190] sm:$0xff]  ;;  %v2407_v14 = vld [vmem:[%s5434_s0 + $0x198] sm:$0xff] }
   0x4   :  { %3537 = vmatpush3.bf16.msra.mxu0 %v3536_v4  ;;  %3544 = vmatpush3.bf16.msra.mxu1 %v3536_v4  ;;  %v19_v11 = vld [vmem:[%s5434_s0 + $0x8] sm:$0xff]  ;;  %v20_v13 = vld [vmem:[%s5434_s0 + $0x10] sm:$0xff]  ;;  %v21_v15 = vld [vmem:[%s5434_s0 + $0x18] sm:$0xff] }
   0x5   :  { %3538 = vmatprep.subr.bf16.mxu0 %v3567_v0  ;;  %3545 = vmatprep.subr.bf16.mxu1 %v3567_v0  ;;  %v2408_v16 = vld [vmem:[%s5434_s0 + $0x1a0] sm:$0xff]  ;;  %v2409_v18 = vld [vmem:[%s5434_s0 + $0x1a8] sm:$0xff]  ;;  %v2410_v20 = vld [vmem:[%s5434_s0 + $0x1b0] sm:$0xff] }
   0x6   :  { %v22_v17 = vld [vmem:[%s5434_s0 + $0x20] sm:$0xff]  ;;  %v23_v19 = vld [vmem:[%s5434_s0 + $0x28] sm:$0xff]  ;;  %v24_v21 = vld [vmem:[%s5434_s0 + $0x30] sm:$0xff] }
   0x7   :  { %v2411_v22 = vld [vmem:[%s5434_s0 + $0x1b8] sm:$0xff]  ;;  %v2412_v24 = vld [vmem:[%s5434_s0 + $0x1c0] sm:$0xff]  ;;  %v2413_v26 = vld [vmem:[%s5434_s0 + $0x1c8] sm:$0xff] }
   0x8   :  { %3541 = vmatpush3.bf16.msk.msra.mxu0 %vm3607_vm3, %v3539_v7  ;;  %3548 = vmatpush3.bf16.msk.msra.mxu1 %vm3607_vm3, %v3539_v7  ;;  %v25_v23 = vld [vmem:[%s5434_s0 + $0x38] sm:$0xff]  ;;  %v26_v25 = vld [vmem:[%s5434_s0 + $0x40] sm:$0xff]  ;;  %v27_v27 = vld [vmem:[%s5434_s0 + $0x48] sm:$0xff] }
   0x9   :  { %3549 = vmatprep.subr.bf16.mxu0 %v3567_v0  ;;  %3556 = vmatprep.subr.bf16.mxu1 %v3567_v0  ;;  %v2414_v28 = vld [vmem:[%s5434_s0 + $0x1d0] sm:$0xff]  ;;  %v2415_v30 = vld [vmem:[%s5434_s0 + $0x1d8] sm:$0xff]  ;;  %v2416_v32 = vld [vmem:[%s5434_s0 + $0x1e0] sm:$0xff] }
   0xa   :  { %v28_v29 = vld [vmem:[%s5434_s0 + $0x50] sm:$0xff]  ;;  %v29_v31 = vld [vmem:[%s5434_s0 + $0x58] sm:$0xff]  ;;  %v30_v33 = vld [vmem:[%s5434_s0 + $0x60] sm:$0xff] }
   0xb   :  { %2924 = vmatmul.mubr.msk.f32.vlgmr.msra.gmra.mrb[0].mxu0 %vm67_vm4, %v18_v9  ;;  %3079 = vmatmul.mubr.msk.f32.vlgmr.msra.gmra.mrb[0].mxu1 %vm67_vm4, %v2405_v10  ;;  %v2417_v34 = vld [vmem:[%s5434_s0 + $0x1e8] sm:$0xff]  ;;  %v2418_v36 = vld [vmem:[%s5434_s0 + $0x1f0] sm:$0xff]  ;;  %v2419_v38 = vld [vmem:[%s5434_s0 + $0x1f8] sm:$0xff] }
   0xc   :  { %3551 = vmatpush3.bf16.msra.mxu0 %v3536_v4  ;;  %2926 = vmatprep.mubr.msk.f32.mxu0 %vm3568_vm1, %v3569_v6  ;;  %v31_v35 = vld [vmem:[%s5434_s0 + $0x68] sm:$0xff]  ;;  %v32_v37 = vld [vmem:[%s5434_s0 + $0x70] sm:$0xff]  ;;  %v33_v39 = vld [vmem:[%s5434_s0 + $0x78] sm:$0xff] }
   0xd   :  { %3558 = vmatpush3.bf16.msra.mxu1 %v3536_v4  ;;  %3081 = vmatprep.mubr.msk.f32.mxu1 %vm3568_vm1, %v3569_v6  ;;  %v2420_v40 = vld [vmem:[%s5434_s0 + $0x200] sm:$0xff]  ;;  %v2421_v42 = vld [vmem:[%s5434_s0 + $0x208] sm:$0xff]  ;;  %v2422_v44 = vld [vmem:[%s5434_s0 + $0x210] sm:$0xff] }
   0xe   :  { %3552 = vmatprep.subr.bf16.mxu0 %v3567_v0  ;;  %3559 = vmatprep.subr.bf16.mxu1 %v3567_v0  ;;  %v34_v41 = vld [vmem:[%s5434_s0 + $0x80] sm:$0xff]  ;;  %v35_v43 = vld [vmem:[%s5434_s0 + $0x88] sm:$0xff]  ;;  %v36_v45 = vld [vmem:[%s5434_s0 + $0x90] sm:$0xff] }
   0xf   :  { %2927 = vmatmul.mubr.msk.f32.gmra.mrb[2].mxu0 %vm67_vm4, %v19_v11  ;;  %3082 = vmatmul.mubr.msk.f32.gmra.mrb[2].mxu1 %vm67_vm4, %v2406_v12  ;;  %v2423_v46 = vld [vmem:[%s5434_s0 + $0x218] sm:$0xff]  ;;  %v2424_v48 = vld [vmem:[%s5434_s0 + $0x220] sm:$0xff]  ;;  %v2425_v50 = vld [vmem:[%s5434_s0 + $0x228] sm:$0xff] }
  0x10   :  { %2929 = vmatprep.mubr.msk.f32.mxu0 %vm3568_vm1, %v3569_v6  ;;  %3084 = vmatprep.mubr.msk.f32.mxu1 %vm3568_vm1, %v3569_v6  ;;  %v37_v47 = vld [vmem:[%s5434_s0 + $0x98] sm:$0xff]  ;;  %v38_v49 = vld [vmem:[%s5434_s0 + $0xa0] sm:$0xff]  ;;  %v39_v51 = vld [vmem:[%s5434_s0 + $0xa8] sm:$0xff] }
  0x11   :  { %3555 = vmatpush3.bf16.msk.msra.mxu0 %vm3607_vm3, %v3539_v7  ;;  %3562 = vmatpush3.bf16.msk.msra.mxu1 %vm3607_vm3, %v3539_v7  ;;  %v2426_v52 = vld [vmem:[%s5434_s0 + $0x230] sm:$0xff]  ;;  %v2427_v54 = vld [vmem:[%s5434_s0 + $0x238] sm:$0xff]  ;;  %v2428_v56 = vld [vmem:[%s5434_s0 + $0x240] sm:$0xff] }
  0x12   :  { %v40_v53 = vld [vmem:[%s5434_s0 + $0xb0] sm:$0xff]  ;;  %v41_v55 = vld [vmem:[%s5434_s0 + $0xb8] sm:$0xff]  ;;  %v42_v57 = vld [vmem:[%s5434_s0 + $0xc0] sm:$0xff] }
  0x13   :  { %2930 = vmatmul.mubr.msk.f32.gmra.mrb[4].mxu0 %vm67_vm4, %v20_v13  ;;  %3085 = vmatmul.mubr.msk.f32.gmra.mrb[4].mxu1 %vm67_vm4, %v2407_v14  ;;  %v2429_v58 = vld [vmem:[%s5434_s0 + $0x248] sm:$0xff]  ;;  %v2430_v60 = vld [vmem:[%s5434_s0 + $0x250] sm:$0xff]  ;;  %v2431_v62 = vld [vmem:[%s5434_s0 + $0x258] sm:$0xff] }
  0x14   :  { %2932 = vmatprep.mubr.msk.f32.mxu0 %vm3568_vm1, %v3569_v6  ;;  %3087 = vmatprep.mubr.msk.f32.mxu1 %vm3568_vm1, %v3569_v6  ;;  %v43_v59 = vld [vmem:[%s5434_s0 + $0xc8] sm:$0xff]  ;;  %v44_v61 = vld [vmem:[%s5434_s0 + $0xd0] sm:$0xff]  ;;  %v45_v63 = vld [vmem:[%s5434_s0 + $0xd8] sm:$0xff] }
  0x15   :  { %v2432_v0 = vld [vmem:[%s5434_s0 + $0x260] sm:$0xff]  ;;  %v2433_v2 = vld [vmem:[%s5434_s0 + $0x268] sm:$0xff]  ;;  %v2434_v4 = vld [vmem:[%s5434_s0 + $0x270] sm:$0xff] }
  0x16   :  { %v46_v1 = vld [vmem:[%s5434_s0 + $0xe0] sm:$0xff]  ;;  %v47_v3 = vld [vmem:[%s5434_s0 + $0xe8] sm:$0xff]  ;;  %v48_v5 = vld [vmem:[%s5434_s0 + $0xf0] sm:$0xff] }
  0x17   :  { %2933 = vmatmul.mubr.msk.f32.gmra.mrb[6].mxu0 %vm67_vm4, %v21_v15  ;;  %3088 = vmatmul.mubr.msk.f32.gmra.mrb[6].mxu1 %vm67_vm4, %v2408_v16  ;;  %v2435_v7 = vld [vmem:[%s5434_s0 + $0x278] sm:$0xff]  ;;  %v2436_v9 = vld [vmem:[%s5434_s0 + $0x280] sm:$0xff]  ;;  %v2437_v11 = vld [vmem:[%s5434_s0 + $0x288] sm:$0xff] }
  0x18   :  { %2935 = vmatprep.mubr.msk.f32.mxu0 %vm3568_vm1, %v3569_v6  ;;  %3090 = vmatprep.mubr.msk.f32.mxu1 %vm3568_vm1, %v3569_v6  ;;  %v49_v8 = vld [vmem:[%s5434_s0 + $0xf8] sm:$0xff]  ;;  %v50_v10 = vld [vmem:[%s5434_s0 + $0x100] sm:$0xff]  ;;  %v51_v12 = vld [vmem:[%s5434_s0 + $0x108] sm:$0xff] }
  0x19   :  { %v2438_v13 = vld [vmem:[%s5434_s0 + $0x290] sm:$0xff]  ;;  %v2439_v15 = vld [vmem:[%s5434_s0 + $0x298] sm:$0xff] }
  0x1a   :  { %v52_v14 = vld [vmem:[%s5434_s0 + $0x110] sm:$0xff]  ;;  %v53_v16 = vld [vmem:[%s5434_s0 + $0x118] sm:$0xff] }
  0x1b   :  { %2936 = vmatmul.mubr.msk.f32.gmra.mrb[8].mxu0 %vm67_vm4, %v22_v17  ;;  %3091 = vmatmul.mubr.msk.f32.gmra.mrb[8].mxu1 %vm67_vm4, %v2409_v18  ;;  %v2440_v17 = vld [vmem:[%s5434_s0 + $0x2a0] sm:$0xff] }
  0x1c   :  { %2938 = vmatprep.mubr.msk.f32.mxu0 %vm3568_vm1, %v3569_v6  ;;  %3093 = vmatprep.mubr.msk.f32.mxu1 %vm3568_vm1, %v3569_v6  ;;  %v54_v18 = vld [vmem:[%s5434_s0 + $0x120] sm:$0xff] }
  0x1f   :  { %2939 = vmatmul.mubr.msk.f32.gmra.mrb[10].mxu0 %vm67_vm4, %v23_v19  ;;  %3094 = vmatmul.mubr.msk.f32.gmra.mrb[10].mxu1 %vm67_vm4, %v2410_v20  ;;  %v2441_v19 = vld [vmem:[%s5434_s0 + $0x2a8] sm:$0xff] }
  0x20   :  { %2941 = vmatprep.mubr.msk.f32.mxu0 %vm3568_vm1, %v3569_v6  ;;  %3096 = vmatprep.mubr.msk.f32.mxu1 %vm3568_vm1, %v3569_v6  ;;  %v55_v20 = vld [vmem:[%s5434_s0 + $0x128] sm:$0xff] }
  0x23   :  { %2942 = vmatmul.mubr.msk.f32.gmra.mrb[12].mxu0 %vm67_vm4, %v24_v21  ;;  %3097 = vmatmul.mubr.msk.f32.gmra.mrb[12].mxu1 %vm67_vm4, %v2411_v22  ;;  %v2442_v21 = vld [vmem:[%s5434_s0 + $0x2b0] sm:$0xff] }
  0x24   :  { %2944 = vmatprep.mubr.msk.f32.mxu0 %vm3568_vm1, %v3569_v6  ;;  %3099 = vmatprep.mubr.msk.f32.mxu1 %vm3568_vm1, %v3569_v6  ;;  %v56_v22 = vld [vmem:[%s5434_s0 + $0x130] sm:$0xff] }
  0x27   :  { %2945 = vmatmul.mubr.msk.f32.gmra.mrb[14].mxu0 %vm67_vm4, %v25_v23  ;;  %3100 = vmatmul.mubr.msk.f32.gmra.mrb[14].mxu1 %vm67_vm4, %v2412_v24  ;;  %v2443_v23 = vld [vmem:[%s5434_s0 + $0x2b8] sm:$0xff] }
  0x28   :  { %2947 = vmatprep.mubr.msk.f32.mxu0 %vm3568_vm1, %v3569_v6  ;;  %3102 = vmatprep.mubr.msk.f32.mxu1 %vm3568_vm1, %v3569_v6  ;;  %v57_v24 = vld [vmem:[%s5434_s0 + $0x138] sm:$0xff] }
  0x2b   :  { %2948 = vmatmul.mubr.msk.f32.gmra.mrb[16].mxu0 %vm67_vm4, %v26_v25  ;;  %3103 = vmatmul.mubr.msk.f32.gmra.mrb[16].mxu1 %vm67_vm4, %v2413_v26  ;;  %v2444_v25 = vld [vmem:[%s5434_s0 + $0x2c0] sm:$0xff] }
  0x2c   :  { %2950 = vmatprep.mubr.msk.f32.mxu0 %vm3568_vm1, %v3569_v6  ;;  %3105 = vmatprep.mubr.msk.f32.mxu1 %vm3568_vm1, %v3569_v6  ;;  %v58_v26 = vld [vmem:[%s5434_s0 + $0x140] sm:$0xff] }
  0x2f   :  { %2951 = vmatmul.mubr.msk.f32.gmra.mrb[18].mxu0 %vm67_vm4, %v27_v27  ;;  %3106 = vmatmul.mubr.msk.f32.gmra.mrb[18].mxu1 %vm67_vm4, %v2414_v28  ;;  %v2445_v27 = vld [vmem:[%s5434_s0 + $0x2c8] sm:$0xff] }
  0x30   :  { %2953 = vmatprep.mubr.msk.f32.mxu0 %vm3568_vm1, %v3569_v6  ;;  %3108 = vmatprep.mubr.msk.f32.mxu1 %vm3568_vm1, %v3569_v6  ;;  %v59_v28 = vld [vmem:[%s5434_s0 + $0x148] sm:$0xff] }
  0x33   :  { %2954 = vmatmul.mubr.msk.f32.gmra.mrb[20].mxu0 %vm67_vm4, %v28_v29  ;;  %3109 = vmatmul.mubr.msk.f32.gmra.mrb[20].mxu1 %vm67_vm4, %v2415_v30  ;;  %v2446_v29 = vld [vmem:[%s5434_s0 + $0x2d0] sm:$0xff] }
  0x34   :  { %2956 = vmatprep.mubr.msk.f32.mxu0 %vm3568_vm1, %v3569_v6  ;;  %3111 = vmatprep.mubr.msk.f32.mxu1 %vm3568_vm1, %v3569_v6  ;;  %v60_v30 = vld [vmem:[%s5434_s0 + $0x150] sm:$0xff] }
  0x37   :  { %2957 = vmatmul.mubr.msk.f32.gmra.mrb[22].mxu0 %vm67_vm4, %v29_v31  ;;  %3112 = vmatmul.mubr.msk.f32.gmra.mrb[22].mxu1 %vm67_vm4, %v2416_v32  ;;  %v2447_v31 = vld [vmem:[%s5434_s0 + $0x2d8] sm:$0xff] }
  0x38   :  { %2959 = vmatprep.mubr.msk.f32.mxu0 %vm3568_vm1, %v3569_v6  ;;  %3114 = vmatprep.mubr.msk.f32.mxu1 %vm3568_vm1, %v3569_v6  ;;  %v61_v32 = vld [vmem:[%s5434_s0 + $0x158] sm:$0xff] }
  0x3b   :  { %2960 = vmatmul.mubr.msk.f32.gmra.mrb[24].mxu0 %vm67_vm4, %v30_v33  ;;  %3115 = vmatmul.mubr.msk.f32.gmra.mrb[24].mxu1 %vm67_vm4, %v2417_v34  ;;  %v2448_v33 = vld [vmem:[%s5434_s0 + $0x2e0] sm:$0xff] }
  0x3c   :  { %2962 = vmatprep.mubr.msk.f32.mxu0 %vm3568_vm1, %v3569_v6  ;;  %3117 = vmatprep.mubr.msk.f32.mxu1 %vm3568_vm1, %v3569_v6  ;;  %v62_v34 = vld [vmem:[%s5434_s0 + $0x160] sm:$0xff] }
  0x3f   :  { %2963 = vmatmul.mubr.msk.f32.gmra.mrb[26].mxu0 %vm67_vm4, %v31_v35  ;;  %3118 = vmatmul.mubr.msk.f32.gmra.mrb[26].mxu1 %vm67_vm4, %v2418_v36  ;;  %v2449_v35 = vld [vmem:[%s5434_s0 + $0x2e8] sm:$0xff] }
  0x40   :  { %2965 = vmatprep.mubr.msk.f32.mxu0 %vm3568_vm1, %v3569_v6  ;;  %3120 = vmatprep.mubr.msk.f32.mxu1 %vm3568_vm1, %v3569_v6  ;;  %v63_v36 = vld [vmem:[%s5434_s0 + $0x168] sm:$0xff] }
  0x43   :  { %2966 = vmatmul.mubr.msk.f32.gmra.mrb[28].mxu0 %vm67_vm4, %v32_v37  ;;  %3121 = vmatmul.mubr.msk.f32.gmra.mrb[28].mxu1 %vm67_vm4, %v2419_v38  ;;  %v2450_v37 = vld [vmem:[%s5434_s0 + $0x2f0] sm:$0xff] }
  0x44   :  { %2968 = vmatprep.mubr.msk.f32.mxu0 %vm3568_vm1, %v3569_v6  ;;  %3123 = vmatprep.mubr.msk.f32.mxu1 %vm3568_vm1, %v3569_v6  ;;  %v64_v38 = vld [vmem:[%s5434_s0 + $0x170] sm:$0xff] }
  0x47   :  { %2969 = vmatmul.mubr.msk.f32.gmra.mrb[30].mxu0 %vm67_vm4, %v33_v39  ;;  %3124 = vmatmul.mubr.msk.f32.gmra.mrb[30].mxu1 %vm67_vm4, %v2420_v40  ;;  %v2451_v39 = vld [vmem:[%s5434_s0 + $0x2f8] sm:$0xff] }
  0x48   :  { %2971 = vmatprep.mubr.msk.f32.mxu0 %vm3568_vm1, %v3569_v6  ;;  %3126 = vmatprep.mubr.msk.f32.mxu1 %vm3568_vm1, %v3569_v6  ;;  %v65_v40 = vld [vmem:[%s5434_s0 + $0x178] sm:$0xff] }
  0x4b   :  { %2972 = vmatmul.mubr.msk.f32.gmra.mrb[32].mxu0 %vm67_vm4, %v34_v41  ;;  %3127 = vmatmul.mubr.msk.f32.gmra.mrb[32].mxu1 %vm67_vm4, %v2421_v42  ;;  %v2452_v41 = vld [vmem:[%s5434_s0 + $0x300] sm:$0xff] }
  0x4c   :  { %2974 = vmatprep.mubr.msk.f32.mxu0 %vm3568_vm1, %v3569_v6  ;;  %3129 = vmatprep.mubr.msk.f32.mxu1 %vm3568_vm1, %v3569_v6  ;;  %v66_v42 = vld [vmem:[%s5434_s0 + $0x180] sm:$0xff] }
  0x4f   :  { %2975 = vmatmul.mubr.msk.f32.gmra.mrb[34].mxu0 %vm67_vm4, %v35_v43  ;;  %3130 = vmatmul.mubr.msk.f32.gmra.mrb[34].mxu1 %vm67_vm4, %v2422_v44  ;;  %v2453_v43 = vld [vmem:[%s5434_s0 + $0x308] sm:$0xff]  ;;  %v2504_v44 = vld [vmem:[%s5434_s0 + $0x310] sm:$0xff] }
  0x50   :  { %2977 = vmatprep.mubr.msk.f32.mxu0 %vm3568_vm1, %v3569_v6  ;;  %3132 = vmatprep.mubr.msk.f32.mxu1 %vm3568_vm1, %v3569_v6 }
  0x53   :  { %2978 = vmatmul.mubr.msk.f32.gmra.mrb[36].mxu0 %vm67_vm4, %v36_v45  ;;  %3133 = vmatmul.mubr.msk.f32.gmra.mrb[36].mxu1 %vm67_vm4, %v2423_v46  ;;  %v2603_v45 = vld [vmem:[%s5434_s0 + $0x498] sm:$0xff] }
  0x54   :  { %2980 = vmatprep.mubr.msk.f32.mxu0 %vm3568_vm1, %v3569_v6  ;;  %3135 = vmatprep.mubr.msk.f32.mxu1 %vm3568_vm1, %v3569_v6  ;;  %v2505_v46 = vld [vmem:[%s5434_s0 + $0x318] sm:$0xff] }
  0x57   :  { %2981 = vmatmul.mubr.msk.f32.gmra.mrb[38].mxu0 %vm67_vm4, %v37_v47  ;;  %3136 = vmatmul.mubr.msk.f32.gmra.mrb[38].mxu1 %vm67_vm4, %v2424_v48  ;;  %v2604_v47 = vld [vmem:[%s5434_s0 + $0x4a0] sm:$0xff] }
  0x58   :  { %2983 = vmatprep.mubr.msk.f32.mxu0 %vm3568_vm1, %v3569_v6  ;;  %3138 = vmatprep.mubr.msk.f32.mxu1 %vm3568_vm1, %v3569_v6  ;;  %v2506_v48 = vld [vmem:[%s5434_s0 + $0x320] sm:$0xff] }
  0x5b   :  { %2984 = vmatmul.mubr.msk.f32.gmra.mrb[40].mxu0 %vm67_vm4, %v38_v49  ;;  %3139 = vmatmul.mubr.msk.f32.gmra.mrb[40].mxu1 %vm67_vm4, %v2425_v50  ;;  %v2605_v49 = vld [vmem:[%s5434_s0 + $0x4a8] sm:$0xff] }
  0x5c   :  { %2986 = vmatprep.mubr.msk.f32.mxu0 %vm3568_vm1, %v3569_v6  ;;  %3141 = vmatprep.mubr.msk.f32.mxu1 %vm3568_vm1, %v3569_v6  ;;  %v2507_v50 = vld [vmem:[%s5434_s0 + $0x328] sm:$0xff] }
  0x5f   :  { %2987 = vmatmul.mubr.msk.f32.gmra.mrb[42].mxu0 %vm67_vm4, %v39_v51  ;;  %3142 = vmatmul.mubr.msk.f32.gmra.mrb[42].mxu1 %vm67_vm4, %v2426_v52  ;;  %v2606_v51 = vld [vmem:[%s5434_s0 + $0x4b0] sm:$0xff] }
  0x60   :  { %2989 = vmatprep.mubr.msk.f32.mxu0 %vm3568_vm1, %v3569_v6  ;;  %3144 = vmatprep.mubr.msk.f32.mxu1 %vm3568_vm1, %v3569_v6  ;;  %v2508_v52 = vld [vmem:[%s5434_s0 + $0x330] sm:$0xff] }
  0x63   :  { %2990 = vmatmul.mubr.msk.f32.gmra.mrb[44].mxu0 %vm67_vm4, %v40_v53  ;;  %3145 = vmatmul.mubr.msk.f32.gmra.mrb[44].mxu1 %vm67_vm4, %v2427_v54  ;;  %v2607_v53 = vld [vmem:[%s5434_s0 + $0x4b8] sm:$0xff] }
  0x64   :  { %2992 = vmatprep.mubr.msk.f32.mxu0 %vm3568_vm1, %v3569_v6  ;;  %3147 = vmatprep.mubr.msk.f32.mxu1 %vm3568_vm1, %v3569_v6 }
  0x67   :  { %2993 = vmatmul.mubr.msk.f32.gmra.mrb[46].mxu0 %vm67_vm4, %v41_v55  ;;  %3148 = vmatmul.mubr.msk.f32.gmra.mrb[46].mxu1 %vm67_vm4, %v2428_v56 }
  0x68   :  { %2995 = vmatprep.mubr.msk.f32.mxu0 %vm3568_vm1, %v3569_v6  ;;  %3150 = vmatprep.mubr.msk.f32.mxu1 %vm3568_vm1, %v3569_v6 }
  0x6b   :  { %2996 = vmatmul.mubr.msk.f32.gmra.mrb[48].mxu0 %vm67_vm4, %v42_v57  ;;  %3151 = vmatmul.mubr.msk.f32.gmra.mrb[48].mxu1 %vm67_vm4, %v2429_v58 }
  0x6c   :  { %2998 = vmatprep.mubr.msk.f32.mxu0 %vm3568_vm1, %v3569_v6  ;;  %3153 = vmatprep.mubr.msk.f32.mxu1 %vm3568_vm1, %v3569_v6 }
  0x6f   :  { %2999 = vmatmul.mubr.msk.f32.gmra.mrb[50].mxu0 %vm67_vm4, %v43_v59  ;;  %3154 = vmatmul.mubr.msk.f32.gmra.mrb[50].mxu1 %vm67_vm4, %v2430_v60  ;;  %v2509_v59 = vld [vmem:[%s5434_s0 + $0x338] sm:$0xff]  ;;  %v2608_v60 = vld [vmem:[%s5434_s0 + $0x4c0] sm:$0xff] }
  0x70   :  { %3001 = vmatprep.mubr.msk.f32.mxu0 %vm3568_vm1, %v3569_v6  ;;  %3156 = vmatprep.mubr.msk.f32.mxu1 %vm3568_vm1, %v3569_v6 }
  0x73   :  { %3002 = vmatmul.mubr.msk.f32.gmra.mrb[52].mxu0 %vm67_vm4, %v44_v61  ;;  %3157 = vmatmul.mubr.msk.f32.gmra.mrb[52].mxu1 %vm67_vm4, %v2431_v62 }
  0x74   :  { %3004 = vmatprep.mubr.msk.f32.mxu0 %vm3568_vm1, %v3569_v6  ;;  %3159 = vmatprep.mubr.msk.f32.mxu1 %vm3568_vm1, %v3569_v6 }
  0x77   :  { %3005 = vmatmul.mubr.msk.f32.gmra.mrb[54].mxu0 %vm67_vm4, %v45_v63  ;;  %3160 = vmatmul.mubr.msk.f32.gmra.mrb[54].mxu1 %vm67_vm4, %v2432_v0  ;;  %v2536_v0 = vld [vmem:[%s5434_s0 + $0x410] sm:$0xff] }
  0x78   :  { %3007 = vmatprep.mubr.msk.f32.mxu0 %vm3568_vm1, %v3569_v6  ;;  %3162 = vmatprep.mubr.msk.f32.mxu1 %vm3568_vm1, %v3569_v6 }
  0x7b   :  { %3008 = vmatmul.mubr.msk.f32.gmra.mrb[56].mxu0 %vm67_vm4, %v46_v1  ;;  %3163 = vmatmul.mubr.msk.f32.gmra.mrb[56].mxu1 %vm67_vm4, %v2433_v2  ;;  %v2510_v2 = vld [vmem:[%s5434_s0 + $0x340] sm:$0xff] }
  0x7c   :  { %3010 = vmatprep.mubr.msk.f32.mxu0 %vm3568_vm1, %v3569_v6  ;;  %3165 = vmatprep.mubr.msk.f32.mxu1 %vm3568_vm1, %v3569_v6 }
  0x7f   :  { %3011 = vmatmul.mubr.msk.f32.gmra.mrb[58].mxu0 %vm67_vm4, %v47_v3  ;;  %3166 = vmatmul.mubr.msk.f32.gmra.mrb[58].mxu1 %vm67_vm4, %v2434_v4  ;;  %v2609_v3 = vld [vmem:[%s5434_s0 + $0x4c8] sm:$0xff] }
  0x80   :  { %3013 = vmatprep.mubr.msk.f32.mxu0 %vm3568_vm1, %v3569_v6  ;;  %3168 = vmatprep.mubr.msk.f32.mxu1 %vm3568_vm1, %v3569_v6 }
  0x83   :  { %3014 = vmatmul.mubr.msk.f32.gmra.mrb[60].mxu0 %vm67_vm4, %v48_v5  ;;  %3169 = vmatmul.mubr.msk.f32.gmra.mrb[60].mxu1 %vm67_vm4, %v2435_v7 }
  0x84   :  { %3016 = vmatprep.mubr.msk.f32.mxu0 %vm3568_vm1, %v3569_v6  ;;  %3171 = vmatprep.mubr.msk.f32.mxu1 %vm3568_vm1, %v3569_v6 }
  0x87   :  { %3017 = vmatmul.mubr.msk.f32.gmra.mrb[62].mxu0 %vm67_vm4, %v49_v8  ;;  %3172 = vmatmul.mubr.msk.f32.gmra.mrb[62].mxu1 %vm67_vm4, %v2436_v9 }
  0x88   :  { %3019 = vmatprep.mubr.msk.f32.mxu0 %vm3568_vm1, %v3569_v6  ;;  %3174 = vmatprep.mubr.msk.f32.mxu1 %vm3568_vm1, %v3569_v6 }
  0x8b   :  { %3020 = vmatmul.mubr.msk.f32.gmra.mrb[64].mxu0 %vm67_vm4, %v50_v10  ;;  %3175 = vmatmul.mubr.msk.f32.gmra.mrb[64].mxu1 %vm67_vm4, %v2437_v11  ;;  %v2511_v10 = vld [vmem:[%s5434_s0 + $0x348] sm:$0xff]  ;;  %v2610_v11 = vld [vmem:[%s5434_s0 + $0x4d0] sm:$0xff] }
  0x8c   :  { %3022 = vmatprep.mubr.msk.f32.mxu0 %vm3568_vm1, %v3569_v6  ;;  %3177 = vmatprep.mubr.msk.f32.mxu1 %vm3568_vm1, %v3569_v6 }
  0x8f   :  { %3023 = vmatmul.mubr.msk.f32.gmra.mrb[66].mxu0 %vm67_vm4, %v51_v12  ;;  %3178 = vmatmul.mubr.msk.f32.gmra.mrb[66].mxu1 %vm67_vm4, %v2438_v13 }
  0x90   :  { %3025 = vmatprep.mubr.msk.f32.mxu0 %vm3568_vm1, %v3569_v6  ;;  %3180 = vmatprep.mubr.msk.f32.mxu1 %vm3568_vm1, %v3569_v6 }
  0x93   :  { %3026 = vmatmul.mubr.msk.f32.gmra.mrb[68].mxu0 %vm67_vm4, %v52_v14  ;;  %3181 = vmatmul.mubr.msk.f32.gmra.mrb[68].mxu1 %vm67_vm4, %v2439_v15  ;;  %v2535_v15 = vld [vmem:[%s5434_s0 + $0x408] sm:$0xff] }
  0x94   :  { %3028 = vmatprep.mubr.msk.f32.mxu0 %vm3568_vm1, %v3569_v6  ;;  %3183 = vmatprep.mubr.msk.f32.mxu1 %vm3568_vm1, %v3569_v6 }
  0x97   :  { %3029 = vmatmul.mubr.msk.f32.gmra.mrb[70].mxu0 %vm67_vm4, %v53_v16  ;;  %3184 = vmatmul.mubr.msk.f32.gmra.mrb[70].mxu1 %vm67_vm4, %v2440_v17  ;;  %v2512_v17 = vld [vmem:[%s5434_s0 + $0x350] sm:$0xff] }
  0x98   :  { %3031 = vmatprep.mubr.msk.f32.mxu0 %vm3568_vm1, %v3569_v6  ;;  %3186 = vmatprep.mubr.msk.f32.mxu1 %vm3568_vm1, %v3569_v6 }
  0x9b   :  { %3032 = vmatmul.mubr.msk.f32.gmra.mrb[72].mxu0 %vm67_vm4, %v54_v18  ;;  %3187 = vmatmul.mubr.msk.f32.gmra.mrb[72].mxu1 %vm67_vm4, %v2441_v19  ;;  %v2611_v18 = vld [vmem:[%s5434_s0 + $0x4d8] sm:$0xff] }
  0x9c   :  { %3034 = vmatprep.mubr.msk.f32.mxu0 %vm3568_vm1, %v3569_v6  ;;  %3189 = vmatprep.mubr.msk.f32.mxu1 %vm3568_vm1, %v3569_v6 }
  0x9f   :  { %3035 = vmatmul.mubr.msk.f32.gmra.mrb[74].mxu0 %vm67_vm4, %v55_v20  ;;  %3190 = vmatmul.mubr.msk.f32.gmra.mrb[74].mxu1 %vm67_vm4, %v2442_v21 }
  0xa0   :  { %3037 = vmatprep.mubr.msk.f32.mxu0 %vm3568_vm1, %v3569_v6  ;;  %3192 = vmatprep.mubr.msk.f32.mxu1 %vm3568_vm1, %v3569_v6 }
  0xa3   :  { %3038 = vmatmul.mubr.msk.f32.gmra.mrb[76].mxu0 %vm67_vm4, %v56_v22  ;;  %3193 = vmatmul.mubr.msk.f32.gmra.mrb[76].mxu1 %vm67_vm4, %v2443_v23 }
  0xa4   :  { %3040 = vmatprep.mubr.msk.f32.mxu0 %vm3568_vm1, %v3569_v6  ;;  %3195 = vmatprep.mubr.msk.f32.mxu1 %vm3568_vm1, %v3569_v6 }
  0xa7   :  { %3041 = vmatmul.mubr.msk.f32.gmra.mrb[78].mxu0 %vm67_vm4, %v57_v24  ;;  %3196 = vmatmul.mubr.msk.f32.gmra.mrb[78].mxu1 %vm67_vm4, %v2444_v25  ;;  %v2513_v24 = vld [vmem:[%s5434_s0 + $0x358] sm:$0xff]  ;;  %v2612_v25 = vld [vmem:[%s5434_s0 + $0x4e0] sm:$0xff] }
  0xa8   :  { %3043 = vmatprep.mubr.msk.f32.mxu0 %vm3568_vm1, %v3569_v6  ;;  %3198 = vmatprep.mubr.msk.f32.mxu1 %vm3568_vm1, %v3569_v6 }
  0xab   :  { %3044 = vmatmul.mubr.msk.f32.gmra.mrb[80].mxu0 %vm67_vm4, %v58_v26  ;;  %3199 = vmatmul.mubr.msk.f32.gmra.mrb[80].mxu1 %vm67_vm4, %v2445_v27 }
  0xac   :  { %3046 = vmatprep.mubr.msk.f32.mxu0 %vm3568_vm1, %v3569_v6  ;;  %3201 = vmatprep.mubr.msk.f32.mxu1 %vm3568_vm1, %v3569_v6 }
  0xaf   :  { %3047 = vmatmul.mubr.msk.f32.gmra.mrb[82].mxu0 %vm67_vm4, %v59_v28  ;;  %3202 = vmatmul.mubr.msk.f32.gmra.mrb[82].mxu1 %vm67_vm4, %v2446_v29  ;;  %v2534_v29 = vld [vmem:[%s5434_s0 + $0x400] sm:$0xff] }
  0xb0   :  { %3049 = vmatprep.mubr.msk.f32.mxu0 %vm3568_vm1, %v3569_v6  ;;  %3204 = vmatprep.mubr.msk.f32.mxu1 %vm3568_vm1, %v3569_v6 }
  0xb3   :  { %3050 = vmatmul.mubr.msk.f32.gmra.mrb[84].mxu0 %vm67_vm4, %v60_v30  ;;  %3205 = vmatmul.mubr.msk.f32.gmra.mrb[84].mxu1 %vm67_vm4, %v2447_v31  ;;  %v2514_v31 = vld [vmem:[%s5434_s0 + $0x360] sm:$0xff] }
  0xb4   :  { %3052 = vmatprep.mubr.msk.f32.mxu0 %vm3568_vm1, %v3569_v6  ;;  %3207 = vmatprep.mubr.msk.f32.mxu1 %vm3568_vm1, %v3569_v6 }
  0xb7   :  { %3053 = vmatmul.mubr.msk.f32.gmra.mrb[86].mxu0 %vm67_vm4, %v61_v32  ;;  %3208 = vmatmul.mubr.msk.f32.gmra.mrb[86].mxu1 %vm67_vm4, %v2448_v33  ;;  %v2613_v32 = vld [vmem:[%s5434_s0 + $0x4e8] sm:$0xff] }
  0xb8   :  { %3055 = vmatprep.mubr.msk.f32.mxu0 %vm3568_vm1, %v3569_v6  ;;  %3210 = vmatprep.mubr.msk.f32.mxu1 %vm3568_vm1, %v3569_v6 }
  0xbb   :  { %3056 = vmatmul.mubr.msk.f32.gmra.mrb[88].mxu0 %vm67_vm4, %v62_v34  ;;  %3211 = vmatmul.mubr.msk.f32.gmra.mrb[88].mxu1 %vm67_vm4, %v2449_v35 }
  0xbc   :  { %3058 = vmatprep.mubr.msk.f32.mxu0 %vm3568_vm1, %v3569_v6  ;;  %3213 = vmatprep.mubr.msk.f32.mxu1 %vm3568_vm1, %v3569_v6 }
  0xbf   :  { %3059 = vmatmul.mubr.msk.f32.gmra.mrb[90].mxu0 %vm67_vm4, %v63_v36  ;;  %3214 = vmatmul.mubr.msk.f32.gmra.mrb[90].mxu1 %vm67_vm4, %v2450_v37 }
  0xc0   :  { %3061 = vmatprep.mubr.msk.f32.mxu0 %vm3568_vm1, %v3569_v6  ;;  %3216 = vmatprep.mubr.msk.f32.mxu1 %vm3568_vm1, %v3569_v6 }
  0xc3   :  { %3062 = vmatmul.mubr.msk.f32.gmra.mrb[92].mxu0 %vm67_vm4, %v64_v38  ;;  %3217 = vmatmul.mubr.msk.f32.gmra.mrb[92].mxu1 %vm67_vm4, %v2451_v39  ;;  %v2515_v38 = vld [vmem:[%s5434_s0 + $0x368] sm:$0xff]  ;;  %v2614_v39 = vld [vmem:[%s5434_s0 + $0x4f0] sm:$0xff] }
  0xc4   :  { %3064 = vmatprep.mubr.msk.f32.mxu0 %vm3568_vm1, %v3569_v6  ;;  %3219 = vmatprep.mubr.msk.f32.mxu1 %vm3568_vm1, %v3569_v6 }
  0xc7   :  { %3065 = vmatmul.mubr.msk.f32.gmra.mrb[94].mxu0 %vm67_vm4, %v65_v40  ;;  %3220 = vmatmul.mubr.msk.f32.gmra.mrb[94].mxu1 %vm67_vm4, %v2452_v41 }
  0xc8   :  { %3067 = vmatprep.mubr.msk.f32.mxu0 %vm3568_vm1, %v3569_v6  ;;  %3222 = vmatprep.mubr.msk.f32.mxu1 %vm3568_vm1, %v3569_v6 }
  0xcb   :  { %3068 = vmatmul.mubr.msk.f32.gmra.mrb[96].mxu0 %vm67_vm4, %v66_v42  ;;  %3223 = vmatmul.mubr.msk.f32.gmra.mrb[96].mxu1 %vm67_vm4, %v2453_v43  ;;  %v2533_v43 = vld [vmem:[%s5434_s0 + $0x3f8] sm:$0xff] }
  0xcc   :  { %3233 = vmatprep.mubr.msk.f32.mxu0 %vm3568_vm1, %v3569_v6  ;;  %3388 = vmatprep.mubr.msk.f32.mxu1 %vm3568_vm1, %v3569_v6 }
  0xcf   :  { %3234 = vmatmul.mubr.msk.f32.vlgmr.msra.gmra.mrb[98].mxu0 %vm67_vm4, %v2504_v44  ;;  %3389 = vmatmul.mubr.msk.f32.vlgmr.msra.gmra.mrb[98].mxu1 %vm67_vm4, %v2603_v45  ;;  %v2516_v45 = vld [vmem:[%s5434_s0 + $0x370] sm:$0xff] }
  0xd0   :  { %3236 = vmatprep.mubr.msk.f32.mxu0 %vm3568_vm1, %v3569_v6  ;;  %3391 = vmatprep.mubr.msk.f32.mxu1 %vm3568_vm1, %v3569_v6 }
  0xd3   :  { %3237 = vmatmul.mubr.msk.f32.gmra.mrb[100].mxu0 %vm67_vm4, %v2505_v46  ;;  %3392 = vmatmul.mubr.msk.f32.gmra.mrb[100].mxu1 %vm67_vm4, %v2604_v47  ;;  %v2615_v46 = vld [vmem:[%s5434_s0 + $0x4f8] sm:$0xff] }
  0xd4   :  { %3239 = vmatprep.mubr.msk.f32.mxu0 %vm3568_vm1, %v3569_v6  ;;  %3394 = vmatprep.mubr.msk.f32.mxu1 %vm3568_vm1, %v3569_v6 }
  0xd7   :  { %3240 = vmatmul.mubr.msk.f32.gmra.mrb[102].mxu0 %vm67_vm4, %v2506_v48  ;;  %3395 = vmatmul.mubr.msk.f32.gmra.mrb[102].mxu1 %vm67_vm4, %v2605_v49 }
  0xd8   :  { %3242 = vmatprep.mubr.msk.f32.mxu0 %vm3568_vm1, %v3569_v6  ;;  %3397 = vmatprep.mubr.msk.f32.mxu1 %vm3568_vm1, %v3569_v6 }
  0xdb   :  { %3243 = vmatmul.mubr.msk.f32.gmra.mrb[104].mxu0 %vm67_vm4, %v2507_v50  ;;  %3398 = vmatmul.mubr.msk.f32.gmra.mrb[104].mxu1 %vm67_vm4, %v2606_v51 }
  0xdc   :  { %3245 = vmatprep.mubr.msk.f32.mxu0 %vm3568_vm1, %v3569_v6  ;;  %3400 = vmatprep.mubr.msk.f32.mxu1 %vm3568_vm1, %v3569_v6 }
  0xde   :  { %v4261_v54 = vpop.f32.mrb[0].mxu0  ;;  %v4263_v55 = vpop.f32.mrb[0].mxu1 }
  0xdf   :  { %v2925_v56 = vpop.f32.mrb[1].mxu0  ;;  %3246 = vmatmul.mubr.msk.f32.gmra.mrb[106].mxu0 %vm67_vm4, %v2508_v52  ;;  %v3080_v58 = vpop.f32.mrb[1].mxu1  ;;  %3401 = vmatmul.mubr.msk.f32.gmra.mrb[106].mxu1 %vm67_vm4, %v2607_v53  ;;  %v2517_v52 = vld [vmem:[%s5434_s0 + $0x378] sm:$0xff]  ;;  %v2616_v53 = vld [vmem:[%s5434_s0 + $0x500] sm:$0xff] }
  0xe0   :  { %3248 = vmatprep.mubr.msk.f32.mxu0 %vm3568_vm1, %v3569_v6  ;;  %3403 = vmatprep.mubr.msk.f32.mxu1 %vm3568_vm1, %v3569_v6 }
  0xe2   :  { %v4279_v61 = vpop.f32.mrb[2].mxu0  ;;  %v4281_v62 = vpop.f32.mrb[2].mxu1 }
  0xe3   :  { %v2928_v63 = vpop.f32.mrb[3].mxu0  ;;  %3249 = vmatmul.mubr.msk.f32.gmra.mrb[108].mxu0 %vm67_vm4, %v2509_v59  ;;  %v3083_v1 = vpop.f32.mrb[3].mxu1  ;;  %3404 = vmatmul.mubr.msk.f32.gmra.mrb[108].mxu1 %vm67_vm4, %v2608_v60  ;;  %v2532_v60 = vld [vmem:[%s5434_s0 + $0x3f0] sm:$0xff] }
  0xe4   :  { %3251 = vmatprep.mubr.msk.f32.mxu0 %vm3568_vm1, %v3569_v6  ;;  %3406 = vmatprep.mubr.msk.f32.mxu1 %vm3568_vm1, %v3569_v6  ;;  %v2518_v1 = vld [vmem:[%s5434_s0 + $0x380] sm:$0xff] }
  0xe6   :  { %v4297_v4 = vpop.f32.mrb[4].mxu0  ;;  %v4299_v5 = vpop.f32.mrb[4].mxu1 }
  0xe7   :  { %v2931_v7 = vpop.f32.mrb[5].mxu0  ;;  %3252 = vmatmul.mubr.msk.f32.gmra.mrb[110].mxu0 %vm67_vm4, %v2510_v2  ;;  %v3086_v9 = vpop.f32.mrb[5].mxu1  ;;  %3407 = vmatmul.mubr.msk.f32.gmra.mrb[110].mxu1 %vm67_vm4, %v2609_v3  ;;  %v2617_v2 = vld [vmem:[%s5434_s0 + $0x508] sm:$0xff] }
  0xe8   :  { %3254 = vmatprep.mubr.msk.f32.mxu0 %vm3568_vm1, %v3569_v6  ;;  %3409 = vmatprep.mubr.msk.f32.mxu1 %vm3568_vm1, %v3569_v6 }
  0xea   :  { %v4315_v12 = vpop.f32.mrb[6].mxu0  ;;  %v4317_v13 = vpop.f32.mrb[6].mxu1 }
  0xeb   :  { %v2934_v14 = vpop.f32.mrb[7].mxu0  ;;  %3255 = vmatmul.mubr.msk.f32.gmra.mrb[112].mxu0 %vm67_vm4, %v2511_v10  ;;  %v3089_v16 = vpop.f32.mrb[7].mxu1  ;;  %3410 = vmatmul.mubr.msk.f32.gmra.mrb[112].mxu1 %vm67_vm4, %v2610_v11 }
  0xec   :  { %3257 = vmatprep.mubr.msk.f32.mxu0 %vm3568_vm1, %v3569_v6  ;;  %3412 = vmatprep.mubr.msk.f32.mxu1 %vm3568_vm1, %v3569_v6  ;;  %v2519_v14 = vld [vmem:[%s5434_s0 + $0x388] sm:$0xff]  ;;  %v2618_v16 = vld [vmem:[%s5434_s0 + $0x510] sm:$0xff] }
  0xee   :  { %v4333_v19 = vpop.f32.mrb[8].mxu0  ;;  %v4335_v20 = vpop.f32.mrb[8].mxu1 }
  0xef   :  { %v2937_v21 = vpop.f32.mrb[9].mxu0  ;;  %3258 = vmatmul.mubr.msk.f32.gmra.mrb[114].mxu0 %vm67_vm4, %v2512_v17  ;;  %v3092_v23 = vpop.f32.mrb[9].mxu1  ;;  %3413 = vmatmul.mubr.msk.f32.gmra.mrb[114].mxu1 %vm67_vm4, %v2611_v18 }
  0xf0   :  { %3260 = vmatprep.mubr.msk.f32.mxu0 %vm3568_vm1, %v3569_v6  ;;  %3415 = vmatprep.mubr.msk.f32.mxu1 %vm3568_vm1, %v3569_v6  ;;  %v2531_v23 = vld [vmem:[%s5434_s0 + $0x3e8] sm:$0xff] }
  0xf2   :  { %v4351_v26 = vpop.f32.mrb[10].mxu0  ;;  %v4353_v27 = vpop.f32.mrb[10].mxu1 }
  0xf3   :  { %v2940_v28 = vpop.f32.mrb[11].mxu0  ;;  %3261 = vmatmul.mubr.msk.f32.gmra.mrb[116].mxu0 %vm67_vm4, %v2513_v24  ;;  %v3095_v30 = vpop.f32.mrb[11].mxu1  ;;  %3416 = vmatmul.mubr.msk.f32.gmra.mrb[116].mxu1 %vm67_vm4, %v2612_v25  ;;  %v2520_v25 = vld [vmem:[%s5434_s0 + $0x390] sm:$0xff] }
  0xf4   :  { %3263 = vmatprep.mubr.msk.f32.mxu0 %vm3568_vm1, %v3569_v6  ;;  %3418 = vmatprep.mubr.msk.f32.mxu1 %vm3568_vm1, %v3569_v6  ;;  %v2619_v28 = vld [vmem:[%s5434_s0 + $0x518] sm:$0xff] }
  0xf6   :  { %v4369_v33 = vpop.f32.mrb[12].mxu0  ;;  %v4371_v34 = vpop.f32.mrb[12].mxu1 }
  0xf7   :  { %v2943_v35 = vpop.f32.mrb[13].mxu0  ;;  %3264 = vmatmul.mubr.msk.f32.gmra.mrb[118].mxu0 %vm67_vm4, %v2514_v31  ;;  %v3098_v37 = vpop.f32.mrb[13].mxu1  ;;  %3419 = vmatmul.mubr.msk.f32.gmra.mrb[118].mxu1 %vm67_vm4, %v2613_v32 }
  0xf8   :  { %3266 = vmatprep.mubr.msk.f32.mxu0 %vm3568_vm1, %v3569_v6  ;;  %3421 = vmatprep.mubr.msk.f32.mxu1 %vm3568_vm1, %v3569_v6 }
  0xfa   :  { %v4387_v40 = vpop.f32.mrb[14].mxu0  ;;  %v4389_v41 = vpop.f32.mrb[14].mxu1 }
  0xfb   :  { %v2946_v42 = vpop.f32.mrb[15].mxu0  ;;  %3267 = vmatmul.mubr.msk.f32.gmra.mrb[120].mxu0 %vm67_vm4, %v2515_v38  ;;  %v3101_v44 = vpop.f32.mrb[15].mxu1  ;;  %3422 = vmatmul.mubr.msk.f32.gmra.mrb[120].mxu1 %vm67_vm4, %v2614_v39  ;;  %v2521_v38 = vld [vmem:[%s5434_s0 + $0x398] sm:$0xff]  ;;  %v2620_v39 = vld [vmem:[%s5434_s0 + $0x520] sm:$0xff] }
  0xfc   :  { %3269 = vmatprep.mubr.msk.f32.mxu0 %vm3568_vm1, %v3569_v6  ;;  %3424 = vmatprep.mubr.msk.f32.mxu1 %vm3568_vm1, %v3569_v6 }
  0xfe   :  { %v4405_v47 = vpop.f32.mrb[16].mxu0  ;;  %v4407_v48 = vpop.f32.mrb[16].mxu1 }
  0xff   :  { %v2949_v49 = vpop.f32.mrb[17].mxu0  ;;  %3270 = vmatmul.mubr.msk.f32.gmra.mrb[122].mxu0 %vm67_vm4, %v2516_v45  ;;  %v3104_v51 = vpop.f32.mrb[17].mxu1  ;;  %3425 = vmatmul.mubr.msk.f32.gmra.mrb[122].mxu1 %vm67_vm4, %v2615_v46  ;;  %v2530_v46 = vld [vmem:[%s5434_s0 + $0x3e0] sm:$0xff] }
 0x100   :  { %3272 = vmatprep.mubr.msk.f32.mxu0 %vm3568_vm1, %v3569_v6  ;;  %3427 = vmatprep.mubr.msk.f32.mxu1 %vm3568_vm1, %v3569_v6  ;;  %v2522_v51 = vld [vmem:[%s5434_s0 + $0x3a0] sm:$0xff] }
 0x102   :  { %v4423_v56 = vpop.f32.mrb[18].mxu0  ;;  %v4425_v58 = vpop.f32.mrb[18].mxu1 }
 0x103   :  { %v2952_v59 = vpop.f32.mrb[19].mxu0  ;;  %3273 = vmatmul.mubr.msk.f32.gmra.mrb[124].mxu0 %vm67_vm4, %v2517_v52  ;;  %v3107_v63 = vpop.f32.mrb[19].mxu1  ;;  %3428 = vmatmul.mubr.msk.f32.gmra.mrb[124].mxu1 %vm67_vm4, %v2616_v53  ;;  %v2621_v52 = vld [vmem:[%s5434_s0 + $0x528] sm:$0xff] }
 0x104   :  { %3275 = vmatprep.mubr.msk.f32.mxu0 %vm3568_vm1, %v3569_v6  ;;  %3430 = vmatprep.mubr.msk.f32.mxu1 %vm3568_vm1, %v3569_v6 }
 0x106   :  { %v4441_v3 = vpop.f32.mrb[20].mxu0  ;;  %v4443_v7 = vpop.f32.mrb[20].mxu1 }
 0x107   :  { %v2955_v9 = vpop.f32.mrb[21].mxu0  ;;  %3276 = vmatmul.mubr.msk.f32.gmra.mrb[126].mxu0 %vm67_vm4, %v2518_v1  ;;  %v3110_v11 = vpop.f32.mrb[21].mxu1  ;;  %3431 = vmatmul.mubr.msk.f32.gmra.mrb[126].mxu1 %vm67_vm4, %v2617_v2 }
 0x108   :  { %3278 = vmatprep.mubr.msk.f32.mxu0 %vm3568_vm1, %v3569_v6  ;;  %3433 = vmatprep.mubr.msk.f32.mxu1 %vm3568_vm1, %v3569_v6  ;;  %v2523_v9 = vld [vmem:[%s5434_s0 + $0x3a8] sm:$0xff]  ;;  %v2622_v11 = vld [vmem:[%s5434_s0 + $0x530] sm:$0xff] }
 0x10a   :  { %v4459_v17 = vpop.f32.mrb[22].mxu0  ;;  %v4461_v18 = vpop.f32.mrb[22].mxu1 }
 0x10b   :  { %v2958_v21 = vpop.f32.mrb[23].mxu0  ;;  %3279 = vmatmul.mubr.msk.f32.gmra.mrb[128].mxu0 %vm67_vm4, %v2519_v14  ;;  %v3113_v24 = vpop.f32.mrb[23].mxu1  ;;  %3434 = vmatmul.mubr.msk.f32.gmra.mrb[128].mxu1 %vm67_vm4, %v2618_v16 }
 0x10c   :  { %3281 = vmatprep.mubr.msk.f32.mxu0 %vm3568_vm1, %v3569_v6  ;;  %3436 = vmatprep.mubr.msk.f32.mxu1 %vm3568_vm1, %v3569_v6  ;;  %v2529_v24 = vld [vmem:[%s5434_s0 + $0x3d8] sm:$0xff] }
 0x10e   :  { %v4477_v30 = vpop.f32.mrb[24].mxu0  ;;  %v4479_v31 = vpop.f32.mrb[24].mxu1 }
 0x10f   :  { %v2961_v32 = vpop.f32.mrb[25].mxu0  ;;  %3282 = vmatmul.mubr.msk.f32.gmra.mrb[130].mxu0 %vm67_vm4, %v2520_v25  ;;  %v3116_v37 = vpop.f32.mrb[25].mxu1  ;;  %3437 = vmatmul.mubr.msk.f32.gmra.mrb[130].mxu1 %vm67_vm4, %v2619_v28  ;;  %v2524_v28 = vld [vmem:[%s5434_s0 + $0x3b0] sm:$0xff] }
 0x110   :  { %3284 = vmatprep.mubr.msk.f32.mxu0 %vm3568_vm1, %v3569_v6  ;;  %3439 = vmatprep.mubr.msk.f32.mxu1 %vm3568_vm1, %v3569_v6  ;;  %v2623_v32 = vld [vmem:[%s5434_s0 + $0x538] sm:$0xff] }
 0x112   :  { %v4495_v42 = vpop.f32.mrb[26].mxu0  ;;  %v4497_v44 = vpop.f32.mrb[26].mxu1 }
 0x113   :  { %v2964_v45 = vpop.f32.mrb[27].mxu0  ;;  %3285 = vmatmul.mubr.msk.f32.gmra.mrb[132].mxu0 %vm67_vm4, %v2521_v38  ;;  %v3119_v49 = vpop.f32.mrb[27].mxu1  ;;  %3440 = vmatmul.mubr.msk.f32.gmra.mrb[132].mxu1 %vm67_vm4, %v2620_v39 }
 0x114   :  { %3287 = vmatprep.mubr.msk.f32.mxu0 %vm3568_vm1, %v3569_v6  ;;  %3442 = vmatprep.mubr.msk.f32.mxu1 %vm3568_vm1, %v3569_v6 }
 0x116   :  { %v4513_v53 = vpop.f32.mrb[28].mxu0  ;;  %v4515_v59 = vpop.f32.mrb[28].mxu1 }
 0x117   :  { %v2967_v63 = vpop.f32.mrb[29].mxu0  ;;  %3288 = vmatmul.mubr.msk.f32.gmra.mrb[134].mxu0 %vm67_vm4, %v2522_v51  ;;  %v3122_v2 = vpop.f32.mrb[29].mxu1  ;;  %3443 = vmatmul.mubr.msk.f32.gmra.mrb[134].mxu1 %vm67_vm4, %v2621_v52  ;;  %v2525_v51 = vld [vmem:[%s5434_s0 + $0x3b8] sm:$0xff]  ;;  %v2624_v52 = vld [vmem:[%s5434_s0 + $0x540] sm:$0xff] }
 0x118   :  { %3290 = vmatprep.mubr.msk.f32.mxu0 %vm3568_vm1, %v3569_v6  ;;  %3445 = vmatprep.mubr.msk.f32.mxu1 %vm3568_vm1, %v3569_v6 }
 0x11a   :  { %v4531_v14 = vpop.f32.mrb[30].mxu0  ;;  %v4533_v16 = vpop.f32.mrb[30].mxu1 }
 0x11b   :  { %v2970_v21 = vpop.f32.mrb[31].mxu0  ;;  %3291 = vmatmul.mubr.msk.f32.gmra.mrb[136].mxu0 %vm67_vm4, %v2523_v9  ;;  %v3125_v25 = vpop.f32.mrb[31].mxu1  ;;  %3446 = vmatmul.mubr.msk.f32.gmra.mrb[136].mxu1 %vm67_vm4, %v2622_v11  ;;  %v2528_v11 = vld [vmem:[%s5434_s0 + $0x3d0] sm:$0xff] }
 0x11c   :  { %3293 = vmatprep.mubr.msk.f32.mxu0 %vm3568_vm1, %v3569_v6  ;;  %3448 = vmatprep.mubr.msk.f32.mxu1 %vm3568_vm1, %v3569_v6  ;;  %v2526_v25 = vld [vmem:[%s5434_s0 + $0x3c0] sm:$0xff] }
 0x11e   :  { %v4549_v37 = vpop.f32.mrb[32].mxu0  ;;  %v4551_v38 = vpop.f32.mrb[32].mxu1 }
 0x11f   :  { %v2973_v39 = vpop.f32.mrb[33].mxu0  ;;  %3294 = vmatmul.mubr.msk.f32.gmra.mrb[138].mxu0 %vm67_vm4, %v2524_v28  ;;  %v3128_v49 = vpop.f32.mrb[33].mxu1  ;;  %3449 = vmatmul.mubr.msk.f32.gmra.mrb[138].mxu1 %vm67_vm4, %v2623_v32  ;;  %v2625_v28 = vld [vmem:[%s5434_s0 + $0x548] sm:$0xff] }
 0x120   :  { %3296 = vmatprep.mubr.msk.f32.mxu0 %vm3568_vm1, %v3569_v6  ;;  %3451 = vmatprep.mubr.msk.f32.mxu1 %vm3568_vm1, %v3569_v6 }
 0x122   :  { %v4567_v63 = vpop.f32.mrb[34].mxu0  ;;  %v4569_v2 = vpop.f32.mrb[34].mxu1 }
 0x123   :  { %v2976_v9 = vpop.f32.mrb[35].mxu0  ;;  %3297 = vmatmul.mubr.msk.f32.gmra.mrb[140].mxu0 %vm67_vm4, %v2525_v51  ;;  %v3131_v21 = vpop.f32.mrb[35].mxu1  ;;  %3452 = vmatmul.mubr.msk.f32.gmra.mrb[140].mxu1 %vm67_vm4, %v2624_v52 }
 0x124   :  { %3299 = vmatprep.mubr.msk.f32.mxu0 %vm3568_vm1, %v3569_v6  ;;  %3454 = vmatprep.mubr.msk.f32.mxu1 %vm3568_vm1, %v3569_v6  ;;  %v2527_v9 = vld [vmem:[%s5434_s0 + $0x3c8] sm:$0xff]  ;;  %v2626_v21 = vld [vmem:[%s5434_s0 + $0x550] sm:$0xff] }
 0x126   :  { %v4585_v32 = vpop.f32.mrb[36].mxu0  ;;  %v4587_v39 = vpop.f32.mrb[36].mxu1 }
 0x127   :  { %v2979_v49 = vpop.f32.mrb[37].mxu0  ;;  %3300 = vmatmul.mubr.msk.f32.gmra.mrb[142].mxu0 %vm67_vm4, %v2526_v25  ;;  %v3134_v52 = vpop.f32.mrb[37].mxu1  ;;  %3455 = vmatmul.mubr.msk.f32.gmra.mrb[142].mxu1 %vm67_vm4, %v2625_v28 }
 0x128   :  { %3302 = vmatprep.mubr.msk.f32.mxu0 %vm3568_vm1, %v3569_v6  ;;  %3457 = vmatprep.mubr.msk.f32.mxu1 %vm3568_vm1, %v3569_v6 }
 0x12a   :  { %v4603_v49 = vpop.f32.mrb[38].mxu0  ;;  %v4605_v25 = vpop.f32.mrb[38].mxu1 }
 0x12b   :  { %v2982_v52 = vpop.f32.mrb[39].mxu0  ;;  %3303 = vmatmul.mubr.msk.f32.gmra.mrb[144].mxu0 %vm67_vm4, %v2527_v9  ;;  %v3137_v51 = vpop.f32.mrb[39].mxu1  ;;  %3458 = vmatmul.mubr.msk.f32.gmra.mrb[144].mxu1 %vm67_vm4, %v2626_v21 }
 0x12c   :  { %3305 = vmatprep.mubr.msk.f32.mxu0 %vm3568_vm1, %v3569_v6  ;;  %3460 = vmatprep.mubr.msk.f32.mxu1 %vm3568_vm1, %v3569_v6  ;;  %v2627_v52 = vld [vmem:[%s5434_s0 + $0x558] sm:$0xff] }
 0x12e   :  { %v4621_v28 = vpop.f32.mrb[40].mxu0  ;;  %v4623_v9 = vpop.f32.mrb[40].mxu1 }
 0x12f   :  { %v2985_v51 = vpop.f32.mrb[41].mxu0  ;;  %3306 = vmatmul.mubr.msk.f32.gmra.mrb[146].mxu0 %vm67_vm4, %v2528_v11  ;;  %v3140_v45 = vpop.f32.mrb[41].mxu1  ;;  %3461 = vmatmul.mubr.msk.f32.gmra.mrb[146].mxu1 %vm67_vm4, %v2627_v52 }
 0x130   :  { %3308 = vmatprep.mubr.msk.f32.mxu0 %vm3568_vm1, %v3569_v6  ;;  %3463 = vmatprep.mubr.msk.f32.mxu1 %vm3568_vm1, %v3569_v6  ;;  %v2628_v51 = vld [vmem:[%s5434_s0 + $0x560] sm:$0xff] }
 0x132   :  { %v4639_v21 = vpop.f32.mrb[42].mxu0  ;;  %v4641_v11 = vpop.f32.mrb[42].mxu1 }
 0x133   :  { %v2988_v45 = vpop.f32.mrb[43].mxu0  ;;  %3309 = vmatmul.mubr.msk.f32.gmra.mrb[148].mxu0 %vm67_vm4, %v2529_v24  ;;  %v3143_v1 = vpop.f32.mrb[43].mxu1  ;;  %3464 = vmatmul.mubr.msk.f32.gmra.mrb[148].mxu1 %vm67_vm4, %v2628_v51 }
 0x134   :  { %3311 = vmatprep.mubr.msk.f32.mxu0 %vm3568_vm1, %v3569_v6  ;;  %3466 = vmatprep.mubr.msk.f32.mxu1 %vm3568_vm1, %v3569_v6  ;;  %v2629_v45 = vld [vmem:[%s5434_s0 + $0x568] sm:$0xff] }
 0x136   :  { %v4657_v52 = vpop.f32.mrb[44].mxu0  ;;  %v4659_v24 = vpop.f32.mrb[44].mxu1 }
 0x137   :  { %v2991_v1 = vpop.f32.mrb[45].mxu0  ;;  %3312 = vmatmul.mubr.msk.f32.gmra.mrb[150].mxu0 %vm67_vm4, %v2530_v46  ;;  %v3146_v35 = vpop.f32.mrb[45].mxu1  ;;  %3467 = vmatmul.mubr.msk.f32.gmra.mrb[150].mxu1 %vm67_vm4, %v2629_v45 }
 0x138   :  { %3314 = vmatprep.mubr.msk.f32.mxu0 %vm3568_vm1, %v3569_v6  ;;  %3469 = vmatprep.mubr.msk.f32.mxu1 %vm3568_vm1, %v3569_v6  ;;  %v2630_v1 = vld [vmem:[%s5434_s0 + $0x570] sm:$0xff] }
 0x13a   :  { %v4675_v51 = vpop.f32.mrb[46].mxu0  ;;  %v4677_v46 = vpop.f32.mrb[46].mxu1 }
 0x13b   :  { %v2994_v35 = vpop.f32.mrb[47].mxu0  ;;  %3315 = vmatmul.mubr.msk.f32.gmra.mrb[152].mxu0 %vm67_vm4, %v2531_v23  ;;  %v3149_v10 = vpop.f32.mrb[47].mxu1  ;;  %3470 = vmatmul.mubr.msk.f32.gmra.mrb[152].mxu1 %vm67_vm4, %v2630_v1 }
 0x13c   :  { %3317 = vmatprep.mubr.msk.f32.mxu0 %vm3568_vm1, %v3569_v6  ;;  %3472 = vmatprep.mubr.msk.f32.mxu1 %vm3568_vm1, %v3569_v6  ;;  %v2631_v35 = vld [vmem:[%s5434_s0 + $0x578] sm:$0xff] }
 0x13e   :  { %v4693_v45 = vpop.f32.mrb[48].mxu0  ;;  %v4695_v23 = vpop.f32.mrb[48].mxu1 }
 0x13f   :  { %5488 = vst [vmem:[#allocation2_spill] sm:$0xff] %v4695_v23  ;;  %v2997_v10 = vpop.f32.mrb[49].mxu0  ;;  %3318 = vmatmul.mubr.msk.f32.gmra.mrb[154].mxu0 %vm67_vm4, %v2532_v60  ;;  %v3152_v50 = vpop.f32.mrb[49].mxu1  ;;  %3473 = vmatmul.mubr.msk.f32.gmra.mrb[154].mxu1 %vm67_vm4, %v2631_v35 }
 0x140   :  { %3320 = vmatprep.mubr.msk.f32.mxu0 %vm3568_vm1, %v3569_v6  ;;  %3475 = vmatprep.mubr.msk.f32.mxu1 %vm3568_vm1, %v3569_v6  ;;  %v2632_v10 = vld [vmem:[%s5434_s0 + $0x580] sm:$0xff] }
 0x142   :  { %v4711_v1 = vpop.f32.mrb[50].mxu0  ;;  %v4713_v60 = vpop.f32.mrb[50].mxu1 }
 0x143   :  { %5489 = vst [vmem:[#allocation3_spill] sm:$0xff] %v4711_v1  ;;  %5490 = vst [vmem:[#allocation4_spill] sm:$0xff] %v4713_v60  ;;  %v3000_v50 = vpop.f32.mrb[51].mxu0  ;;  %3321 = vmatmul.mubr.msk.f32.gmra.mrb[156].mxu0 %vm67_vm4, %v2533_v43  ;;  %v3155_v36 = vpop.f32.mrb[51].mxu1  ;;  %3476 = vmatmul.mubr.msk.f32.gmra.mrb[156].mxu1 %vm67_vm4, %v2632_v10 }
 0x144   :  { %3323 = vmatprep.mubr.msk.f32.mxu0 %vm3568_vm1, %v3569_v6  ;;  %3478 = vmatprep.mubr.msk.f32.mxu1 %vm3568_vm1, %v3569_v6  ;;  %v2633_v50 = vld [vmem:[%s5434_s0 + $0x588] sm:$0xff] }
 0x146   :  { %v4729_v35 = vpop.f32.mrb[52].mxu0  ;;  %v4731_v43 = vpop.f32.mrb[52].mxu1 }
 0x147   :  { %5491 = vst [vmem:[#allocation5_spill] sm:$0xff] %v4729_v35  ;;  %5492 = vst [vmem:[#allocation6_spill] sm:$0xff] %v4731_v43  ;;  %v3003_v36 = vpop.f32.mrb[53].mxu0  ;;  %3324 = vmatmul.mubr.msk.f32.gmra.mrb[158].mxu0 %vm67_vm4, %v2534_v29  ;;  %v3158_v22 = vpop.f32.mrb[53].mxu1  ;;  %3479 = vmatmul.mubr.msk.f32.gmra.mrb[158].mxu1 %vm67_vm4, %v2633_v50 }
 0x148   :  { %3326 = vmatprep.mubr.msk.f32.mxu0 %vm3568_vm1, %v3569_v6  ;;  %3481 = vmatprep.mubr.msk.f32.mxu1 %vm3568_vm1, %v3569_v6  ;;  %v2634_v36 = vld [vmem:[%s5434_s0 + $0x590] sm:$0xff] }
 0x14a   :  { %v4747_v10 = vpop.f32.mrb[54].mxu0  ;;  %v4749_v29 = vpop.f32.mrb[54].mxu1 }
 0x14b   :  { %5493 = vst [vmem:[#allocation7_spill] sm:$0xff] %v4747_v10  ;;  %5494 = vst [vmem:[#allocation8_spill] sm:$0xff] %v4749_v29  ;;  %v3006_v22 = vpop.f32.mrb[55].mxu0  ;;  %3327 = vmatmul.mubr.msk.f32.gmra.mrb[160].mxu0 %vm67_vm4, %v2535_v15  ;;  %v3161_v8 = vpop.f32.mrb[55].mxu1  ;;  %3482 = vmatmul.mubr.msk.f32.gmra.mrb[160].mxu1 %vm67_vm4, %v2634_v36  ;;  %v2537_v29 = vld [vmem:[%s5434_s0 + $0x418] sm:$0xff] }
 0x14c   :  { %3329 = vmatprep.mubr.msk.f32.mxu0 %vm3568_vm1, %v3569_v6  ;;  %3484 = vmatprep.mubr.msk.f32.mxu1 %vm3568_vm1, %v3569_v6  ;;  %v2635_v22 = vld [vmem:[%s5434_s0 + $0x598] sm:$0xff] }
 0x14e   :  { %v4765_v50 = vpop.f32.mrb[56].mxu0  ;;  %v4767_v15 = vpop.f32.mrb[56].mxu1 }
 0x14f   :  { %5495 = vst [vmem:[#allocation9_spill] sm:$0xff] %v4765_v50  ;;  %5496 = vst [vmem:[#allocation10_spill] sm:$0xff] %v4767_v15  ;;  %v3009_v8 = vpop.f32.mrb[57].mxu0  ;;  %3330 = vmatmul.mubr.msk.f32.gmra.mrb[162].mxu0 %vm67_vm4, %v2536_v0  ;;  %v3164_v57 = vpop.f32.mrb[57].mxu1  ;;  %3485 = vmatmul.mubr.msk.f32.gmra.mrb[162].mxu1 %vm67_vm4, %v2635_v22  ;;  %v2538_v50 = vld [vmem:[%s5434_s0 + $0x420] sm:$0xff] }
 0x150   :  { %3332 = vmatprep.mubr.msk.f32.mxu0 %vm3568_vm1, %v3569_v6  ;;  %3487 = vmatprep.mubr.msk.f32.mxu1 %vm3568_vm1, %v3569_v6  ;;  %v2636_v8 = vld [vmem:[%s5434_s0 + $0x5a0] sm:$0xff] }
 0x152   :  { %v4783_v36 = vpop.f32.mrb[58].mxu0  ;;  %v4785_v0 = vpop.f32.mrb[58].mxu1 }
 0x153   :  { %5497 = vst [vmem:[#allocation11_spill] sm:$0xff] %v4783_v36  ;;  %5498 = vst [vmem:[#allocation12_spill] sm:$0xff] %v4785_v0  ;;  %v3012_v57 = vpop.f32.mrb[59].mxu0  ;;  %3333 = vmatmul.mubr.msk.f32.gmra.mrb[164].mxu0 %vm67_vm4, %v2537_v29  ;;  %v3167_v15 = vpop.f32.mrb[59].mxu1  ;;  %3488 = vmatmul.mubr.msk.f32.gmra.mrb[164].mxu1 %vm67_vm4, %v2636_v8  ;;  %v2539_v36 = vld [vmem:[%s5434_s0 + $0x428] sm:$0xff] }
 0x154   :  { %3335 = vmatprep.mubr.msk.f32.mxu0 %vm3568_vm1, %v3569_v6  ;;  %3490 = vmatprep.mubr.msk.f32.mxu1 %vm3568_vm1, %v3569_v6  ;;  %v2637_v57 = vld [vmem:[%s5434_s0 + $0x5a8] sm:$0xff] }
 0x156   :  { %v4801_v22 = vpop.f32.mrb[60].mxu0  ;;  %v4803_v29 = vpop.f32.mrb[60].mxu1 }
 0x157   :  { %5499 = vst [vmem:[#allocation13_spill] sm:$0xff] %v4801_v22  ;;  %5500 = vst [vmem:[#allocation14_spill] sm:$0xff] %v4803_v29  ;;  %v3015_v15 = vpop.f32.mrb[61].mxu0  ;;  %3336 = vmatmul.mubr.msk.f32.gmra.mrb[166].mxu0 %vm67_vm4, %v2538_v50  ;;  %v3170_v0 = vpop.f32.mrb[61].mxu1  ;;  %3491 = vmatmul.mubr.msk.f32.gmra.mrb[166].mxu1 %vm67_vm4, %v2637_v57  ;;  %v2540_v22 = vld [vmem:[%s5434_s0 + $0x430] sm:$0xff] }
 0x158   :  { %3338 = vmatprep.mubr.msk.f32.mxu0 %vm3568_vm1, %v3569_v6  ;;  %3493 = vmatprep.mubr.msk.f32.mxu1 %vm3568_vm1, %v3569_v6  ;;  %v2638_v15 = vld [vmem:[%s5434_s0 + $0x5b0] sm:$0xff] }
 0x15a   :  { %v4819_v8 = vpop.f32.mrb[62].mxu0  ;;  %v4821_v50 = vpop.f32.mrb[62].mxu1 }
 0x15b   :  { %5501 = vst [vmem:[#allocation15_spill] sm:$0xff] %v4819_v8  ;;  %5502 = vst [vmem:[#allocation16_spill] sm:$0xff] %v4821_v50  ;;  %v3018_v0 = vpop.f32.mrb[63].mxu0  ;;  %3339 = vmatmul.mubr.msk.f32.gmra.mrb[168].mxu0 %vm67_vm4, %v2539_v36  ;;  %v3173_v29 = vpop.f32.mrb[63].mxu1  ;;  %3494 = vmatmul.mubr.msk.f32.gmra.mrb[168].mxu1 %vm67_vm4, %v2638_v15  ;;  %v2541_v8 = vld [vmem:[%s5434_s0 + $0x438] sm:$0xff] }
 0x15c   :  { %3341 = vmatprep.mubr.msk.f32.mxu0 %vm3568_vm1, %v3569_v6  ;;  %3496 = vmatprep.mubr.msk.f32.mxu1 %vm3568_vm1, %v3569_v6  ;;  %v2639_v0 = vld [vmem:[%s5434_s0 + $0x5b8] sm:$0xff] }
 0x15e   :  { %v4837_v57 = vpop.f32.mrb[64].mxu0  ;;  %v4839_v36 = vpop.f32.mrb[64].mxu1 }
 0x15f   :  { %5503 = vst [vmem:[#allocation17_spill] sm:$0xff] %v4837_v57  ;;  %5504 = vst [vmem:[#allocation18_spill] sm:$0xff] %v4839_v36  ;;  %v3021_v29 = vpop.f32.mrb[65].mxu0  ;;  %3342 = vmatmul.mubr.msk.f32.gmra.mrb[170].mxu0 %vm67_vm4, %v2540_v22  ;;  %v3176_v50 = vpop.f32.mrb[65].mxu1  ;;  %3497 = vmatmul.mubr.msk.f32.gmra.mrb[170].mxu1 %vm67_vm4, %v2639_v0  ;;  %v2542_v57 = vld [vmem:[%s5434_s0 + $0x440] sm:$0xff] }
 0x160   :  { %3344 = vmatprep.mubr.msk.f32.mxu0 %vm3568_vm1, %v3569_v6  ;;  %3499 = vmatprep.mubr.msk.f32.mxu1 %vm3568_vm1, %v3569_v6  ;;  %v2640_v29 = vld [vmem:[%s5434_s0 + $0x5c0] sm:$0xff] }
 0x162   :  { %v4855_v15 = vpop.f32.mrb[66].mxu0  ;;  %v4857_v22 = vpop.f32.mrb[66].mxu1 }
 0x163   :  { %5505 = vst [vmem:[#allocation19_spill] sm:$0xff] %v4855_v15  ;;  %5506 = vst [vmem:[#allocation20_spill] sm:$0xff] %v4857_v22  ;;  %v3024_v50 = vpop.f32.mrb[67].mxu0  ;;  %3345 = vmatmul.mubr.msk.f32.gmra.mrb[172].mxu0 %vm67_vm4, %v2541_v8  ;;  %v3179_v36 = vpop.f32.mrb[67].mxu1  ;;  %3500 = vmatmul.mubr.msk.f32.gmra.mrb[172].mxu1 %vm67_vm4, %v2640_v29  ;;  %v2543_v15 = vld [vmem:[%s5434_s0 + $0x448] sm:$0xff] }
 0x164   :  { %3347 = vmatprep.mubr.msk.f32.mxu0 %vm3568_vm1, %v3569_v6  ;;  %3502 = vmatprep.mubr.msk.f32.mxu1 %vm3568_vm1, %v3569_v6  ;;  %v2641_v50 = vld [vmem:[%s5434_s0 + $0x5c8] sm:$0xff] }
 0x166   :  { %v4873_v0 = vpop.f32.mrb[68].mxu0  ;;  %v4875_v8 = vpop.f32.mrb[68].mxu1 }
 0x167   :  { %5507 = vst [vmem:[#allocation21_spill] sm:$0xff] %v4873_v0  ;;  %5508 = vst [vmem:[#allocation22_spill] sm:$0xff] %v4875_v8  ;;  %v3027_v36 = vpop.f32.mrb[69].mxu0  ;;  %3348 = vmatmul.mubr.msk.f32.gmra.mrb[174].mxu0 %vm67_vm4, %v2542_v57  ;;  %v3182_v22 = vpop.f32.mrb[69].mxu1  ;;  %3503 = vmatmul.mubr.msk.f32.gmra.mrb[174].mxu1 %vm67_vm4, %v2641_v50  ;;  %v2544_v0 = vld [vmem:[%s5434_s0 + $0x450] sm:$0xff] }
 0x168   :  { %3350 = vmatprep.mubr.msk.f32.mxu0 %vm3568_vm1, %v3569_v6  ;;  %3505 = vmatprep.mubr.msk.f32.mxu1 %vm3568_vm1, %v3569_v6  ;;  %v2642_v36 = vld [vmem:[%s5434_s0 + $0x5d0] sm:$0xff] }
 0x16a   :  { %v4891_v29 = vpop.f32.mrb[70].mxu0  ;;  %v4893_v57 = vpop.f32.mrb[70].mxu1 }
 0x16b   :  { %5509 = vst [vmem:[#allocation23_spill] sm:$0xff] %v4891_v29  ;;  %5510 = vst [vmem:[#allocation24_spill] sm:$0xff] %v4893_v57  ;;  %v3030_v22 = vpop.f32.mrb[71].mxu0  ;;  %3351 = vmatmul.mubr.msk.f32.gmra.mrb[176].mxu0 %vm67_vm4, %v2543_v15  ;;  %v3185_v8 = vpop.f32.mrb[71].mxu1  ;;  %3506 = vmatmul.mubr.msk.f32.gmra.mrb[176].mxu1 %vm67_vm4, %v2642_v36  ;;  %v2545_v29 = vld [vmem:[%s5434_s0 + $0x458] sm:$0xff] }
 0x16c   :  { %3353 = vmatprep.mubr.msk.f32.mxu0 %vm3568_vm1, %v3569_v6  ;;  %3508 = vmatprep.mubr.msk.f32.mxu1 %vm3568_vm1, %v3569_v6  ;;  %v2643_v22 = vld [vmem:[%s5434_s0 + $0x5d8] sm:$0xff] }
 0x16e   :  { %v4909_v50 = vpop.f32.mrb[72].mxu0  ;;  %v4911_v15 = vpop.f32.mrb[72].mxu1 }
 0x16f   :  { %5511 = vst [vmem:[#allocation25_spill] sm:$0xff] %v4909_v50  ;;  %5512 = vst [vmem:[#allocation26_spill] sm:$0xff] %v4911_v15  ;;  %v3033_v8 = vpop.f32.mrb[73].mxu0  ;;  %3354 = vmatmul.mubr.msk.f32.gmra.mrb[178].mxu0 %vm67_vm4, %v2544_v0  ;;  %v3188_v57 = vpop.f32.mrb[73].mxu1  ;;  %3509 = vmatmul.mubr.msk.f32.gmra.mrb[178].mxu1 %vm67_vm4, %v2643_v22  ;;  %v2546_v50 = vld [vmem:[%s5434_s0 + $0x460] sm:$0xff] }
 0x170   :  { %3356 = vmatprep.mubr.msk.f32.mxu0 %vm3568_vm1, %v3569_v6  ;;  %3511 = vmatprep.mubr.msk.f32.mxu1 %vm3568_vm1, %v3569_v6  ;;  %v2644_v8 = vld [vmem:[%s5434_s0 + $0x5e0] sm:$0xff] }
 0x172   :  { %v4927_v36 = vpop.f32.mrb[74].mxu0  ;;  %v4929_v0 = vpop.f32.mrb[74].mxu1 }
 0x173   :  { %5513 = vst [vmem:[#allocation27_spill] sm:$0xff] %v4927_v36  ;;  %5514 = vst [vmem:[#allocation28_spill] sm:$0xff] %v4929_v0  ;;  %v3036_v57 = vpop.f32.mrb[75].mxu0  ;;  %3357 = vmatmul.mubr.msk.f32.gmra.mrb[180].mxu0 %vm67_vm4, %v2545_v29  ;;  %v3191_v15 = vpop.f32.mrb[75].mxu1  ;;  %3512 = vmatmul.mubr.msk.f32.gmra.mrb[180].mxu1 %vm67_vm4, %v2644_v8  ;;  %v2547_v36 = vld [vmem:[%s5434_s0 + $0x468] sm:$0xff] }
 0x174   :  { %3359 = vmatprep.mubr.msk.f32.mxu0 %vm3568_vm1, %v3569_v6  ;;  %3514 = vmatprep.mubr.msk.f32.mxu1 %vm3568_vm1, %v3569_v6  ;;  %v2645_v57 = vld [vmem:[%s5434_s0 + $0x5e8] sm:$0xff] }
 0x176   :  { %v4945_v22 = vpop.f32.mrb[76].mxu0  ;;  %v4947_v29 = vpop.f32.mrb[76].mxu1 }
 0x177   :  { %5515 = vst [vmem:[#allocation29_spill] sm:$0xff] %v4945_v22  ;;  %5516 = vst [vmem:[#allocation30_spill] sm:$0xff] %v4947_v29  ;;  %v3039_v15 = vpop.f32.mrb[77].mxu0  ;;  %3360 = vmatmul.mubr.msk.f32.gmra.mrb[182].mxu0 %vm67_vm4, %v2546_v50  ;;  %v3194_v0 = vpop.f32.mrb[77].mxu1  ;;  %3515 = vmatmul.mubr.msk.f32.gmra.mrb[182].mxu1 %vm67_vm4, %v2645_v57  ;;  %v2548_v22 = vld [vmem:[%s5434_s0 + $0x470] sm:$0xff] }
 0x178   :  { %3362 = vmatprep.mubr.msk.f32.mxu0 %vm3568_vm1, %v3569_v6  ;;  %3517 = vmatprep.mubr.msk.f32.mxu1 %vm3568_vm1, %v3569_v6  ;;  %v2646_v15 = vld [vmem:[%s5434_s0 + $0x5f0] sm:$0xff] }
 0x17a   :  { %v4963_v8 = vpop.f32.mrb[78].mxu0  ;;  %v4965_v50 = vpop.f32.mrb[78].mxu1 }
 0x17b   :  { %5517 = vst [vmem:[#allocation31_spill] sm:$0xff] %v4963_v8  ;;  %5518 = vst [vmem:[#allocation32_spill] sm:$0xff] %v4965_v50  ;;  %v3042_v0 = vpop.f32.mrb[79].mxu0  ;;  %3363 = vmatmul.mubr.msk.f32.gmra.mrb[184].mxu0 %vm67_vm4, %v2547_v36  ;;  %v3197_v29 = vpop.f32.mrb[79].mxu1  ;;  %3518 = vmatmul.mubr.msk.f32.gmra.mrb[184].mxu1 %vm67_vm4, %v2646_v15  ;;  %v2549_v8 = vld [vmem:[%s5434_s0 + $0x478] sm:$0xff] }
 0x17c   :  { %3365 = vmatprep.mubr.msk.f32.mxu0 %vm3568_vm1, %v3569_v6  ;;  %3520 = vmatprep.mubr.msk.f32.mxu1 %vm3568_vm1, %v3569_v6  ;;  %v2647_v0 = vld [vmem:[%s5434_s0 + $0x5f8] sm:$0xff] }
 0x17e   :  { %v4981_v57 = vpop.f32.mrb[80].mxu0  ;;  %v4983_v36 = vpop.f32.mrb[80].mxu1 }
 0x17f   :  { %5519 = vst [vmem:[#allocation33_spill] sm:$0xff] %v4981_v57  ;;  %5520 = vst [vmem:[#allocation34_spill] sm:$0xff] %v4983_v36  ;;  %v3045_v29 = vpop.f32.mrb[81].mxu0  ;;  %3366 = vmatmul.mubr.msk.f32.gmra.mrb[186].mxu0 %vm67_vm4, %v2548_v22  ;;  %v3200_v50 = vpop.f32.mrb[81].mxu1  ;;  %3521 = vmatmul.mubr.msk.f32.gmra.mrb[186].mxu1 %vm67_vm4, %v2647_v0  ;;  %v2550_v57 = vld [vmem:[%s5434_s0 + $0x480] sm:$0xff] }
 0x180   :  { %3368 = vmatprep.mubr.msk.f32.mxu0 %vm3568_vm1, %v3569_v6  ;;  %3523 = vmatprep.mubr.msk.f32.mxu1 %vm3568_vm1, %v3569_v6  ;;  %v2648_v29 = vld [vmem:[%s5434_s0 + $0x600] sm:$0xff] }
 0x182   :  { %v4999_v15 = vpop.f32.mrb[82].mxu0  ;;  %v5001_v22 = vpop.f32.mrb[82].mxu1 }
 0x183   :  { %5521 = vst [vmem:[#allocation35_spill] sm:$0xff] %v4999_v15  ;;  %5522 = vst [vmem:[#allocation36_spill] sm:$0xff] %v5001_v22  ;;  %v3048_v50 = vpop.f32.mrb[83].mxu0  ;;  %3369 = vmatmul.mubr.msk.f32.gmra.mrb[188].mxu0 %vm67_vm4, %v2549_v8  ;;  %v3203_v36 = vpop.f32.mrb[83].mxu1  ;;  %3524 = vmatmul.mubr.msk.f32.gmra.mrb[188].mxu1 %vm67_vm4, %v2648_v29  ;;  %v2551_v15 = vld [vmem:[%s5434_s0 + $0x488] sm:$0xff] }
 0x184   :  { %3371 = vmatprep.mubr.msk.f32.mxu0 %vm3568_vm1, %v3569_v6  ;;  %3526 = vmatprep.mubr.msk.f32.mxu1 %vm3568_vm1, %v3569_v6  ;;  %v2649_v50 = vld [vmem:[%s5434_s0 + $0x608] sm:$0xff] }
 0x186   :  { %v5017_v0 = vpop.f32.mrb[84].mxu0  ;;  %v5019_v8 = vpop.f32.mrb[84].mxu1 }
 0x187   :  { %5523 = vst [vmem:[#allocation37_spill] sm:$0xff] %v5017_v0  ;;  %5524 = vst [vmem:[#allocation38_spill] sm:$0xff] %v5019_v8  ;;  %v3051_v36 = vpop.f32.mrb[85].mxu0  ;;  %3372 = vmatmul.mubr.msk.f32.gmra.mrb[190].mxu0 %vm67_vm4, %v2550_v57  ;;  %v3206_v22 = vpop.f32.mrb[85].mxu1  ;;  %3527 = vmatmul.mubr.msk.f32.gmra.mrb[190].mxu1 %vm67_vm4, %v2649_v50  ;;  %v2552_v0 = vld [vmem:[%s5434_s0 + $0x490] sm:$0xff] }
 0x188   :  { %3374 = vmatprep.mubr.msk.f32.mxu0 %vm3568_vm1, %v3569_v6  ;;  %3529 = vmatprep.mubr.msk.f32.mxu1 %vm3568_vm1, %v3569_v6  ;;  %v2650_v36 = vld [vmem:[%s5434_s0 + $0x610] sm:$0xff] }
 0x18a   :  { %v5035_v29 = vpop.f32.mrb[86].mxu0  ;;  %v5037_v57 = vpop.f32.mrb[86].mxu1 }
 0x18b   :  { %5525 = vst [vmem:[#allocation39_spill] sm:$0xff] %v5035_v29  ;;  %5526 = vst [vmem:[#allocation40_spill] sm:$0xff] %v5037_v57  ;;  %v3054_v22 = vpop.f32.mrb[87].mxu0  ;;  %3375 = vmatmul.mubr.msk.f32.gmra.mrb[192].mxu0 %vm67_vm4, %v2551_v15  ;;  %v3209_v8 = vpop.f32.mrb[87].mxu1  ;;  %3530 = vmatmul.mubr.msk.f32.gmra.mrb[192].mxu1 %vm67_vm4, %v2650_v36 }
 0x18c   :  { %3377 = vmatprep.mubr.msk.f32.mxu0 %vm3568_vm1, %v3569_v6  ;;  %3532 = vmatprep.mubr.msk.f32.mxu1 %vm3568_vm1, %v3569_v6  ;;  %v2651_v22 = vld [vmem:[%s5434_s0 + $0x618] sm:$0xff] }
 0x18e   :  { %v5053_v50 = vpop.f32.mrb[88].mxu0  ;;  %v5055_v15 = vpop.f32.mrb[88].mxu1 }
 0x18f   :  { %5527 = vst [vmem:[#allocation41_spill] sm:$0xff] %v5053_v50  ;;  %5528 = vst [vmem:[#allocation42_spill] sm:$0xff] %v5055_v15  ;;  %v3057_v8 = vpop.f32.mrb[89].mxu0  ;;  %3378 = vmatmul.mubr.msk.f32.gmra.mrb[194].mxu0 %vm67_vm4, %v2552_v0  ;;  %v3212_v57 = vpop.f32.mrb[89].mxu1  ;;  %3533 = vmatmul.mubr.msk.f32.gmra.mrb[194].mxu1 %vm67_vm4, %v2651_v22 }
 0x192   :  { %v5061_v29 = vpop.f32.mrb[90].mxu0  ;;  %v5063_v6 = vpop.f32.mrb[90].mxu1 }
 0x193   :  { %5529 = vst [vmem:[#allocation43_spill] sm:$0xff] %v5061_v29  ;;  %5530 = vst [vmem:[#allocation44_spill] sm:$0xff] %v5063_v6  ;;  %v3060_v10 = vpop.f32.mrb[91].mxu0  ;;  %v3215_v35 = vpop.f32.mrb[91].mxu1 }
 0x196   :  { %v5067_v60 = vpop.f32.mrb[92].mxu0  ;;  %v5069_v8 = vpop.f32.mrb[92].mxu1 }
 0x197   :  { %5531 = vst [vmem:[#allocation45_spill] sm:$0xff] %v5067_v60  ;;  %5532 = vst [vmem:[#allocation46_spill] sm:$0xff] %v5069_v8  ;;  %v3063_v1 = vpop.f32.mrb[93].mxu0  ;;  %v3218_v57 = vpop.f32.mrb[93].mxu1  ;;  %v5537_v8 = vmax.f32 %v4261_v54, %v4263_v55 }
 0x19a   :  { %v5073_v36 = vpop.f32.mrb[94].mxu0  ;;  %v5075_v22 = vpop.f32.mrb[94].mxu1 }
 0x19b   :  { %5533 = vst [vmem:[#allocation47_spill] sm:$0xff] %v5073_v36  ;;  %5534 = vst [vmem:[#allocation48_spill] sm:$0xff] %v5075_v22  ;;  %v3066_v15 = vpop.f32.mrb[95].mxu0  ;;  %v3221_v50 = vpop.f32.mrb[95].mxu1 }
 0x19c   :  { %v5091_v50 = vld [vmem:[%s5435_s2] ss:$0 sm:$0xff] }
 0x19e   :  { %v5079_v43 = vpop.f32.mrb[96].mxu0  ;;  %v5081_v35 = vpop.f32.mrb[96].mxu1 }
 0x19f   :  { %5535 = vst [vmem:[#allocation49_spill] sm:$0xff] %v5079_v43  ;;  %5536 = vst [vmem:[#allocation50_spill] sm:$0xff] %v5081_v35  ;;  %v3069_v6 = vpop.f32.mrb[97].mxu0  ;;  %v3224_v29 = vpop.f32.mrb[97].mxu1 }
 0x1a0   :  { %v5538_v29 = vmax.f32 %v4279_v61, %v4281_v62 }
 0x1a2   :  { %v1348_v0 = vpop.f32.mrb[98].mxu0  ;;  %v1904_v57 = vpop.f32.mrb[98].mxu1 }
 0x1a3   :  { %v1592_v60 = vmax.f32 %v5537_v8, %v1348_v0  ;;  %v3235_v15 = vpop.f32.mrb[99].mxu0  ;;  %v3390_v23 = vpop.f32.mrb[99].mxu1  ;;  %v5539_v0 = vmax.f32 %v4297_v4, %v4299_v5 }
 0x1a5   :  { %v2148_v10 = vmax.f32 %v1592_v60, %v1904_v57 }
 0x1a6   :  { %v1353_v22 = vpop.f32.mrb[100].mxu0  ;;  %v1909_v6 = vpop.f32.mrb[100].mxu1 }
 0x1a7   :  { %v2204_v36 = vadd.f32 %v5091_v50, %v2148_v10  ;;  %v1593_v1 = vmax.f32 %v5538_v29, %v1353_v22  ;;  %v3238_v35 = vpop.f32.mrb[101].mxu0  ;;  %v3393_v43 = vpop.f32.mrb[101].mxu1 }
 0x1a8   :  { %v5540_v35 = vmax.f32 %v4315_v12, %v4317_v13 }
 0x1a9   :  { %v2253_v54 = vmax.f32 %v2204_v36, 0.0  ;;  %v2149_v55 = vmax.f32 %v1593_v1, %v1909_v6 }
 0x1aa   :  { %v1358_v8 = vpop.f32.mrb[102].mxu0  ;;  %v1914_v23 = vpop.f32.mrb[102].mxu1 }
 0x1ab   :  { %2302 = vst [vmem:[%s5436_s3] sm:$0xff] %v2253_v54  ;;  %v2205_v60 = vadd.f32 %v5091_v50, %v2149_v55  ;;  %v1594_v10 = vmax.f32 %v5539_v0, %v1358_v8  ;;  %v3241_v57 = vpop.f32.mrb[103].mxu0  ;;  %v3396_v15 = vpop.f32.mrb[103].mxu1 }
 0x1ad   :  { %v2254_v61 = vmax.f32 %v2205_v60, 0.0  ;;  %v2150_v62 = vmax.f32 %v1594_v10, %v1914_v23  ;;  %v5541_v23 = vmax.f32 %v4333_v19, %v4335_v20 }
 0x1ae   :  { %v1363_v22 = vpop.f32.mrb[104].mxu0  ;;  %v1919_v43 = vpop.f32.mrb[104].mxu1 }
 0x1af   :  { %2303 = vst [vmem:[%s5436_s3 + $0x8] sm:$0xff] %v2254_v61  ;;  %v2206_v36 = vadd.f32 %v5091_v50, %v2150_v62  ;;  %v1595_v1 = vmax.f32 %v5540_v35, %v1363_v22  ;;  %v3244_v6 = vpop.f32.mrb[105].mxu0  ;;  %v3399_v29 = vpop.f32.mrb[105].mxu1  ;;  %v5542_v62 = vmax.f32 %v4351_v26, %v4353_v27 }
 0x1b0   :  { %v5543_v29 = vmax.f32 %v4369_v33, %v4371_v34 }
 0x1b1   :  { %v2255_v4 = vmax.f32 %v2206_v36, 0.0  ;;  %v2151_v5 = vmax.f32 %v1595_v1, %v1919_v43 }
 0x1b2   :  { %v1368_v54 = vpop.f32.mrb[106].mxu0  ;;  %v1924_v55 = vpop.f32.mrb[106].mxu1 }
 0x1b3   :  { %2304 = vst [vmem:[%s5436_s3 + $0x10] sm:$0xff] %v2255_v4  ;;  %v2207_v8 = vadd.f32 %v5091_v50, %v2151_v5  ;;  %v1596_v60 = vmax.f32 %v5541_v23, %v1368_v54  ;;  %v3247_v0 = vpop.f32.mrb[107].mxu0  ;;  %v3402_v10 = vpop.f32.mrb[107].mxu1 }
 0x1b5   :  { %v2256_v12 = vmax.f32 %v2207_v8, 0.0  ;;  %v2152_v13 = vmax.f32 %v1596_v60, %v1924_v55  ;;  %v5544_v60 = vmax.f32 %v4387_v40, %v4389_v41 }
 0x1b6   :  { %v1373_v57 = vpop.f32.mrb[108].mxu0  ;;  %v1929_v15 = vpop.f32.mrb[108].mxu1 }
 0x1b7   :  { %2305 = vst [vmem:[%s5436_s3 + $0x18] sm:$0xff] %v2256_v12  ;;  %v2208_v61 = vadd.f32 %v5091_v50, %v2152_v13  ;;  %v1597_v22 = vmax.f32 %v5542_v62, %v1373_v57  ;;  %v3250_v43 = vpop.f32.mrb[109].mxu0  ;;  %v3405_v36 = vpop.f32.mrb[109].mxu1 }
 0x1b9   :  { %v2257_v19 = vmax.f32 %v2208_v61, 0.0  ;;  %v2153_v20 = vmax.f32 %v1597_v22, %v1929_v15  ;;  %v5545_v61 = vmax.f32 %v4405_v47, %v4407_v48 }
 0x1ba   :  { %v1378_v35 = vpop.f32.mrb[110].mxu0  ;;  %v1934_v1 = vpop.f32.mrb[110].mxu1 }
 0x1bb   :  { %2306 = vst [vmem:[%s5436_s3 + $0x20] sm:$0xff] %v2257_v19  ;;  %v2209_v6 = vadd.f32 %v5091_v50, %v2153_v20  ;;  %v1598_v4 = vmax.f32 %v5543_v29, %v1378_v35  ;;  %v3253_v5 = vpop.f32.mrb[111].mxu0  ;;  %v3408_v54 = vpop.f32.mrb[111].mxu1  ;;  %v5546_v35 = vmax.f32 %v4423_v56, %v4425_v58 }
 0x1bd   :  { %v2258_v26 = vmax.f32 %v2209_v6, 0.0  ;;  %v2154_v27 = vmax.f32 %v1598_v4, %v1934_v1 }
 0x1be   :  { %v1383_v55 = vpop.f32.mrb[112].mxu0  ;;  %v1939_v8 = vpop.f32.mrb[112].mxu1 }
 0x1bf   :  { %2307 = vst [vmem:[%s5436_s3 + $0x28] sm:$0xff] %v2258_v26  ;;  %v2210_v23 = vadd.f32 %v5091_v50, %v2154_v27  ;;  %v1599_v0 = vmax.f32 %v5544_v60, %v1383_v55  ;;  %v3256_v10 = vpop.f32.mrb[113].mxu0  ;;  %v3411_v12 = vpop.f32.mrb[113].mxu1  ;;  %v5547_v26 = vmax.f32 %v4441_v3, %v4443_v7 }
 0x1c0   :  { %v5548_v10 = vmax.f32 %v4459_v17, %v4461_v18 }
 0x1c1   :  { %v2259_v33 = vmax.f32 %v2210_v23, 0.0  ;;  %v2155_v34 = vmax.f32 %v1599_v0, %v1939_v8 }
 0x1c2   :  { %v1388_v13 = vpop.f32.mrb[114].mxu0  ;;  %v1944_v57 = vpop.f32.mrb[114].mxu1 }
 0x1c3   :  { %2308 = vst [vmem:[%s5436_s3 + $0x30] sm:$0xff] %v2259_v33  ;;  %v2211_v15 = vadd.f32 %v5091_v50, %v2155_v34  ;;  %v1600_v62 = vmax.f32 %v5545_v61, %v1388_v13  ;;  %v3259_v22 = vpop.f32.mrb[115].mxu0  ;;  %v3414_v43 = vpop.f32.mrb[115].mxu1  ;;  %v5549_v61 = vmax.f32 %v4477_v30, %v4479_v31 }
 0x1c5   :  { %v2260_v40 = vmax.f32 %v2211_v15, 0.0  ;;  %v2156_v41 = vmax.f32 %v1600_v62, %v1944_v57 }
 0x1c6   :  { %v1393_v36 = vpop.f32.mrb[116].mxu0  ;;  %v1949_v19 = vpop.f32.mrb[116].mxu1 }
 0x1c7   :  { %2309 = vst [vmem:[%s5436_s3 + $0x38] sm:$0xff] %v2260_v40  ;;  %v2212_v20 = vadd.f32 %v5091_v50, %v2156_v41  ;;  %v1601_v1 = vmax.f32 %v5546_v35, %v1393_v36  ;;  %v3262_v6 = vpop.f32.mrb[117].mxu0  ;;  %v3417_v29 = vpop.f32.mrb[117].mxu1 }
 0x1c9   :  { %v2261_v47 = vmax.f32 %v2212_v20, 0.0  ;;  %v2157_v48 = vmax.f32 %v1601_v1, %v1949_v19  ;;  %v5550_v19 = vmax.f32 %v4495_v42, %v4497_v44 }
 0x1ca   :  { %v1398_v4 = vpop.f32.mrb[118].mxu0  ;;  %v1954_v5 = vpop.f32.mrb[118].mxu1 }
 0x1cb   :  { %2310 = vst [vmem:[%s5436_s3 + $0x40] sm:$0xff] %v2261_v47  ;;  %v2213_v54 = vadd.f32 %v5091_v50, %v2157_v48  ;;  %v1602_v27 = vmax.f32 %v5547_v26, %v1398_v4  ;;  %v3265_v55 = vpop.f32.mrb[119].mxu0  ;;  %v3420_v8 = vpop.f32.mrb[119].mxu1  ;;  %v5551_v48 = vmax.f32 %v4513_v53, %v4515_v59 }
 0x1cc   :  { %v5552_v8 = vmax.f32 %v4531_v14, %v4533_v16 }
 0x1cd   :  { %v2262_v56 = vmax.f32 %v2213_v54, 0.0  ;;  %v2158_v58 = vmax.f32 %v1602_v27, %v1954_v5 }
 0x1ce   :  { %v1403_v23 = vpop.f32.mrb[120].mxu0  ;;  %v1959_v60 = vpop.f32.mrb[120].mxu1 }
 0x1cf   :  { %2311 = vst [vmem:[%s5436_s3 + $0x48] sm:$0xff] %v2262_v56  ;;  %v2214_v0 = vadd.f32 %v5091_v50, %v2158_v58  ;;  %v1603_v12 = vmax.f32 %v5548_v10, %v1403_v23  ;;  %v3268_v33 = vpop.f32.mrb[121].mxu0  ;;  %v3423_v34 = vpop.f32.mrb[121].mxu1 }
 0x1d1   :  { %v2263_v3 = vmax.f32 %v2214_v0, 0.0  ;;  %v2159_v7 = vmax.f32 %v1603_v12, %v1959_v60  ;;  %v5553_v12 = vmax.f32 %v4549_v37, %v4551_v38 }
 0x1d2   :  { %v1408_v13 = vpop.f32.mrb[122].mxu0  ;;  %v1964_v57 = vpop.f32.mrb[122].mxu1 }
 0x1d3   :  { %2312 = vst [vmem:[%s5436_s3 + $0x50] sm:$0xff] %v2263_v3  ;;  %v2215_v15 = vadd.f32 %v5091_v50, %v2159_v7  ;;  %v1604_v62 = vmax.f32 %v5549_v61, %v1408_v13  ;;  %v3271_v22 = vpop.f32.mrb[123].mxu0  ;;  %v3426_v43 = vpop.f32.mrb[123].mxu1 }
 0x1d5   :  { %v2264_v17 = vmax.f32 %v2215_v15, 0.0  ;;  %v2160_v18 = vmax.f32 %v1604_v62, %v1964_v57  ;;  %v5554_v15 = vmax.f32 %v4567_v63, %v4569_v2 }
 0x1d6   :  { %v1413_v40 = vpop.f32.mrb[124].mxu0  ;;  %v1969_v41 = vpop.f32.mrb[124].mxu1 }
 0x1d7   :  { %2313 = vst [vmem:[%s5436_s3 + $0x58] sm:$0xff] %v2264_v17  ;;  %v2216_v36 = vadd.f32 %v5091_v50, %v2160_v18  ;;  %v1605_v20 = vmax.f32 %v5550_v19, %v1413_v40  ;;  %v3274_v35 = vpop.f32.mrb[125].mxu0  ;;  %v3429_v1 = vpop.f32.mrb[125].mxu1  ;;  %v5555_v40 = vmax.f32 %v4585_v32, %v4587_v39 }
 0x1d9   :  { %v2265_v30 = vmax.f32 %v2216_v36, 0.0  ;;  %v2161_v31 = vmax.f32 %v1605_v20, %v1969_v41 }
 0x1da   :  { %v1418_v6 = vpop.f32.mrb[126].mxu0  ;;  %v1974_v29 = vpop.f32.mrb[126].mxu1 }
 0x1db   :  { %2314 = vst [vmem:[%s5436_s3 + $0x60] sm:$0xff] %v2265_v30  ;;  %v2217_v47 = vadd.f32 %v5091_v50, %v2161_v31  ;;  %v1606_v4 = vmax.f32 %v5551_v48, %v1418_v6  ;;  %v3277_v5 = vpop.f32.mrb[127].mxu0  ;;  %v3432_v54 = vpop.f32.mrb[127].mxu1  ;;  %v5556_v30 = vmax.f32 %v4603_v49, %v4605_v25 }
 0x1dc   :  { %v5557_v5 = vmax.f32 %v4621_v28, %v4623_v9 }
 0x1dd   :  { %v2266_v42 = vmax.f32 %v2217_v47, 0.0  ;;  %v2162_v44 = vmax.f32 %v1606_v4, %v1974_v29 }
 0x1de   :  { %v1423_v26 = vpop.f32.mrb[128].mxu0  ;;  %v1979_v27 = vpop.f32.mrb[128].mxu1 }
 0x1df   :  { %2315 = vst [vmem:[%s5436_s3 + $0x68] sm:$0xff] %v2266_v42  ;;  %v2218_v55 = vadd.f32 %v5091_v50, %v2162_v44  ;;  %v1607_v56 = vmax.f32 %v5552_v8, %v1423_v26  ;;  %v3280_v58 = vpop.f32.mrb[129].mxu0  ;;  %v3435_v23 = vpop.f32.mrb[129].mxu1  ;;  %v5558_v8 = vmax.f32 %v4639_v21, %v4641_v11 }
 0x1e1   :  { %v2267_v53 = vmax.f32 %v2218_v55, 0.0  ;;  %v2163_v59 = vmax.f32 %v1607_v56, %v1979_v27 }
 0x1e2   :  { %v1428_v60 = vpop.f32.mrb[130].mxu0  ;;  %v1984_v0 = vpop.f32.mrb[130].mxu1 }
 0x1e3   :  { %2316 = vst [vmem:[%s5436_s3 + $0x70] sm:$0xff] %v2267_v53  ;;  %v2219_v10 = vadd.f32 %v5091_v50, %v2163_v59  ;;  %v1608_v33 = vmax.f32 %v5553_v12, %v1428_v60  ;;  %v3283_v34 = vpop.f32.mrb[131].mxu0  ;;  %v3438_v3 = vpop.f32.mrb[131].mxu1 }
 0x1e5   :  { %v2268_v14 = vmax.f32 %v2219_v10, 0.0  ;;  %v2164_v16 = vmax.f32 %v1608_v33, %v1984_v0  ;;  %v5559_v0 = vmax.f32 %v4657_v52, %v4659_v24 }
 0x1e6   :  { %v1433_v7 = vpop.f32.mrb[132].mxu0  ;;  %v1989_v13 = vpop.f32.mrb[132].mxu1 }
 0x1e7   :  { %2317 = vst [vmem:[%s5436_s3 + $0x78] sm:$0xff] %v2268_v14  ;;  %v2220_v57 = vadd.f32 %v5091_v50, %v2164_v16  ;;  %v1609_v61 = vmax.f32 %v5554_v15, %v1433_v7  ;;  %v3286_v62 = vpop.f32.mrb[133].mxu0  ;;  %v3441_v22 = vpop.f32.mrb[133].mxu1  ;;  %v5560_v16 = vmax.f32 %v4675_v51, %v4677_v46 }
 0x1e8   :  { %v5561_v22 = vld [vmem:[#allocation2_spill] sm:$0xff] }
 0x1e9   :  { %v2269_v37 = vmax.f32 %v2220_v57, 0.0  ;;  %v2165_v38 = vmax.f32 %v1609_v61, %v1989_v13 }
 0x1ea   :  { %v1438_v43 = vpop.f32.mrb[134].mxu0  ;;  %v1994_v17 = vpop.f32.mrb[134].mxu1 }
 0x1eb   :  { %2318 = vst [vmem:[%s5436_s3 + $0x80] sm:$0xff] %v2269_v37  ;;  %v2221_v18 = vadd.f32 %v5091_v50, %v2165_v38  ;;  %v1610_v41 = vmax.f32 %v5555_v40, %v1438_v43  ;;  %v3289_v36 = vpop.f32.mrb[135].mxu0  ;;  %v3444_v19 = vpop.f32.mrb[135].mxu1  ;;  %v5562_v37 = vmax.f32 %v4693_v45, %v5561_v22 }
 0x1ec   :  { %v5563_v36 = vld [vmem:[#allocation3_spill] sm:$0xff]  ;;  %v5564_v19 = vld [vmem:[#allocation4_spill] sm:$0xff] }
 0x1ed   :  { %v2270_v63 = vmax.f32 %v2221_v18, 0.0  ;;  %v2166_v2 = vmax.f32 %v1610_v41, %v1994_v17 }
 0x1ee   :  { %v1443_v20 = vpop.f32.mrb[136].mxu0  ;;  %v1999_v35 = vpop.f32.mrb[136].mxu1 }
 0x1ef   :  { %2319 = vst [vmem:[%s5436_s3 + $0x88] sm:$0xff] %v2270_v63  ;;  %v2222_v1 = vadd.f32 %v5091_v50, %v2166_v2  ;;  %v1611_v31 = vmax.f32 %v5556_v30, %v1443_v20  ;;  %v3292_v6 = vpop.f32.mrb[137].mxu0  ;;  %v3447_v29 = vpop.f32.mrb[137].mxu1  ;;  %v5565_v63 = vmax.f32 %v5563_v36, %v5564_v19 }
 0x1f0   :  { %v5566_v29 = vld [vmem:[#allocation5_spill] sm:$0xff] }
 0x1f1   :  { %v2271_v32 = vmax.f32 %v2222_v1, 0.0  ;;  %v2167_v39 = vmax.f32 %v1611_v31, %v1999_v35 }
 0x1f2   :  { %v1448_v47 = vpop.f32.mrb[138].mxu0  ;;  %v2004_v48 = vpop.f32.mrb[138].mxu1 }
 0x1f3   :  { %2320 = vst [vmem:[%s5436_s3 + $0x90] sm:$0xff] %v2271_v32  ;;  %v2223_v4 = vadd.f32 %v5091_v50, %v2167_v39  ;;  %v1612_v54 = vmax.f32 %v5557_v5, %v1448_v47  ;;  %v3295_v42 = vpop.f32.mrb[139].mxu0  ;;  %v3450_v44 = vpop.f32.mrb[139].mxu1  ;;  %v5567_v32 = vld [vmem:[#allocation6_spill] sm:$0xff] }
 0x1f4   :  { %v5568_v39 = vmax.f32 %v5566_v29, %v5567_v32 }
 0x1f5   :  { %v2272_v49 = vmax.f32 %v2223_v4, 0.0  ;;  %v2168_v25 = vmax.f32 %v1612_v54, %v2004_v48 }
 0x1f6   :  { %v1453_v26 = vpop.f32.mrb[140].mxu0  ;;  %v2009_v27 = vpop.f32.mrb[140].mxu1 }
 0x1f7   :  { %2321 = vst [vmem:[%s5436_s3 + $0x98] sm:$0xff] %v2272_v49  ;;  %v2224_v55 = vadd.f32 %v5091_v50, %v2168_v25  ;;  %v1613_v56 = vmax.f32 %v5558_v8, %v1453_v26  ;;  %v3298_v58 = vpop.f32.mrb[141].mxu0  ;;  %v3453_v23 = vpop.f32.mrb[141].mxu1  ;;  %v5569_v25 = vld [vmem:[#allocation7_spill] sm:$0xff]  ;;  %v5570_v26 = vld [vmem:[#allocation8_spill] sm:$0xff] }
 0x1f9   :  { %v2273_v28 = vmax.f32 %v2224_v55, 0.0  ;;  %v2169_v9 = vmax.f32 %v1613_v56, %v2009_v27  ;;  %v5571_v27 = vmax.f32 %v5569_v25, %v5570_v26 }
 0x1fa   :  { %v1458_v53 = vpop.f32.mrb[142].mxu0  ;;  %v2014_v59 = vpop.f32.mrb[142].mxu1 }
 0x1fb   :  { %2322 = vst [vmem:[%s5436_s3 + $0xa0] sm:$0xff] %v2273_v28  ;;  %v2225_v60 = vadd.f32 %v5091_v50, %v2169_v9  ;;  %v1614_v10 = vmax.f32 %v5559_v0, %v1458_v53  ;;  %v3301_v12 = vpop.f32.mrb[143].mxu0  ;;  %v3456_v33 = vpop.f32.mrb[143].mxu1 }
 0x1fd   :  { %v2274_v21 = vmax.f32 %v2225_v60, 0.0  ;;  %v2170_v11 = vmax.f32 %v1614_v10, %v2014_v59  ;;  %v5572_v59 = vld [vmem:[#allocation9_spill] sm:$0xff]  ;;  %v5573_v60 = vld [vmem:[#allocation10_spill] sm:$0xff] }
 0x1fe   :  { %v1463_v34 = vpop.f32.mrb[144].mxu0  ;;  %v2019_v3 = vpop.f32.mrb[144].mxu1  ;;  %v5574_v0 = vmax.f32 %v5572_v59, %v5573_v60 }
 0x1ff   :  { %2323 = vst [vmem:[%s5436_s3 + $0xa8] sm:$0xff] %v2274_v21  ;;  %v2226_v14 = vadd.f32 %v5091_v50, %v2170_v11  ;;  %v1615_v7 = vmax.f32 %v5560_v16, %v1463_v34  ;;  %v3304_v13 = vpop.f32.mrb[145].mxu0  ;;  %v3459_v57 = vpop.f32.mrb[145].mxu1  ;;  %v5575_v16 = vld [vmem:[#allocation11_spill] sm:$0xff] }
 0x201   :  { %v2275_v52 = vmax.f32 %v2226_v14, 0.0  ;;  %v2171_v24 = vmax.f32 %v1615_v7, %v2019_v3  ;;  %v5576_v7 = vld [vmem:[#allocation12_spill] sm:$0xff] }
 0x202   :  { %v1468_v15 = vpop.f32.mrb[146].mxu0  ;;  %v2024_v61 = vpop.f32.mrb[146].mxu1  ;;  %v5577_v13 = vmax.f32 %v5575_v16, %v5576_v7 }
 0x203   :  { %2324 = vst [vmem:[%s5436_s3 + $0xb0] sm:$0xff] %v2275_v52  ;;  %v2227_v62 = vadd.f32 %v5091_v50, %v2171_v24  ;;  %v1616_v38 = vmax.f32 %v5562_v37, %v1468_v15  ;;  %v3307_v43 = vpop.f32.mrb[147].mxu0  ;;  %v3462_v17 = vpop.f32.mrb[147].mxu1 }
 0x204   :  { %v5579_v43 = vld [vmem:[#allocation14_spill] sm:$0xff] }
 0x205   :  { %v2276_v51 = vmax.f32 %v2227_v62, 0.0  ;;  %v2172_v46 = vmax.f32 %v1616_v38, %v2024_v61  ;;  %v5578_v38 = vld [vmem:[#allocation13_spill] sm:$0xff] }
 0x206   :  { %v1473_v18 = vpop.f32.mrb[148].mxu0  ;;  %v2029_v40 = vpop.f32.mrb[148].mxu1  ;;  %v5580_v17 = vmax.f32 %v5578_v38, %v5579_v43 }
 0x207   :  { %2325 = vst [vmem:[%s5436_s3 + $0xb8] sm:$0xff] %v2276_v51  ;;  %v2228_v41 = vadd.f32 %v5091_v50, %v2172_v46  ;;  %v1617_v2 = vmax.f32 %v5565_v63, %v1473_v18  ;;  %v3310_v20 = vpop.f32.mrb[149].mxu0  ;;  %v3465_v35 = vpop.f32.mrb[149].mxu1 }
 0x208   :  { %v5582_v20 = vld [vmem:[#allocation16_spill] sm:$0xff] }
 0x209   :  { %v2277_v45 = vmax.f32 %v2228_v41, 0.0  ;;  %v2173_v1 = vmax.f32 %v1617_v2, %v2029_v40  ;;  %v5581_v2 = vld [vmem:[#allocation15_spill] sm:$0xff] }
 0x20a   :  { %v1478_v30 = vpop.f32.mrb[150].mxu0  ;;  %v2034_v31 = vpop.f32.mrb[150].mxu1  ;;  %v5583_v35 = vmax.f32 %v5581_v2, %v5582_v20 }
 0x20b   :  { %2326 = vst [vmem:[%s5436_s3 + $0xc0] sm:$0xff] %v2277_v45  ;;  %v2229_v6 = vadd.f32 %v5091_v50, %v2173_v1  ;;  %v1618_v47 = vmax.f32 %v5568_v39, %v1478_v30  ;;  %v3313_v48 = vpop.f32.mrb[151].mxu0  ;;  %v3468_v4 = vpop.f32.mrb[151].mxu1 }
 0x20c   :  { %v5585_v48 = vld [vmem:[#allocation18_spill] sm:$0xff] }
 0x20d   :  { %v2278_v5 = vmax.f32 %v2229_v6, 0.0  ;;  %v2174_v54 = vmax.f32 %v1618_v47, %v2034_v31  ;;  %v5584_v47 = vld [vmem:[#allocation17_spill] sm:$0xff] }
 0x20e   :  { %v1483_v42 = vpop.f32.mrb[152].mxu0  ;;  %v2039_v44 = vpop.f32.mrb[152].mxu1  ;;  %v5586_v4 = vmax.f32 %v5584_v47, %v5585_v48 }
 0x20f   :  { %2327 = vst [vmem:[%s5436_s3 + $0xc8] sm:$0xff] %v2278_v5  ;;  %v2230_v49 = vadd.f32 %v5091_v50, %v2174_v54  ;;  %v1619_v55 = vmax.f32 %v5571_v27, %v1483_v42  ;;  %v3316_v8 = vpop.f32.mrb[153].mxu0  ;;  %v3471_v56 = vpop.f32.mrb[153].mxu1 }
 0x210   :  { %v5588_v8 = vld [vmem:[#allocation20_spill] sm:$0xff] }
 0x211   :  { %v2279_v58 = vmax.f32 %v2230_v49, 0.0  ;;  %v2175_v23 = vmax.f32 %v1619_v55, %v2039_v44  ;;  %v5587_v55 = vld [vmem:[#allocation19_spill] sm:$0xff] }
 0x212   :  { %v1488_v28 = vpop.f32.mrb[154].mxu0  ;;  %v2044_v9 = vpop.f32.mrb[154].mxu1  ;;  %v5589_v56 = vmax.f32 %v5587_v55, %v5588_v8 }
 0x213   :  { %2328 = vst [vmem:[%s5436_s3 + $0xd0] sm:$0xff] %v2279_v58  ;;  %v2231_v53 = vadd.f32 %v5091_v50, %v2175_v23  ;;  %v1620_v10 = vmax.f32 %v5574_v0, %v1488_v28  ;;  %v3319_v12 = vpop.f32.mrb[155].mxu0  ;;  %v3474_v33 = vpop.f32.mrb[155].mxu1 }
 0x214   :  { %v5591_v12 = vld [vmem:[#allocation22_spill] sm:$0xff] }
 0x215   :  { %v2280_v21 = vmax.f32 %v2231_v53, 0.0  ;;  %v2176_v11 = vmax.f32 %v1620_v10, %v2044_v9  ;;  %v5590_v10 = vld [vmem:[#allocation21_spill] sm:$0xff] }
 0x216   :  { %v1493_v34 = vpop.f32.mrb[156].mxu0  ;;  %v2049_v3 = vpop.f32.mrb[156].mxu1  ;;  %v5592_v33 = vmax.f32 %v5590_v10, %v5591_v12 }
 0x217   :  { %2329 = vst [vmem:[%s5436_s3 + $0xd8] sm:$0xff] %v2280_v21  ;;  %v2232_v14 = vadd.f32 %v5091_v50, %v2176_v11  ;;  %v1621_v57 = vmax.f32 %v5577_v13, %v1493_v34  ;;  %v3322_v52 = vpop.f32.mrb[157].mxu0  ;;  %v3477_v24 = vpop.f32.mrb[157].mxu1 }
 0x218   :  { %v5594_v52 = vld [vmem:[#allocation24_spill] sm:$0xff] }
 0x219   :  { %v2281_v15 = vmax.f32 %v2232_v14, 0.0  ;;  %v2177_v61 = vmax.f32 %v1621_v57, %v2049_v3  ;;  %v5593_v57 = vld [vmem:[#allocation23_spill] sm:$0xff] }
 0x21a   :  { %v1498_v62 = vpop.f32.mrb[158].mxu0  ;;  %v2054_v22 = vpop.f32.mrb[158].mxu1  ;;  %v5595_v24 = vmax.f32 %v5593_v57, %v5594_v52 }
 0x21b   :  { %2330 = vst [vmem:[%s5436_s3 + $0xe0] sm:$0xff] %v2281_v15  ;;  %v2233_v37 = vadd.f32 %v5091_v50, %v2177_v61  ;;  %v1622_v51 = vmax.f32 %v5580_v17, %v1498_v62  ;;  %v3325_v46 = vpop.f32.mrb[159].mxu0  ;;  %v3480_v18 = vpop.f32.mrb[159].mxu1 }
 0x21c   :  { %v5597_v46 = vld [vmem:[#allocation26_spill] sm:$0xff] }
 0x21d   :  { %v2282_v40 = vmax.f32 %v2233_v37, 0.0  ;;  %v2178_v41 = vmax.f32 %v1622_v51, %v2054_v22  ;;  %v5596_v51 = vld [vmem:[#allocation25_spill] sm:$0xff] }
 0x21e   :  { %v1503_v36 = vpop.f32.mrb[160].mxu0  ;;  %v2059_v19 = vpop.f32.mrb[160].mxu1  ;;  %v5598_v18 = vmax.f32 %v5596_v51, %v5597_v46 }
 0x21f   :  { %2331 = vst [vmem:[%s5436_s3 + $0xe8] sm:$0xff] %v2282_v40  ;;  %v2234_v63 = vadd.f32 %v5091_v50, %v2178_v41  ;;  %v1623_v45 = vmax.f32 %v5583_v35, %v1503_v36  ;;  %v3328_v1 = vpop.f32.mrb[161].mxu0  ;;  %v3483_v30 = vpop.f32.mrb[161].mxu1 }
 0x220   :  { %v5600_v1 = vld [vmem:[#allocation28_spill] sm:$0xff] }
 0x221   :  { %v2283_v31 = vmax.f32 %v2234_v63, 0.0  ;;  %v2179_v6 = vmax.f32 %v1623_v45, %v2059_v19  ;;  %v5599_v45 = vld [vmem:[#allocation27_spill] sm:$0xff] }
 0x222   :  { %v1508_v29 = vpop.f32.mrb[162].mxu0  ;;  %v2064_v32 = vpop.f32.mrb[162].mxu1  ;;  %v5601_v30 = vmax.f32 %v5599_v45, %v5600_v1 }
 0x223   :  { %2332 = vst [vmem:[%s5436_s3 + $0xf0] sm:$0xff] %v2283_v31  ;;  %v2235_v39 = vadd.f32 %v5091_v50, %v2179_v6  ;;  %v1624_v5 = vmax.f32 %v5586_v4, %v1508_v29  ;;  %v3331_v54 = vpop.f32.mrb[163].mxu0  ;;  %v3486_v42 = vpop.f32.mrb[163].mxu1 }
 0x224   :  { %v5603_v54 = vld [vmem:[#allocation30_spill] sm:$0xff] }
 0x225   :  { %v2284_v44 = vmax.f32 %v2235_v39, 0.0  ;;  %v2180_v49 = vmax.f32 %v1624_v5, %v2064_v32  ;;  %v5602_v5 = vld [vmem:[#allocation29_spill] sm:$0xff] }
 0x226   :  { %v1513_v25 = vpop.f32.mrb[164].mxu0  ;;  %v2069_v26 = vpop.f32.mrb[164].mxu1  ;;  %v5604_v42 = vmax.f32 %v5602_v5, %v5603_v54 }
 0x227   :  { %2333 = vst [vmem:[%s5436_s3 + $0xf8] sm:$0xff] %v2284_v44  ;;  %v2236_v27 = vadd.f32 %v5091_v50, %v2180_v49  ;;  %v1625_v58 = vmax.f32 %v5589_v56, %v1513_v25  ;;  %v3334_v23 = vpop.f32.mrb[165].mxu0  ;;  %v3489_v28 = vpop.f32.mrb[165].mxu1 }
 0x228   :  { %v5606_v23 = vld [vmem:[#allocation32_spill] sm:$0xff] }
 0x229   :  { %v2285_v9 = vmax.f32 %v2236_v27, 0.0  ;;  %v2181_v53 = vmax.f32 %v1625_v58, %v2069_v26  ;;  %v5605_v58 = vld [vmem:[#allocation31_spill] sm:$0xff] }
 0x22a   :  { %v1518_v59 = vpop.f32.mrb[166].mxu0  ;;  %v2074_v60 = vpop.f32.mrb[166].mxu1  ;;  %v5607_v28 = vmax.f32 %v5605_v58, %v5606_v23 }
 0x22b   :  { %2334 = vst [vmem:[%s5436_s3 + $0x100] sm:$0xff] %v2285_v9  ;;  %v2237_v0 = vadd.f32 %v5091_v50, %v2181_v53  ;;  %v1626_v21 = vmax.f32 %v5592_v33, %v1518_v59  ;;  %v3337_v11 = vpop.f32.mrb[167].mxu0  ;;  %v3492_v34 = vpop.f32.mrb[167].mxu1 }
 0x22c   :  { %v5609_v11 = vld [vmem:[#allocation34_spill] sm:$0xff] }
 0x22d   :  { %v2286_v3 = vmax.f32 %v2237_v0, 0.0  ;;  %v2182_v14 = vmax.f32 %v1626_v21, %v2074_v60  ;;  %v5608_v21 = vld [vmem:[#allocation33_spill] sm:$0xff] }
 0x22e   :  { %v1523_v16 = vpop.f32.mrb[168].mxu0  ;;  %v2079_v7 = vpop.f32.mrb[168].mxu1  ;;  %v5610_v34 = vmax.f32 %v5608_v21, %v5609_v11 }
 0x22f   :  { %2335 = vst [vmem:[%s5436_s3 + $0x108] sm:$0xff] %v2286_v3  ;;  %v2238_v13 = vadd.f32 %v5091_v50, %v2182_v14  ;;  %v1627_v15 = vmax.f32 %v5595_v24, %v1523_v16  ;;  %v3340_v61 = vpop.f32.mrb[169].mxu0  ;;  %v3495_v62 = vpop.f32.mrb[169].mxu1 }
 0x230   :  { %v5612_v61 = vld [vmem:[#allocation36_spill] sm:$0xff] }
 0x231   :  { %v2287_v22 = vmax.f32 %v2238_v13, 0.0  ;;  %v2183_v37 = vmax.f32 %v1627_v15, %v2079_v7  ;;  %v5611_v15 = vld [vmem:[#allocation35_spill] sm:$0xff] }
 0x232   :  { %v1528_v38 = vpop.f32.mrb[170].mxu0  ;;  %v2084_v43 = vpop.f32.mrb[170].mxu1  ;;  %v5613_v62 = vmax.f32 %v5611_v15, %v5612_v61 }
 0x233   :  { %2336 = vst [vmem:[%s5436_s3 + $0x110] sm:$0xff] %v2287_v22  ;;  %v2239_v17 = vadd.f32 %v5091_v50, %v2183_v37  ;;  %v1628_v40 = vmax.f32 %v5598_v18, %v1528_v38  ;;  %v3343_v41 = vpop.f32.mrb[171].mxu0  ;;  %v3498_v36 = vpop.f32.mrb[171].mxu1 }
 0x234   :  { %v5615_v41 = vld [vmem:[#allocation38_spill] sm:$0xff] }
 0x235   :  { %v2288_v19 = vmax.f32 %v2239_v17, 0.0  ;;  %v2184_v63 = vmax.f32 %v1628_v40, %v2084_v43  ;;  %v5614_v40 = vld [vmem:[#allocation37_spill] sm:$0xff] }
 0x236   :  { %v1533_v2 = vpop.f32.mrb[172].mxu0  ;;  %v2089_v20 = vpop.f32.mrb[172].mxu1  ;;  %v5616_v36 = vmax.f32 %v5614_v40, %v5615_v41 }
 0x237   :  { %2337 = vst [vmem:[%s5436_s3 + $0x118] sm:$0xff] %v2288_v19  ;;  %v2240_v35 = vadd.f32 %v5091_v50, %v2184_v63  ;;  %v1629_v31 = vmax.f32 %v5601_v30, %v1533_v2  ;;  %v3346_v6 = vpop.f32.mrb[173].mxu0  ;;  %v3501_v29 = vpop.f32.mrb[173].mxu1 }
 0x238   :  { %v5618_v6 = vld [vmem:[#allocation40_spill] sm:$0xff] }
 0x239   :  { %v2289_v32 = vmax.f32 %v2240_v35, 0.0  ;;  %v2185_v39 = vmax.f32 %v1629_v31, %v2089_v20  ;;  %v5617_v31 = vld [vmem:[#allocation39_spill] sm:$0xff] }
 0x23a   :  { %v1538_v47 = vpop.f32.mrb[174].mxu0  ;;  %v2094_v48 = vpop.f32.mrb[174].mxu1  ;;  %v5619_v29 = vmax.f32 %v5617_v31, %v5618_v6 }
 0x23b   :  { %2338 = vst [vmem:[%s5436_s3 + $0x120] sm:$0xff] %v2289_v32  ;;  %v2241_v4 = vadd.f32 %v5091_v50, %v2185_v39  ;;  %v1630_v44 = vmax.f32 %v5604_v42, %v1538_v47  ;;  %v3349_v49 = vpop.f32.mrb[175].mxu0  ;;  %v3504_v25 = vpop.f32.mrb[175].mxu1 }
 0x23c   :  { %v5621_v49 = vld [vmem:[#allocation42_spill] sm:$0xff] }
 0x23d   :  { %v2290_v26 = vmax.f32 %v2241_v4, 0.0  ;;  %v2186_v27 = vmax.f32 %v1630_v44, %v2094_v48  ;;  %v5620_v44 = vld [vmem:[#allocation41_spill] sm:$0xff] }
 0x23e   :  { %v1543_v55 = vpop.f32.mrb[176].mxu0  ;;  %v2099_v8 = vpop.f32.mrb[176].mxu1  ;;  %v5622_v25 = vmax.f32 %v5620_v44, %v5621_v49 }
 0x23f   :  { %2339 = vst [vmem:[%s5436_s3 + $0x128] sm:$0xff] %v2290_v26  ;;  %v2242_v56 = vadd.f32 %v5091_v50, %v2186_v27  ;;  %v1631_v9 = vmax.f32 %v5607_v28, %v1543_v55  ;;  %v3352_v53 = vpop.f32.mrb[177].mxu0  ;;  %v3507_v59 = vpop.f32.mrb[177].mxu1 }
 0x240   :  { %v5624_v53 = vld [vmem:[#allocation44_spill] sm:$0xff] }
 0x241   :  { %v2291_v60 = vmax.f32 %v2242_v56, 0.0  ;;  %v2187_v0 = vmax.f32 %v1631_v9, %v2099_v8  ;;  %v5623_v9 = vld [vmem:[#allocation43_spill] sm:$0xff] }
 0x242   :  { %v1548_v10 = vpop.f32.mrb[178].mxu0  ;;  %v2104_v12 = vpop.f32.mrb[178].mxu1  ;;  %v5625_v59 = vmax.f32 %v5623_v9, %v5624_v53 }
 0x243   :  { %2340 = vst [vmem:[%s5436_s3 + $0x130] sm:$0xff] %v2291_v60  ;;  %v2243_v33 = vadd.f32 %v5091_v50, %v2187_v0  ;;  %v1632_v3 = vmax.f32 %v5610_v34, %v1548_v10  ;;  %v3355_v14 = vpop.f32.mrb[179].mxu0  ;;  %v3510_v16 = vpop.f32.mrb[179].mxu1 }
 0x244   :  { %v5627_v14 = vld [vmem:[#allocation46_spill] sm:$0xff] }
 0x245   :  { %v2292_v7 = vmax.f32 %v2243_v33, 0.0  ;;  %v2188_v13 = vmax.f32 %v1632_v3, %v2104_v12  ;;  %v5626_v3 = vld [vmem:[#allocation45_spill] sm:$0xff] }
 0x246   :  { %v1553_v57 = vpop.f32.mrb[180].mxu0  ;;  %v2109_v52 = vpop.f32.mrb[180].mxu1  ;;  %v5628_v16 = vmax.f32 %v5626_v3, %v5627_v14 }
 0x247   :  { %2341 = vst [vmem:[%s5436_s3 + $0x138] sm:$0xff] %v2292_v7  ;;  %v2244_v24 = vadd.f32 %v5091_v50, %v2188_v13  ;;  %v1633_v22 = vmax.f32 %v5613_v62, %v1553_v57  ;;  %v3358_v37 = vpop.f32.mrb[181].mxu0  ;;  %v3513_v38 = vpop.f32.mrb[181].mxu1 }
 0x248   :  { %v5630_v37 = vld [vmem:[#allocation48_spill] sm:$0xff] }
 0x249   :  { %v2293_v43 = vmax.f32 %v2244_v24, 0.0  ;;  %v2189_v17 = vmax.f32 %v1633_v22, %v2109_v52  ;;  %v5629_v22 = vld [vmem:[#allocation47_spill] sm:$0xff] }
 0x24a   :  { %v1558_v51 = vpop.f32.mrb[182].mxu0  ;;  %v2114_v46 = vpop.f32.mrb[182].mxu1  ;;  %v5631_v38 = vmax.f32 %v5629_v22, %v5630_v37 }
 0x24b   :  { %2342 = vst [vmem:[%s5436_s3 + $0x140] sm:$0xff] %v2293_v43  ;;  %v2245_v18 = vadd.f32 %v5091_v50, %v2189_v17  ;;  %v1634_v19 = vmax.f32 %v5616_v36, %v1558_v51  ;;  %v3361_v63 = vpop.f32.mrb[183].mxu0  ;;  %v3516_v2 = vpop.f32.mrb[183].mxu1 }
 0x24c   :  { %v5633_v63 = vld [vmem:[#allocation50_spill] sm:$0xff] }
 0x24d   :  { %v2294_v20 = vmax.f32 %v2245_v18, 0.0  ;;  %v2190_v35 = vmax.f32 %v1634_v19, %v2114_v46  ;;  %v5632_v19 = vld [vmem:[#allocation49_spill] sm:$0xff] }
 0x24e   :  { %v1563_v45 = vpop.f32.mrb[184].mxu0  ;;  %v2119_v1 = vpop.f32.mrb[184].mxu1  ;;  %v5634_v2 = vmax.f32 %v5632_v19, %v5633_v63 }
 0x24f   :  { %2343 = vst [vmem:[%s5436_s3 + $0x148] sm:$0xff] %v2294_v20  ;;  %v2246_v30 = vadd.f32 %v5091_v50, %v2190_v35  ;;  %v1635_v32 = vmax.f32 %v5619_v29, %v1563_v45  ;;  %v3364_v39 = vpop.f32.mrb[185].mxu0  ;;  %v3519_v47 = vpop.f32.mrb[185].mxu1 }
 0x251   :  { %v2295_v48 = vmax.f32 %v2246_v30, 0.0  ;;  %v2191_v4 = vmax.f32 %v1635_v32, %v2119_v1 }
 0x252   :  { %v1568_v5 = vpop.f32.mrb[186].mxu0  ;;  %v2124_v54 = vpop.f32.mrb[186].mxu1 }
 0x253   :  { %2344 = vst [vmem:[%s5436_s3 + $0x150] sm:$0xff] %v2295_v48  ;;  %v2247_v42 = vadd.f32 %v5091_v50, %v2191_v4  ;;  %v1636_v26 = vmax.f32 %v5622_v25, %v1568_v5  ;;  %v3367_v27 = vpop.f32.mrb[187].mxu0  ;;  %v3522_v55 = vpop.f32.mrb[187].mxu1 }
 0x255   :  { %v2296_v8 = vmax.f32 %v2247_v42, 0.0  ;;  %v2192_v56 = vmax.f32 %v1636_v26, %v2124_v54 }
 0x256   :  { %v1573_v58 = vpop.f32.mrb[188].mxu0  ;;  %v2129_v23 = vpop.f32.mrb[188].mxu1 }
 0x257   :  { %2345 = vst [vmem:[%s5436_s3 + $0x158] sm:$0xff] %v2296_v8  ;;  %v2248_v28 = vadd.f32 %v5091_v50, %v2192_v56  ;;  %v1637_v60 = vmax.f32 %v5625_v59, %v1573_v58  ;;  %v3370_v0 = vpop.f32.mrb[189].mxu0  ;;  %v3525_v10 = vpop.f32.mrb[189].mxu1 }
 0x259   :  { %v2297_v12 = vmax.f32 %v2248_v28, 0.0  ;;  %v2193_v33 = vmax.f32 %v1637_v60, %v2129_v23 }
 0x25a   :  { %v1578_v21 = vpop.f32.mrb[190].mxu0  ;;  %v2134_v11 = vpop.f32.mrb[190].mxu1 }
 0x25b   :  { %2346 = vst [vmem:[%s5436_s3 + $0x160] sm:$0xff] %v2297_v12  ;;  %v2249_v34 = vadd.f32 %v5091_v50, %v2193_v33  ;;  %v1638_v7 = vmax.f32 %v5628_v16, %v1578_v21  ;;  %v3373_v13 = vpop.f32.mrb[191].mxu0  ;;  %v3528_v57 = vpop.f32.mrb[191].mxu1 }
 0x25d   :  { %v2298_v52 = vmax.f32 %v2249_v34, 0.0  ;;  %v2194_v24 = vmax.f32 %v1638_v7, %v2134_v11 }
 0x25e   :  { %v1583_v15 = vpop.f32.mrb[192].mxu0  ;;  %v2139_v61 = vpop.f32.mrb[192].mxu1 }
 0x25f   :  { %2347 = vst [vmem:[%s5436_s3 + $0x168] sm:$0xff] %v2298_v52  ;;  %v2250_v62 = vadd.f32 %v5091_v50, %v2194_v24  ;;  %v1639_v43 = vmax.f32 %v5631_v38, %v1583_v15  ;;  %v3376_v17 = vpop.f32.mrb[193].mxu0  ;;  %v3531_v51 = vpop.f32.mrb[193].mxu1 }
 0x261   :  { %v2299_v46 = vmax.f32 %v2250_v62, 0.0  ;;  %v2195_v18 = vmax.f32 %v1639_v43, %v2139_v61 }
 0x262   :  { %v1588_v40 = vpop.f32.mrb[194].mxu0  ;;  %v2144_v41 = vpop.f32.mrb[194].mxu1 }
 0x263   :  { %2348 = vst [vmem:[%s5436_s3 + $0x170] sm:$0xff] %v2299_v46  ;;  %v2251_v36 = vadd.f32 %v5091_v50, %v2195_v18  ;;  %v1640_v20 = vmax.f32 %v5634_v2, %v1588_v40  ;;  %v3379_v35 = vpop.f32.mrb[195].mxu0  ;;  %v3534_v45 = vpop.f32.mrb[195].mxu1 }
 0x265   :  { %v2300_v1 = vmax.f32 %v2251_v36, 0.0  ;;  %v2196_v30 = vmax.f32 %v1640_v20, %v2144_v41 }
 0x267   :  { %2349 = vst [vmem:[%s5436_s3 + $0x178] sm:$0xff] %v2300_v1  ;;  %v2252_v31 = vadd.f32 %v5091_v50, %v2196_v30 }
 0x269   :  { %v2301_v6 = vmax.f32 %v2252_v31, 0.0 }
 0x26b   :  { %2350 = vst [vmem:[%s5436_s3 + $0x180] sm:$0xff] %v2301_v6 }

// kernel: lenet_forward.4
= control target key start
LH: loop header
LB: loop body
LE: loop exit
PB: predicated region body
PF: predicated region fallthrough
CT: control target
= control target key end

     0   :  { %v819_v0 = vmov 0.0|0.0   ;;  %vm47_vm0 = vcmask 179200   ;;  %v820_v30 = vmov 0.0   ;;  %vm69_vm1 = vcmask 1045504   ;;  %s1222_s1 = inlined_call_operand.vmem [shape: f32[150,128], index: 1, kind: input, shape index: {}]   ;;  %s1223_s0 = inlined_call_operand.vmem [shape: f32[4,50,150], index: 0, kind: input, shape index: {}]   ;;  %s1224_s2 = inlined_call_operand.vmem [shape: f32[1,128], index: 2, kind: input, shape index: {}]   ;;  %s1225_s3 = inlined_call_operand.vmem [shape: f32[50,128], index: 3, kind: output, shape index: {}]  }
   0x1   :  { %709 = vmatprep.subr.bf16.mxu0 %v819_v0  ;;  %v14_v1 = vld [vmem:[%s1222_s1] sm:$0xff]  ;;  %v15_v2 = vld [vmem:[%s1222_s1 + $0x8] sm:$0xff]  ;;  %736 = vmatprep.subr.bf16.mxu1 %v819_v0  ;;  %v16_v3 = vld [vmem:[%s1222_s1 + $0x10] sm:$0xff] }
   0x2   :  { %v852_v4 = vpack.c.bf16 %v15_v2, %v14_v1  ;;  %v17_v5 = vld [vmem:[%s1222_s1 + $0x18] sm:$0xff]  ;;  %v18_v7 = vld [vmem:[%s1222_s1 + $0x20] sm:$0xff]  ;;  %v19_v8 = vld [vmem:[%s1222_s1 + $0x28] sm:$0xff] }
   0x3   :  { %v859_v6 = vpack.c.bf16 %v17_v5, %v16_v3  ;;  %v34_v9 = vld [vmem:[%s1223_s0 + $0x8] sm:$0xff]  ;;  %v874_v10 = vpack.c.bf16 %v19_v8, %v18_v7  ;;  %v643_v11 = vld [vmem:[%s1223_s0 + $0x78] sm:$0xff]  ;;  %v20_v12 = vld [vmem:[%s1222_s1 + $0x30] sm:$0xff] }
   0x4   :  { %711 = vmatpush1.bf16.msra.mxu0 %v852_v4  ;;  %738 = vmatpush1.bf16.msra.mxu1 %v852_v4  ;;  %v21_v13 = vld [vmem:[%s1222_s1 + $0x38] sm:$0xff]  ;;  %v22_v15 = vld [vmem:[%s1222_s1 + $0x40] sm:$0xff]  ;;  %v23_v16 = vld [vmem:[%s1222_s1 + $0x48] sm:$0xff] }
   0x5   :  { %712 = vmatprep.subr.bf16.mxu0 %v819_v0  ;;  %739 = vmatprep.subr.bf16.mxu1 %v819_v0  ;;  %v891_v14 = vpack.c.bf16 %v21_v13, %v20_v12  ;;  %v903_v17 = vpack.c.bf16 %v23_v16, %v22_v15  ;;  %v24_v18 = vld [vmem:[%s1222_s1 + $0x50] sm:$0xff]  ;;  %v25_v19 = vld [vmem:[%s1222_s1 + $0x58] sm:$0xff]  ;;  %v26_v21 = vld [vmem:[%s1222_s1 + $0x60] sm:$0xff] }
   0x6   :  { %635 = vmatprep.mubr.msk.f32.mxu0 %vm47_vm0, %v34_v9  ;;  %657 = vmatprep.mubr.msk.f32.mxu1 %vm47_vm0, %v643_v11  ;;  %v915_v20 = vpack.c.bf16 %v25_v19, %v24_v18  ;;  %v27_v22 = vld [vmem:[%s1222_s1 + $0x68] sm:$0xff]  ;;  %v28_v24 = vld [vmem:[%s1222_s1 + $0x70] sm:$0xff]  ;;  %v29_v25 = vld [vmem:[%s1222_s1 + $0x78] sm:$0xff] }
   0x7   :  { %v927_v23 = vpack.c.bf16 %v27_v22, %v26_v21  ;;  %v939_v26 = vpack.c.bf16 %v29_v25, %v28_v24  ;;  %v30_v27 = vld [vmem:[%s1222_s1 + $0x80] sm:$0xff]  ;;  %v31_v28 = vld [vmem:[%s1222_s1 + $0x88] sm:$0xff]  ;;  %v961_v31 = vld [vmem:[%s1222_s1 + $0x90] sm:$0x3f] }
   0x8   :  { %714 = vmatpush1.bf16.msra.mxu0 %v859_v6  ;;  %741 = vmatpush1.bf16.msra.mxu1 %v859_v6  ;;  %v951_v29 = vpack.c.bf16 %v31_v28, %v30_v27  ;;  %v33_v32 = vld [vmem:[%s1223_s0] sm:$0xff]  ;;  %v642_v33 = vld [vmem:[%s1223_s0 + $0x70] sm:$0xff]  ;;  %v36_v34 = vld [vmem:[%s1223_s0 + $0x18] sm:$0xff] }
   0x9   :  { %715 = vmatprep.subr.bf16.mxu0 %v819_v0  ;;  %742 = vmatprep.subr.bf16.mxu1 %v819_v0  ;;  %v35_v35 = vld [vmem:[%s1223_s0 + $0x10] sm:$0xff]  ;;  %v645_v36 = vld [vmem:[%s1223_s0 + $0x88] sm:$0xff]  ;;  %v644_v37 = vld [vmem:[%s1223_s0 + $0x80] sm:$0xff] }
   0xa   :  { %v38_v38 = vld [vmem:[%s1223_s0 + $0x28] sm:$0xff]  ;;  %v37_v39 = vld [vmem:[%s1223_s0 + $0x20] sm:$0xff]  ;;  %v647_v40 = vld [vmem:[%s1223_s0 + $0x98] sm:$0xff] }
   0xb   :  { %v646_v41 = vld [vmem:[%s1223_s0 + $0x90] sm:$0xff]  ;;  %v40_v42 = vld [vmem:[%s1223_s0 + $0x38] sm:$0xff]  ;;  %v649_v44 = vld [vmem:[%s1223_s0 + $0xa8] sm:$0xff] }
   0xc   :  { %717 = vmatpush1.bf16.msra.mxu0 %v874_v10  ;;  %744 = vmatpush1.bf16.msra.mxu1 %v874_v10  ;;  %v39_v43 = vld [vmem:[%s1223_s0 + $0x30] sm:$0xff]  ;;  %v648_v45 = vld [vmem:[%s1223_s0 + $0xa0] sm:$0xff]  ;;  %v42_v46 = vld [vmem:[%s1223_s0 + $0x48] sm:$0xff] }
   0xd   :  { %718 = vmatprep.subr.bf16.mxu0 %v819_v0  ;;  %745 = vmatprep.subr.bf16.mxu1 %v819_v0  ;;  %v41_v47 = vld [vmem:[%s1223_s0 + $0x40] sm:$0xff]  ;;  %v651_v48 = vld [vmem:[%s1223_s0 + $0xb8] sm:$0xff]  ;;  %v650_v49 = vld [vmem:[%s1223_s0 + $0xb0] sm:$0xff] }
   0xe   :  { %v44_v50 = vld [vmem:[%s1223_s0 + $0x58] sm:$0xff]  ;;  %v43_v51 = vld [vmem:[%s1223_s0 + $0x50] sm:$0xff]  ;;  %v653_v52 = vld [vmem:[%s1223_s0 + $0xc8] sm:$0xff] }
   0xf   :  { %v652_v53 = vld [vmem:[%s1223_s0 + $0xc0] sm:$0xff]  ;;  %v46_v54 = vld [vmem:[%s1223_s0 + $0x68] sm:$0x3]  ;;  %v655_v56 = vld [vmem:[%s1223_s0 + $0xd8] sm:$0x3] }
  0x10   :  { %720 = vmatpush1.bf16.msra.mxu0 %v891_v14  ;;  %747 = vmatpush1.bf16.msra.mxu1 %v891_v14  ;;  %v45_v55 = vld [vmem:[%s1223_s0 + $0x60] sm:$0x3]  ;;  %v654_v57 = vld [vmem:[%s1223_s0 + $0xd0] sm:$0x3]  ;;  %v665_v58 = vld [vmem:[%s1223_s0 + $0xe8] sm:$0xff] }
  0x11   :  { %721 = vmatprep.subr.bf16.mxu0 %v819_v0  ;;  %748 = vmatprep.subr.bf16.mxu1 %v819_v0  ;;  %v687_v59 = vld [vmem:[%s1223_s0 + $0x158] sm:$0xff]  ;;  %v664_v60 = vld [vmem:[%s1223_s0 + $0xe0] sm:$0xff]  ;;  %v686_v62 = vld [vmem:[%s1223_s0 + $0x150] sm:$0xff] }
  0x12   :  { %v667_v61 = vld [vmem:[%s1223_s0 + $0xf8] sm:$0xff]  ;;  %v689_v63 = vld [vmem:[%s1223_s0 + $0x168] sm:$0xff]  ;;  %v688_v2 = vld [vmem:[%s1223_s0 + $0x160] sm:$0xff] }
  0x13   :  { %v669_v1 = vld [vmem:[%s1223_s0 + $0x108] sm:$0xff]  ;;  %v691_v3 = vld [vmem:[%s1223_s0 + $0x178] sm:$0xff]  ;;  %v670_v8 = vld [vmem:[%s1223_s0 + $0x110] sm:$0xff] }
  0x14   :  { %723 = vmatpush1.bf16.msra.mxu0 %v903_v17  ;;  %750 = vmatpush1.bf16.msra.mxu1 %v903_v17  ;;  %v671_v5 = vld [vmem:[%s1223_s0 + $0x118] sm:$0xff]  ;;  %v693_v7 = vld [vmem:[%s1223_s0 + $0x188] sm:$0xff]  ;;  %v672_v12 = vld [vmem:[%s1223_s0 + $0x120] sm:$0xff] }
  0x15   :  { %724 = vmatprep.subr.bf16.mxu0 %v819_v0  ;;  %751 = vmatprep.subr.bf16.mxu1 %v819_v0  ;;  %v673_v9 = vld [vmem:[%s1223_s0 + $0x128] sm:$0xff]  ;;  %v695_v11 = vld [vmem:[%s1223_s0 + $0x198] sm:$0xff]  ;;  %v674_v16 = vld [vmem:[%s1223_s0 + $0x130] sm:$0xff] }
  0x16   :  { %v675_v13 = vld [vmem:[%s1223_s0 + $0x138] sm:$0xff]  ;;  %v697_v15 = vld [vmem:[%s1223_s0 + $0x1a8] sm:$0xff]  ;;  %v696_v18 = vld [vmem:[%s1223_s0 + $0x1a0] sm:$0xff] }
  0x17   :  { %v699_v19 = vld [vmem:[%s1223_s0 + $0x1b8] sm:$0x3]  ;;  %v698_v21 = vld [vmem:[%s1223_s0 + $0x1b0] sm:$0x3] }
  0x18   :  { %726 = vmatpush1.bf16.msra.mxu0 %v915_v20  ;;  %753 = vmatpush1.bf16.msra.mxu1 %v915_v20 }
  0x19   :  { %727 = vmatprep.subr.bf16.mxu0 %v819_v0  ;;  %754 = vmatprep.subr.bf16.mxu1 %v819_v0 }
  0x1c   :  { %729 = vmatpush1.bf16.msra.mxu0 %v927_v23  ;;  %756 = vmatpush1.bf16.msra.mxu1 %v927_v23 }
  0x1d   :  { %730 = vmatprep.subr.bf16.mxu0 %v819_v0  ;;  %757 = vmatprep.subr.bf16.mxu1 %v819_v0 }
  0x20   :  { %732 = vmatpush1.bf16.msra.mxu0 %v939_v26  ;;  %759 = vmatpush1.bf16.msra.mxu1 %v939_v26 }
  0x21   :  { %733 = vmatprep.subr.bf16.mxu0 %v819_v0  ;;  %760 = vmatprep.subr.bf16.mxu1 %v819_v0 }
  0x24   :  { %735 = vmatpush1.bf16.msra.mxu0 %v951_v29  ;;  %762 = vmatpush1.bf16.msra.mxu1 %v951_v29 }
  0x25   :  { %109 = vmatprep.subr.mxu0 %v820_v30  ;;  %245 = vmatprep.subr.mxu1 %v820_v30 }
  0x28   :  { %634 = vmatpush1.msk.msra.mxu0 %vm69_vm1, %v961_v31  ;;  %656 = vmatpush1.msk.msra.mxu1 %vm69_vm1, %v961_v31 }
  0x29   :  { %138 = vmatmul.mubr.f32.vlgmr.msra.gmra.mrb[0].mxu0 %v33_v32  ;;  %763 = vmatprep.subr.bf16.mxu0 %v819_v0 }
  0x2a   :  { %274 = vmatmul.mubr.f32.vlgmr.msra.gmra.mrb[0].mxu1 %v642_v33  ;;  %765 = vmatpush1.bf16.msra.mxu0 %v852_v4 }
  0x2b   :  { %790 = vmatprep.subr.bf16.mxu1 %v819_v0  ;;  %766 = vmatprep.subr.bf16.mxu0 %v819_v0 }
  0x2c   :  { %792 = vmatpush1.bf16.msra.mxu1 %v852_v4  ;;  %636 = vmatprep.mubr.msk.f32.mxu0 %vm47_vm0, %v36_v34  ;;  %v668_v4 = vld [vmem:[%s1223_s0 + $0x100] sm:$0xff] }
  0x2d   :  { %793 = vmatprep.subr.bf16.mxu1 %v819_v0  ;;  %143 = vmatmul.mubr.f32.gmra.mrb[2].mxu0 %v35_v35 }
  0x2e   :  { %768 = vmatpush1.bf16.msra.mxu0 %v859_v6  ;;  %658 = vmatprep.mubr.msk.f32.mxu1 %vm47_vm0, %v645_v36 }
  0x2f   :  { %769 = vmatprep.subr.bf16.mxu0 %v819_v0  ;;  %279 = vmatmul.mubr.f32.gmra.mrb[2].mxu1 %v644_v37 }
  0x30   :  { %795 = vmatpush1.bf16.msra.mxu1 %v859_v6  ;;  %637 = vmatprep.mubr.msk.f32.mxu0 %vm47_vm0, %v38_v38  ;;  %v690_v6 = vld [vmem:[%s1223_s0 + $0x170] sm:$0xff] }
  0x31   :  { %796 = vmatprep.subr.bf16.mxu1 %v819_v0  ;;  %148 = vmatmul.mubr.f32.gmra.mrb[4].mxu0 %v37_v39 }
  0x32   :  { %771 = vmatpush1.bf16.msra.mxu0 %v874_v10  ;;  %659 = vmatprep.mubr.msk.f32.mxu1 %vm47_vm0, %v647_v40 }
  0x33   :  { %772 = vmatprep.subr.bf16.mxu0 %v819_v0  ;;  %284 = vmatmul.mubr.f32.gmra.mrb[4].mxu1 %v646_v41 }
  0x34   :  { %798 = vmatpush1.bf16.msra.mxu1 %v874_v10  ;;  %638 = vmatprep.mubr.msk.f32.mxu0 %vm47_vm0, %v40_v42  ;;  %v692_v10 = vld [vmem:[%s1223_s0 + $0x180] sm:$0xff] }
  0x35   :  { %799 = vmatprep.subr.bf16.mxu1 %v819_v0  ;;  %153 = vmatmul.mubr.f32.gmra.mrb[6].mxu0 %v39_v43 }
  0x36   :  { %774 = vmatpush1.bf16.msra.mxu0 %v891_v14  ;;  %660 = vmatprep.mubr.msk.f32.mxu1 %vm47_vm0, %v649_v44 }
  0x37   :  { %775 = vmatprep.subr.bf16.mxu0 %v819_v0  ;;  %289 = vmatmul.mubr.f32.gmra.mrb[6].mxu1 %v648_v45 }
  0x38   :  { %801 = vmatpush1.bf16.msra.mxu1 %v891_v14  ;;  %639 = vmatprep.mubr.msk.f32.mxu0 %vm47_vm0, %v42_v46  ;;  %v694_v14 = vld [vmem:[%s1223_s0 + $0x190] sm:$0xff] }
  0x39   :  { %802 = vmatprep.subr.bf16.mxu1 %v819_v0  ;;  %158 = vmatmul.mubr.f32.gmra.mrb[8].mxu0 %v41_v47 }
  0x3a   :  { %777 = vmatpush1.bf16.msra.mxu0 %v903_v17  ;;  %661 = vmatprep.mubr.msk.f32.mxu1 %vm47_vm0, %v651_v48 }
  0x3b   :  { %778 = vmatprep.subr.bf16.mxu0 %v819_v0  ;;  %294 = vmatmul.mubr.f32.gmra.mrb[8].mxu1 %v650_v49 }
  0x3c   :  { %804 = vmatpush1.bf16.msra.mxu1 %v903_v17  ;;  %640 = vmatprep.mubr.msk.f32.mxu0 %vm47_vm0, %v44_v50  ;;  %v677_v17 = vld [vmem:[%s1223_s0 + $0x148] sm:$0x3] }
  0x3d   :  { %805 = vmatprep.subr.bf16.mxu1 %v819_v0  ;;  %163 = vmatmul.mubr.f32.gmra.mrb[10].mxu0 %v43_v51 }
  0x3e   :  { %780 = vmatpush1.bf16.msra.mxu0 %v915_v20  ;;  %662 = vmatprep.mubr.msk.f32.mxu1 %vm47_vm0, %v653_v52 }
  0x3f   :  { %781 = vmatprep.subr.bf16.mxu0 %v819_v0  ;;  %299 = vmatmul.mubr.f32.gmra.mrb[10].mxu1 %v652_v53 }
  0x40   :  { %807 = vmatpush1.bf16.msra.mxu1 %v915_v20  ;;  %641 = vmatprep.mubr.msk.f32.mxu0 %vm47_vm0, %v46_v54  ;;  %v676_v20 = vld [vmem:[%s1223_s0 + $0x140] sm:$0x3] }
  0x41   :  { %808 = vmatprep.subr.bf16.mxu1 %v819_v0  ;;  %168 = vmatmul.mubr.f32.gmra.mrb[12].mxu0 %v45_v55 }
  0x42   :  { %783 = vmatpush1.bf16.msra.mxu0 %v927_v23  ;;  %663 = vmatprep.mubr.msk.f32.mxu1 %vm47_vm0, %v655_v56 }
  0x43   :  { %784 = vmatprep.subr.bf16.mxu0 %v819_v0  ;;  %304 = vmatmul.mubr.f32.gmra.mrb[12].mxu1 %v654_v57 }
  0x44   :  { %810 = vmatpush1.bf16.msra.mxu1 %v927_v23  ;;  %679 = vmatprep.mubr.msk.f32.mxu0 %vm47_vm0, %v665_v58 }
  0x45   :  { %811 = vmatprep.subr.bf16.mxu1 %v819_v0  ;;  %701 = vmatprep.mubr.msk.f32.mxu1 %vm47_vm0, %v687_v59 }
  0x46   :  { %786 = vmatpush1.bf16.msra.mxu0 %v939_v26 }
  0x47   :  { %787 = vmatprep.subr.bf16.mxu0 %v819_v0 }
  0x48   :  { %813 = vmatpush1.bf16.msra.mxu1 %v939_v26 }
  0x49   :  { %814 = vmatprep.subr.bf16.mxu1 %v819_v0  ;;  %v666_v0 = vld [vmem:[%s1223_s0 + $0xf0] sm:$0xff] }
  0x4a   :  { %789 = vmatpush1.bf16.msra.mxu0 %v951_v29 }
  0x4b   :  { %388 = vmatprep.subr.mxu0 %v820_v30 }
  0x4c   :  { %816 = vmatpush1.bf16.msra.mxu1 %v951_v29 }
  0x4d   :  { %531 = vmatprep.subr.mxu1 %v820_v30 }
  0x4e   :  { %678 = vmatpush1.msk.msra.mxu0 %vm69_vm1, %v961_v31 }
  0x4f   :  { %417 = vmatmul.mubr.f32.vlgmr.msra.gmra.mrb[14].mxu0 %v664_v60 }
  0x50   :  { %700 = vmatpush1.msk.msra.mxu1 %vm69_vm1, %v961_v31  ;;  %680 = vmatprep.mubr.msk.f32.mxu0 %vm47_vm0, %v667_v61  ;;  %v708_v61 = vld [vmem:[%s1224_s2] ss:$0 sm:$0xff] }
  0x51   :  { %560 = vmatmul.mubr.f32.vlgmr.msra.gmra.mrb[14].mxu1 %v686_v62 }
  0x52   :  { %702 = vmatprep.mubr.msk.f32.mxu1 %vm47_vm0, %v689_v63 }
  0x53   :  { %422 = vmatmul.mubr.f32.gmra.mrb[16].mxu0 %v666_v0 }
  0x54   :  { %681 = vmatprep.mubr.msk.f32.mxu0 %vm47_vm0, %v669_v1 }
  0x55   :  { %565 = vmatmul.mubr.f32.gmra.mrb[16].mxu1 %v688_v2 }
  0x56   :  { %703 = vmatprep.mubr.msk.f32.mxu1 %vm47_vm0, %v691_v3 }
  0x57   :  { %427 = vmatmul.mubr.f32.gmra.mrb[18].mxu0 %v668_v4 }
  0x58   :  { %682 = vmatprep.mubr.msk.f32.mxu0 %vm47_vm0, %v671_v5 }
  0x59   :  { %570 = vmatmul.mubr.f32.gmra.mrb[18].mxu1 %v690_v6 }
  0x5a   :  { %704 = vmatprep.mubr.msk.f32.mxu1 %vm47_vm0, %v693_v7 }
  0x5b   :  { %432 = vmatmul.mubr.f32.gmra.mrb[20].mxu0 %v670_v8 }
  0x5c   :  { %683 = vmatprep.mubr.msk.f32.mxu0 %vm47_vm0, %v673_v9 }
  0x5d   :  { %575 = vmatmul.mubr.f32.gmra.mrb[20].mxu1 %v692_v10 }
  0x5e   :  { %705 = vmatprep.mubr.msk.f32.mxu1 %vm47_vm0, %v695_v11 }
  0x5f   :  { %437 = vmatmul.mubr.f32.gmra.mrb[22].mxu0 %v672_v12 }
  0x60   :  { %684 = vmatprep.mubr.msk.f32.mxu0 %vm47_vm0, %v675_v13 }
  0x61   :  { %580 = vmatmul.mubr.f32.gmra.mrb[22].mxu1 %v694_v14 }
  0x62   :  { %706 = vmatprep.mubr.msk.f32.mxu1 %vm47_vm0, %v697_v15 }
  0x63   :  { %442 = vmatmul.mubr.f32.gmra.mrb[24].mxu0 %v674_v16 }
  0x64   :  { %685 = vmatprep.mubr.msk.f32.mxu0 %vm47_vm0, %v677_v17 }
  0x65   :  { %585 = vmatmul.mubr.f32.gmra.mrb[24].mxu1 %v696_v18 }
  0x66   :  { %707 = vmatprep.mubr.msk.f32.mxu1 %vm47_vm0, %v699_v19 }
  0x67   :  { %447 = vmatmul.mubr.f32.gmra.mrb[26].mxu0 %v676_v20 }
  0x69   :  { %590 = vmatmul.mubr.f32.gmra.mrb[26].mxu1 %v698_v21 }
  0xfc   :  { %v139_v22 = vpop.f32.mrb[0].mxu0 }
  0xfd   :  { %v141_v23 = vpop.f32.mrb[1].mxu0  ;;  %v275_v24 = vpop.f32.mrb[0].mxu1 }
  0xfe   :  { %v309_v25 = vmax.f32 %v139_v22, %v275_v24  ;;  %v277_v26 = vpop.f32.mrb[1].mxu1 }
 0x100   :  { %v144_v27 = vpop.f32.mrb[2].mxu0 }
 0x101   :  { %v146_v28 = vpop.f32.mrb[3].mxu0 }
 0x102   :  { %v280_v29 = vpop.f32.mrb[2].mxu1 }
 0x103   :  { %v310_v30 = vmax.f32 %v144_v27, %v280_v29  ;;  %v282_v31 = vpop.f32.mrb[3].mxu1 }
 0x104   :  { %v149_v32 = vpop.f32.mrb[4].mxu0 }
 0x105   :  { %v151_v33 = vpop.f32.mrb[5].mxu0 }
 0x106   :  { %v285_v34 = vpop.f32.mrb[4].mxu1 }
 0x107   :  { %v311_v35 = vmax.f32 %v149_v32, %v285_v34  ;;  %v287_v36 = vpop.f32.mrb[5].mxu1 }
 0x108   :  { %v154_v37 = vpop.f32.mrb[6].mxu0 }
 0x109   :  { %v156_v38 = vpop.f32.mrb[7].mxu0 }
 0x10a   :  { %v290_v39 = vpop.f32.mrb[6].mxu1 }
 0x10b   :  { %v312_v40 = vmax.f32 %v154_v37, %v290_v39  ;;  %v292_v41 = vpop.f32.mrb[7].mxu1 }
 0x10c   :  { %v159_v42 = vpop.f32.mrb[8].mxu0 }
 0x10d   :  { %v161_v43 = vpop.f32.mrb[9].mxu0 }
 0x10e   :  { %v295_v44 = vpop.f32.mrb[8].mxu1 }
 0x10f   :  { %v313_v45 = vmax.f32 %v159_v42, %v295_v44  ;;  %v297_v46 = vpop.f32.mrb[9].mxu1 }
 0x110   :  { %v164_v47 = vpop.f32.mrb[10].mxu0 }
 0x111   :  { %v166_v48 = vpop.f32.mrb[11].mxu0 }
 0x112   :  { %v300_v49 = vpop.f32.mrb[10].mxu1 }
 0x113   :  { %v314_v50 = vmax.f32 %v164_v47, %v300_v49  ;;  %v302_v51 = vpop.f32.mrb[11].mxu1 }
 0x114   :  { %v169_v52 = vpop.f32.mrb[12].mxu0 }
 0x115   :  { %v171_v53 = vpop.f32.mrb[13].mxu0 }
 0x116   :  { %v305_v54 = vpop.f32.mrb[12].mxu1 }
 0x117   :  { %v315_v55 = vmax.f32 %v169_v52, %v305_v54  ;;  %v307_v56 = vpop.f32.mrb[13].mxu1 }
 0x122   :  { %v418_v57 = vpop.f32.mrb[14].mxu0 }
 0x123   :  { %v452_v58 = vmax.f32 %v309_v25, %v418_v57  ;;  %v420_v59 = vpop.f32.mrb[15].mxu0 }
 0x124   :  { %v561_v60 = vpop.f32.mrb[14].mxu1 }
 0x125   :  { %v595_v62 = vmax.f32 %v452_v58, %v561_v60  ;;  %v563_v63 = vpop.f32.mrb[15].mxu1 }
 0x126   :  { %v423_v0 = vpop.f32.mrb[16].mxu0 }
 0x127   :  { %v609_v1 = vadd.f32 %v708_v61, %v595_v62  ;;  %v453_v2 = vmax.f32 %v310_v30, %v423_v0  ;;  %v425_v3 = vpop.f32.mrb[17].mxu0 }
 0x128   :  { %v566_v4 = vpop.f32.mrb[16].mxu1 }
 0x129   :  { %v616_v5 = vmax.f32 %v609_v1, 0.0  ;;  %v596_v6 = vmax.f32 %v453_v2, %v566_v4  ;;  %v568_v7 = vpop.f32.mrb[17].mxu1 }
 0x12a   :  { %v428_v8 = vpop.f32.mrb[18].mxu0 }
 0x12b   :  { %623 = vst [vmem:[%s1225_s3] sm:$0xff] %v616_v5  ;;  %v610_v9 = vadd.f32 %v708_v61, %v596_v6  ;;  %v454_v10 = vmax.f32 %v311_v35, %v428_v8  ;;  %v430_v11 = vpop.f32.mrb[19].mxu0 }
 0x12c   :  { %v571_v12 = vpop.f32.mrb[18].mxu1 }
 0x12d   :  { %v617_v13 = vmax.f32 %v610_v9, 0.0  ;;  %v597_v14 = vmax.f32 %v454_v10, %v571_v12  ;;  %v573_v15 = vpop.f32.mrb[19].mxu1 }
 0x12e   :  { %v433_v16 = vpop.f32.mrb[20].mxu0 }
 0x12f   :  { %624 = vst [vmem:[%s1225_s3 + $0x8] sm:$0xff] %v617_v13  ;;  %v611_v17 = vadd.f32 %v708_v61, %v597_v14  ;;  %v455_v18 = vmax.f32 %v312_v40, %v433_v16  ;;  %v435_v19 = vpop.f32.mrb[21].mxu0 }
 0x130   :  { %v576_v20 = vpop.f32.mrb[20].mxu1 }
 0x131   :  { %v618_v21 = vmax.f32 %v611_v17, 0.0  ;;  %v598_v22 = vmax.f32 %v455_v18, %v576_v20  ;;  %v578_v23 = vpop.f32.mrb[21].mxu1 }
 0x132   :  { %v438_v24 = vpop.f32.mrb[22].mxu0 }
 0x133   :  { %625 = vst [vmem:[%s1225_s3 + $0x10] sm:$0xff] %v618_v21  ;;  %v612_v25 = vadd.f32 %v708_v61, %v598_v22  ;;  %v456_v26 = vmax.f32 %v313_v45, %v438_v24  ;;  %v440_v27 = vpop.f32.mrb[23].mxu0 }
 0x134   :  { %v581_v28 = vpop.f32.mrb[22].mxu1 }
 0x135   :  { %v619_v29 = vmax.f32 %v612_v25, 0.0  ;;  %v599_v30 = vmax.f32 %v456_v26, %v581_v28  ;;  %v583_v31 = vpop.f32.mrb[23].mxu1 }
 0x136   :  { %v443_v32 = vpop.f32.mrb[24].mxu0 }
 0x137   :  { %626 = vst [vmem:[%s1225_s3 + $0x18] sm:$0xff] %v619_v29  ;;  %v613_v33 = vadd.f32 %v708_v61, %v599_v30  ;;  %v457_v34 = vmax.f32 %v314_v50, %v443_v32  ;;  %v445_v35 = vpop.f32.mrb[25].mxu0 }
 0x138   :  { %v586_v36 = vpop.f32.mrb[24].mxu1 }
 0x139   :  { %v620_v37 = vmax.f32 %v613_v33, 0.0  ;;  %v600_v38 = vmax.f32 %v457_v34, %v586_v36  ;;  %v588_v39 = vpop.f32.mrb[25].mxu1 }
 0x13a   :  { %v448_v40 = vpop.f32.mrb[26].mxu0 }
 0x13b   :  { %627 = vst [vmem:[%s1225_s3 + $0x20] sm:$0xff] %v620_v37  ;;  %v614_v41 = vadd.f32 %v708_v61, %v600_v38  ;;  %v458_v42 = vmax.f32 %v315_v55, %v448_v40  ;;  %v450_v43 = vpop.f32.mrb[27].mxu0 }
 0x13c   :  { %v591_v44 = vpop.f32.mrb[26].mxu1 }
 0x13d   :  { %v621_v45 = vmax.f32 %v614_v41, 0.0  ;;  %v601_v46 = vmax.f32 %v458_v42, %v591_v44  ;;  %v593_v47 = vpop.f32.mrb[27].mxu1 }
 0x13f   :  { %628 = vst [vmem:[%s1225_s3 + $0x28] sm:$0xff] %v621_v45  ;;  %v615_v48 = vadd.f32 %v708_v61, %v601_v46 }
 0x141   :  { %v622_v49 = vmax.f32 %v615_v48, 0.0 }
 0x143   :  { %629 = vst [vmem:[%s1225_s3 + $0x30] sm:$0x3] %v622_v49 }

// kernel: lenet_forward.5
= control target key start
LH: loop header
LB: loop body
LE: loop exit
PB: predicated region body
PF: predicated region fallthrough
CT: control target
= control target key end

     0   :  { %v732_v4 = vmov 0.0|0.0   ;;  %v733_v26 = vmov 1983009808   ;;  %v90_v28 = vlaneseq  ;;  %vm106_vm0 = vcmask 130048   ;;  %s1072_s0 = inlined_call_operand.vmem [shape: f32[2,400], index: 0, kind: input, shape index: {}]   ;;  %s1073_s1 = inlined_call_operand.vmem [shape: f32[400,128], index: 1, kind: input, shape index: {}]   ;;  %s1074_s2 = inlined_call_operand.vmem [shape: f32[1,128], index: 2, kind: input, shape index: {}]   ;;  %s1075_s3 = inlined_call_operand.vmem [shape: f32[128,128], index: 3, kind: input, shape index: {}]   ;;  %s1076_s4 = inlined_call_operand.vmem [shape: f32[1,128], index: 4, kind: input, shape index: {}]   ;;  %s1077_s5 = inlined_call_operand.vmem [shape: f32[128,128], index: 5, kind: input, shape index: {}]   ;;  %s1078_s6 = inlined_call_operand.vmem [shape: f32[1,128], index: 6, kind: input, shape index: {}]   ;;  %s1079_s7 = inlined_call_operand.hbm [shape: f32[2,128], index: 7, kind: output, shape index: {}]  }
   0x1   :  { %v44_v0 = vld [vmem:[%s1073_s1 + $0x80] sm:$0xff]  ;;  %v45_v1 = vld [vmem:[%s1073_s1 + $0x88] sm:$0xff]  ;;  %627 = vmatprep.subr.bf16.mxu1 %v732_v4  ;;  %v46_v10 = vld [vmem:[%s1073_s1 + $0x90] sm:$0xff]  ;;  %v88_v27 = vunpack.c.l.s4 %v733_v26 }
   0x2   :  { %v28_v2 = vld [vmem:[%s1073_s1] sm:$0xff]  ;;  %v595_v3 = vpack.c.bf16 %v45_v1, %v44_v0  ;;  %v29_v5 = vld [vmem:[%s1073_s1 + $0x8] sm:$0xff]  ;;  %v47_v11 = vld [vmem:[%s1073_s1 + $0x98] sm:$0xff]  ;;  %v91_v39 = vshrl.u32 %v90_v28, 7 }
   0x3   :  { %v60_v6 = vld [vmem:[%s1073_s1 + $0x100] sm:$0xff]  ;;  %v61_v7 = vld [vmem:[%s1073_s1 + $0x108] sm:$0xff]  ;;  %v597_v8 = vpack.c.bf16 %v29_v5, %v28_v2  ;;  %v30_v12 = vld [vmem:[%s1073_s1 + $0x10] sm:$0xff]  ;;  %v599_v13 = vpack.c.bf16 %v47_v11, %v46_v10  ;;  %v89_v38 = vunpack.c.0.s8 %v88_v27 }
   0x4   :  { %v628_v9 = vpack.c.bf16 %v61_v7, %v60_v6  ;;  %596 = vmatprep.subr.bf16.mxu0 %v595_v3  ;;  %v31_v14 = vld [vmem:[%s1073_s1 + $0x18] sm:$0xff]  ;;  %v62_v15 = vld [vmem:[%s1073_s1 + $0x110] sm:$0xff]  ;;  %v48_v19 = vld [vmem:[%s1073_s1 + $0xa0] sm:$0xff] }
   0x5   :  { %v63_v16 = vld [vmem:[%s1073_s1 + $0x118] sm:$0xff]  ;;  %598 = vmatpush3.bf16.msra.mxu0 %v597_v8  ;;  %v601_v17 = vpack.c.bf16 %v31_v14, %v30_v12  ;;  %v49_v20 = vld [vmem:[%s1073_s1 + $0xa8] sm:$0xff]  ;;  %v32_v21 = vld [vmem:[%s1073_s1 + $0x20] sm:$0xff]  ;;  %v92_v49 = vsub.s32 %v89_v38, %v91_v39 }
   0x6   :  { %629 = vmatpush1.bf16.msra.mxu1 %v628_v9  ;;  %v631_v18 = vpack.c.bf16 %v63_v16, %v62_v15  ;;  %600 = vmatprep.subr.bf16.mxu0 %v599_v13  ;;  %v603_v22 = vpack.c.bf16 %v49_v20, %v48_v19  ;;  %v33_v23 = vld [vmem:[%s1073_s1 + $0x28] sm:$0xff]  ;;  %v64_v24 = vld [vmem:[%s1073_s1 + $0x120] sm:$0xff]  ;;  %v50_v29 = vld [vmem:[%s1073_s1 + $0xb0] sm:$0xff] }
   0x7   :  { %630 = vmatprep.subr.bf16.mxu1 %v732_v4  ;;  %v65_v25 = vld [vmem:[%s1073_s1 + $0x128] sm:$0xff]  ;;  %v51_v30 = vld [vmem:[%s1073_s1 + $0xb8] sm:$0xff]  ;;  %v605_v31 = vpack.c.bf16 %v33_v23, %v32_v21  ;;  %v34_v33 = vld [vmem:[%s1073_s1 + $0x30] sm:$0xff] }
   0x8   :  { %v634_v32 = vpack.c.bf16 %v65_v25, %v64_v24  ;;  %v607_v34 = vpack.c.bf16 %v51_v30, %v50_v29  ;;  %v35_v35 = vld [vmem:[%s1073_s1 + $0x38] sm:$0xff]  ;;  %v66_v36 = vld [vmem:[%s1073_s1 + $0x130] sm:$0xff]  ;;  %v52_v40 = vld [vmem:[%s1073_s1 + $0xc0] sm:$0xff] }
   0x9   :  { %602 = vmatpush3.bf16.msra.mxu0 %v601_v17  ;;  %v67_v37 = vld [vmem:[%s1073_s1 + $0x138] sm:$0xff]  ;;  %v53_v41 = vld [vmem:[%s1073_s1 + $0xc8] sm:$0xff]  ;;  %v609_v42 = vpack.c.bf16 %v35_v35, %v34_v33  ;;  %v36_v44 = vld [vmem:[%s1073_s1 + $0x40] sm:$0xff] }
   0xa   :  { %632 = vmatpush1.bf16.msra.mxu1 %v631_v18  ;;  %604 = vmatprep.subr.bf16.mxu0 %v603_v22  ;;  %v637_v43 = vpack.c.bf16 %v67_v37, %v66_v36  ;;  %v611_v45 = vpack.c.bf16 %v53_v41, %v52_v40  ;;  %v37_v46 = vld [vmem:[%s1073_s1 + $0x48] sm:$0xff]  ;;  %v68_v47 = vld [vmem:[%s1073_s1 + $0x140] sm:$0xff]  ;;  %v54_v50 = vld [vmem:[%s1073_s1 + $0xd0] sm:$0xff] }
   0xb   :  { %633 = vmatprep.subr.bf16.mxu1 %v732_v4  ;;  %v69_v48 = vld [vmem:[%s1073_s1 + $0x148] sm:$0xff]  ;;  %v55_v51 = vld [vmem:[%s1073_s1 + $0xd8] sm:$0xff]  ;;  %v613_v52 = vpack.c.bf16 %v37_v46, %v36_v44  ;;  %v38_v54 = vld [vmem:[%s1073_s1 + $0x50] sm:$0xff] }
   0xc   :  { %v640_v53 = vpack.c.bf16 %v69_v48, %v68_v47  ;;  %v27_v55 = vld [vmem:[%s1072_s0] sm:$0xff]  ;;  %v615_v56 = vpack.c.bf16 %v55_v51, %v54_v50  ;;  %v39_v57 = vld [vmem:[%s1073_s1 + $0x58] sm:$0xff]  ;;  %v70_v58 = vld [vmem:[%s1073_s1 + $0x150] sm:$0xff] }
   0xd   :  { %606 = vmatpush3.bf16.msra.mxu0 %v605_v31  ;;  %v71_v59 = vld [vmem:[%s1073_s1 + $0x158] sm:$0xff]  ;;  %v86_v60 = vcombine.high %v27_v55, %v27_v55  ;;  %v93_v61 = vrot.slane %v27_v55, %v92_v49  ;;  %v56_v62 = vld [vmem:[%s1073_s1 + $0xe0] sm:$0xff]  ;;  %v57_v63 = vld [vmem:[%s1073_s1 + $0xe8] sm:$0xff]  ;;  %v617_v2 = vpack.c.bf16 %v39_v57, %v38_v54 }
   0xe   :  { %635 = vmatpush1.bf16.msra.mxu1 %v634_v32  ;;  %608 = vmatprep.subr.bf16.mxu0 %v607_v34  ;;  %v643_v3 = vpack.c.bf16 %v71_v59, %v70_v58  ;;  %v40_v5 = vld [vmem:[%s1073_s1 + $0x60] sm:$0xff]  ;;  %v41_v6 = vld [vmem:[%s1073_s1 + $0x68] sm:$0xff]  ;;  %v619_v7 = vpack.c.bf16 %v57_v63, %v56_v62 }
   0xf   :  { %636 = vmatprep.subr.bf16.mxu1 %v732_v4  ;;  %v101_v0 = vcombine.high %v93_v61, %v93_v61  ;;  %v100_v1 = vrot.slane %v86_v60, %v92_v49  ;;  %v72_v8 = vld [vmem:[%s1073_s1 + $0x160] sm:$0xff]  ;;  %v73_v9 = vld [vmem:[%s1073_s1 + $0x168] sm:$0xff] }
  0x11   :  { %610 = vmatpush3.bf16.msra.mxu0 %v609_v42  ;;  %v102_v10 = vcombine.high %v100_v1, %v100_v1 }
  0x12   :  { %638 = vmatpush1.bf16.msra.mxu1 %v637_v43  ;;  %612 = vmatprep.subr.bf16.mxu0 %v611_v45 }
  0x13   :  { %639 = vmatprep.subr.bf16.mxu1 %v732_v4 }
  0x15   :  { %614 = vmatpush3.bf16.msra.mxu0 %v613_v52 }
  0x16   :  { %641 = vmatpush1.bf16.msra.mxu1 %v640_v53  ;;  %616 = vmatprep.subr.bf16.mxu0 %v615_v56 }
  0x17   :  { %642 = vmatprep.subr.bf16.mxu1 %v732_v4 }
  0x18   :  { %12 = vsyncpa [#allocation3], 0  ;;  %v58_v11 = vld [vmem:[%s1073_s1 + $0xf0] sm:$0xff]  ;;  %v59_v12 = vld [vmem:[%s1073_s1 + $0xf8] sm:$0xff]  ;;  %173 = vmatprep.mubr.f32.mxu0 %v101_v0  ;;  %453 = vmatprep.mubr.msk.f32.mxu1 %vm106_vm0, %v102_v10  ;;  %v621_v13 = vpack.c.bf16 %v41_v6, %v40_v5  ;;  %v646_v14 = vpack.c.bf16 %v73_v9, %v72_v8  ;;  %vm734_vm1 = vmmov 0   ;;  %v735_v49 = vmov 0.0  }
  0x19   :  { %618 = vmatpush3.bf16.msra.mxu0 %v617_v2  ;;  %v42_v15 = vld [vmem:[%s1073_s1 + $0x70] sm:$0xff]  ;;  %v623_v16 = vpack.c.bf16 %v59_v12, %v58_v11  ;;  %v43_v17 = vld [vmem:[%s1073_s1 + $0x78] sm:$0xff]  ;;  %v76_v22 = vld [vmem:[%s1073_s1 + $0x180] sm:$0xff]  ;;  %s736_s25 = smov [#allocation2]  }
  0x1a   :  { %644 = vmatpush1.bf16.msra.mxu1 %v643_v3  ;;  %620 = vmatprep.subr.bf16.mxu0 %v619_v7  ;;  %v74_v18 = vld [vmem:[%s1073_s1 + $0x170] sm:$0xff]  ;;  %v75_v19 = vld [vmem:[%s1073_s1 + $0x178] sm:$0xff]  ;;  %v625_v20 = vpack.c.bf16 %v43_v17, %v42_v15  ;;  %v77_v23 = vld [vmem:[%s1073_s1 + $0x188] sm:$0xff]  ;;  %s444_s26 = sshll.u32 %s736_s25, 4  ;;  %s445_s26 = int_to_ptr.vmem [resolvable:$true] %s444_s26 }
  0x1b   :  { %645 = vmatprep.subr.bf16.mxu1 %v732_v4  ;;  %v649_v21 = vpack.c.bf16 %v75_v19, %v74_v18  ;;  %v250_v24 = vld [vmem:[%s1075_s3] sm:$0xff]  ;;  %v251_v25 = vld [vmem:[%s1075_s3 + $0x8] sm:$0xff]  ;;  %v652_v26 = vpack.c.bf16 %v77_v23, %v76_v22  ;;  %v252_v28 = vld [vmem:[%s1075_s3 + $0x10] sm:$0xff]  ;;  %p713_p1 = scmp.lt.s32.totalorder %s445_s26, %s445_s26 }
  0x1c   :  { %v655_v27 = vpack.c.bf16 %v251_v25, %v250_v24  ;;  %v253_v29 = vld [vmem:[%s1075_s3 + $0x18] sm:$0xff]  ;;  %v254_v31 = vld [vmem:[%s1075_s3 + $0x20] sm:$0xff]  ;;  %v255_v32 = vld [vmem:[%s1075_s3 + $0x28] sm:$0xff] }
  0x1d   :  { %622 = vmatpush3.bf16.msra.mxu0 %v621_v13  ;;  %v658_v30 = vpack.c.bf16 %v253_v29, %v252_v28  ;;  %v661_v33 = vpack.c.bf16 %v255_v32, %v254_v31  ;;  %v256_v34 = vld [vmem:[%s1075_s3 + $0x30] sm:$0xff]  ;;  %v257_v35 = vld [vmem:[%s1075_s3 + $0x38] sm:$0xff]  ;;  %v258_v37 = vld [vmem:[%s1075_s3 + $0x40] sm:$0xff] }
  0x1e   :  { %647 = vmatpush1.bf16.msra.mxu1 %v646_v14  ;;  %624 = vmatprep.subr.bf16.mxu0 %v623_v16  ;;  %v664_v36 = vpack.c.bf16 %v257_v35, %v256_v34  ;;  %v259_v38 = vld [vmem:[%s1075_s3 + $0x48] sm:$0xff]  ;;  %v260_v40 = vld [vmem:[%s1075_s3 + $0x50] sm:$0xff]  ;;  %v261_v41 = vld [vmem:[%s1075_s3 + $0x58] sm:$0xff] }
  0x1f   :  { %648 = vmatprep.subr.bf16.mxu1 %v732_v4  ;;  %v667_v39 = vpack.c.bf16 %v259_v38, %v258_v37  ;;  %v670_v42 = vpack.c.bf16 %v261_v41, %v260_v40  ;;  %v262_v43 = vld [vmem:[%s1075_s3 + $0x60] sm:$0xff]  ;;  %v263_v44 = vld [vmem:[%s1075_s3 + $0x68] sm:$0xff]  ;;  %v264_v46 = vld [vmem:[%s1075_s3 + $0x70] sm:$0xff] }
  0x20   :  { %v673_v45 = vpack.c.bf16 %v263_v44, %v262_v43  ;;  %v265_v47 = vld [vmem:[%s1075_s3 + $0x78] sm:$0xff]  ;;  %v344_v50 = vld [vmem:[%s1077_s5] sm:$0xff]  ;;  %v345_v51 = vld [vmem:[%s1077_s5 + $0x8] sm:$0xff] }
  0x21   :  { %626 = vmatpush3.bf16.msra.mxu0 %v625_v20  ;;  %v676_v48 = vpack.c.bf16 %v265_v47, %v264_v46  ;;  %v346_v52 = vld [vmem:[%s1077_s5 + $0x10] sm:$0xff]  ;;  %v679_v53 = vpack.c.bf16 %v345_v51, %v344_v50  ;;  %v347_v54 = vld [vmem:[%s1077_s5 + $0x18] sm:$0xff]  ;;  %v348_v56 = vld [vmem:[%s1077_s5 + $0x20] sm:$0xff] }
  0x22   :  { %650 = vmatpush1.bf16.msra.mxu1 %v649_v21  ;;  %654 = vmatprep.subr.bf16.mxu0 %v732_v4  ;;  %v682_v55 = vpack.c.bf16 %v347_v54, %v346_v52  ;;  %v349_v57 = vld [vmem:[%s1077_s5 + $0x28] sm:$0xff]  ;;  %v350_v59 = vld [vmem:[%s1077_s5 + $0x30] sm:$0xff]  ;;  %v351_v60 = vld [vmem:[%s1077_s5 + $0x38] sm:$0xff] }
  0x23   :  { %651 = vmatprep.subr.bf16.mxu1 %v732_v4  ;;  %v685_v58 = vpack.c.bf16 %v349_v57, %v348_v56  ;;  %v352_v62 = vld [vmem:[%s1077_s5 + $0x40] sm:$0xff]  ;;  %v353_v63 = vld [vmem:[%s1077_s5 + $0x48] sm:$0xff]  ;;  %v355_v2 = vld [vmem:[%s1077_s5 + $0x58] sm:$0xff] }
  0x24   :  { %174 = vmatmul.mubr.f32.vlgmr.msra.gmra.mrb[0].mxu0 %v93_v61  ;;  %v688_v61 = vpack.c.bf16 %v351_v60, %v350_v59  ;;  %v691_v0 = vpack.c.bf16 %v353_v63, %v352_v62  ;;  %v356_v5 = vld [vmem:[%s1077_s5 + $0x60] sm:$0xff]  ;;  %v357_v6 = vld [vmem:[%s1077_s5 + $0x68] sm:$0xff]  ;;  %v358_v17 = vld [vmem:[%s1077_s5 + $0x70] sm:$0xff] }
  0x25   :  { %656 = vmatpush3.bf16.msra.mxu0 %v655_v27  ;;  %557 = vmatprep.mubr.msk.f32.mxu0 %vm734_vm1, %v735_v49  ;;  %v697_v7 = vpack.c.bf16 %v357_v6, %v356_v5  ;;  %v452_v10 = vld [vmem:[%s1074_s2] ss:$0 sm:$0xff] }
  0x26   :  { %653 = vmatpush1.bf16.msra.mxu1 %v652_v26  ;;  %657 = vmatprep.subr.bf16.mxu0 %v732_v4  ;;  %v454_v19 = vld [vmem:[%s1076_s4] ss:$0 sm:$0xff] }
  0x27   :  { %678 = vmatprep.subr.bf16.mxu1 %v732_v4  ;;  %v455_v24 = vld [vmem:[%s1078_s6] ss:$0 sm:$0xff] }
  0x29   :  { %244 = vmatmul.mubr.f32.vlgmr.msra.gmra.mrb[0].mxu1 %v100_v1  ;;  %659 = vmatpush3.bf16.msra.mxu0 %v658_v30  ;;  %v354_v1 = vld [vmem:[%s1077_s5 + $0x50] sm:$0xff] }
  0x2a   :  { %660 = vmatprep.subr.bf16.mxu0 %v732_v4  ;;  %592 = vmatprep.mubr.msk.f32.mxu1 %vm734_vm1, %v735_v49  ;;  %v694_v3 = vpack.c.bf16 %v355_v2, %v354_v1 }
  0x2b   :  { %680 = vmatpush3.bf16.msra.mxu1 %v679_v53 }
  0x2c   :  { %681 = vmatprep.subr.bf16.mxu1 %v732_v4 }
  0x2d   :  { %662 = vmatpush3.bf16.msra.mxu0 %v661_v33 }
  0x2e   :  { %663 = vmatprep.subr.bf16.mxu0 %v732_v4 }
  0x2f   :  { %683 = vmatpush3.bf16.msra.mxu1 %v682_v55 }
  0x30   :  { %684 = vmatprep.subr.bf16.mxu1 %v732_v4 }
  0x31   :  { %665 = vmatpush3.bf16.msra.mxu0 %v664_v36 }
  0x32   :  { %666 = vmatprep.subr.bf16.mxu0 %v732_v4 }
  0x33   :  { %686 = vmatpush3.bf16.msra.mxu1 %v685_v58 }
  0x34   :  { %687 = vmatprep.subr.bf16.mxu1 %v732_v4 }
  0x35   :  { %668 = vmatpush3.bf16.msra.mxu0 %v667_v39 }
  0x36   :  { %669 = vmatprep.subr.bf16.mxu0 %v732_v4 }
  0x37   :  { %689 = vmatpush3.bf16.msra.mxu1 %v688_v61 }
  0x38   :  { %690 = vmatprep.subr.bf16.mxu1 %v732_v4 }
  0x39   :  { %671 = vmatpush3.bf16.msra.mxu0 %v670_v42 }
  0x3a   :  { %672 = vmatprep.subr.bf16.mxu0 %v732_v4 }
  0x3b   :  { %692 = vmatpush3.bf16.msra.mxu1 %v691_v0 }
  0x3c   :  { %693 = vmatprep.subr.bf16.mxu1 %v732_v4 }
  0x3d   :  { %674 = vmatpush3.bf16.msra.mxu0 %v673_v45 }
  0x3e   :  { %675 = vmatprep.subr.bf16.mxu0 %v732_v4 }
  0x3f   :  { %695 = vmatpush3.bf16.msra.mxu1 %v694_v3 }
  0x40   :  { %696 = vmatprep.subr.bf16.mxu1 %v732_v4 }
  0x41   :  { %677 = vmatpush3.bf16.msra.mxu0 %v676_v48 }
  0x43   :  { %698 = vmatpush3.bf16.msra.mxu1 %v697_v7 }
  0x44   :  { %699 = vmatprep.subr.bf16.mxu1 %v732_v4  ;;  %v359_v4 = vld [vmem:[%s1077_s5 + $0x78] sm:$0xff]  ;;  %s708_s5 = scalar_lea.vmem %s445_s26, 32 }
  0x45   :  { %v700_v18 = vpack.c.bf16 %v359_v4, %v358_v17  ;;  %p709_p0 = scmp.ne.s32.totalorder %s445_s26, %s708_s5  ;;  %p714_p2 = scmp.lt.s32.totalorder %s708_s5, %s708_s5 }
  0x47   :  { %701 = vmatpush3.bf16.msra.mxu1 %v700_v18  ;;  %p715_p3 = por %p714_p2, %p713_p1 }
  0x49   :  { %p716_p4 = pnand %p715_p3, %p709_p0 }
  0xf7   :  { %v488_v8 = vpop.f32.mrb[0].mxu0 }
  0xf8   :  { %v489_v9 = vpop.f32.mrb[1].mxu0 }
  0xf9   :  { %v490_v11 = vadd.f32 %v489_v9, %v488_v8 }
  0xfb   :  { %v176_v12 = vadd.f32 %v490_v11, %v452_v10 }
  0xfc   :  { %v245_v13 = vpop.f32.mrb[0].mxu1 }
  0xfd   :  { %v247_v14 = vpop.f32.mrb[1].mxu1  ;;  %v246_v15 = vadd.f32 %v245_v13, %v176_v12 }
  0xff   :  { %v249_v16 = vmax.f32 %v246_v15, 0.0 }
 0x101   :  { %558 = vmatmul.mubr.f32.vlgmr.msra.gmra.mrb[2].mxu0 %v249_v16 }
 0x1d4   :  { %v339_v20 = vpop.f32.mrb[2].mxu0 }
 0x1d5   :  { %v340_v21 = vadd.f32 %v454_v19, %v339_v20  ;;  %v559_v22 = vpop.f32.mrb[3].mxu0 }
 0x1d7   :  { %v343_v23 = vmax.f32 %v340_v21, 0.0 }
 0x1d9   :  { %593 = vmatmul.mubr.f32.vlgmr.msra.gmra.mrb[2].mxu1 %v343_v23 }
 0x2ac   :  { %v433_v25 = vpop.f32.mrb[2].mxu1 }
 0x2ad   :  { %v434_v26 = vadd.f32 %v455_v24, %v433_v25  ;;  %v594_v27 = vpop.f32.mrb[3].mxu1 }
 0x2af   :  { %437 = vst [vmem:[#allocation2] sm:$0x3] %v434_v26 }
 0x2b0   :  { %719 = shalt.err (!%p716_p4)
}
 0x2b1   :  { %s720_s28 = scalar_lea.hbm %s1079_s7, 32 }
 0x2b2   :  { %p721_p5 = scmp.ne.s32.totalorder %s1079_s7, %s720_s28  ;;  %p724_p6 = scmp.lt.u32.totalorder %s720_s28, %s1079_s7 }
 0x2b4   :  { %p726_p7 = pnand %p724_p6, %p721_p5 }
 0x2b6   :  { %729 = shalt.err (!%p726_p7)
}
 0x2b7   :  { %447 = dma.vmem_to_hbm [thread:$0]  %s445_s26, 32, %s1079_s7, [#allocation3]  }
 0x2b8   :  { %730 = dma.done.wait [#allocation3], 32  }
 0x2b9   :  { %731 = vsyncadd [#allocation3], 4294967264 }
 0x2ba   :  { %451 = vsyncpa [#allocation3], 1 }

</bundles_post_ra>
